<compile_context>
chip_gen: v5e
topology: v5e:2x2
jax: 0.10.0
libtpu: 0.0.40
codegen_flags: <defaults>
</compile_context>

<pallas_src>
import jax
import jax.numpy as jnp
from jax.experimental import pallas as pl
from jax.experimental.pallas import tpu as pltpu

EPS = 1e-5

# Set to jnp.bfloat16 on v6e/v7x for ~2-4x MXU throughput (needs a looser
# numerical tolerance); f32 keeps exact parity with the PyTorch reference.
MXU_DTYPE = jnp.float32


def double_conv_kernel(x_ref, w1_ref, b1_ref, w2_ref, b2_ref, out_ref,
                       p1_ref, hpad_ref, p2_ref):
    """Per-grid-step refs:
       x_ref:    (1, H+4, W+2, Cin)  whole padded image for this batch element
       w1_ref:   (9*Cin, Cout)       conv1 weight, BN scale folded in
       b1_ref:   (1, Cout)           conv1 bias + BN shift folded
       w2_ref:   (9*Cout, Cout)      conv2 weight, BN scale folded in
       b2_ref:   (1, Cout)
       out_ref:  (1, TH, W, Cout)    output H-tile
       p1_ref:   ((TH+2)*W, 9*Cin)   im2col scratch for conv1
       hpad_ref: (TH+2, W+2, Cout)   conv2 W-halo scratch (halo cols zeroed)
       p2_ref:   (TH*W, 9*Cout)      im2col scratch for conv2
    """
    TH = out_ref.shape[1]
    W = out_ref.shape[2]
    Cout = out_ref.shape[3]
    Cin = x_ref.shape[3]
    H = x_ref.shape[1] - 4          # input was padded by 2 rows on each side

    t = pl.program_id(1)
    row0 = t * TH                   # first output row of this H-tile

    # Input slab for this tile: padded rows [row0, row0 + TH + 4).
    xs = x_ref[0, pl.ds(row0, TH + 4), :, :].astype(p1_ref.dtype)  # (TH+4, W+2, Cin)

    # ---- conv1: build the im2col patch once, single MXU matmul (K = 9*Cin) ----
    M1 = (TH + 2) * W
    for dy in range(3):
        for dx in range(3):
            tap = dy * 3 + dx
            p1_ref[:, tap * Cin:(tap + 1) * Cin] = (
                xs[dy:dy + TH + 2, dx:dx + W, :].reshape(M1, Cin))
    h1 = jnp.dot(p1_ref[...], w1_ref[...],
                 preferred_element_type=jnp.float32) + b1_ref[0]
    h1 = jnp.maximum(h1, 0.0)                       # ReLU (BN folded into w1/b1)
    h1 = h1.reshape(TH + 2, W, Cout)

    # Rows of h1 that fall outside the image act as conv2's zero padding in H.
    r = row0 - 1 + jax.lax.broadcasted_iota(jnp.int32, (TH + 2, 1, 1), 0)
    h1 = jnp.where((r >= 0) & (r < H), h1, 0.0)

    # ---- conv2 W-halo: zero only the two 1-px halo columns of the scratch ----
    hpad_ref[:, 0:1, :] = jnp.zeros((TH + 2, 1, Cout), hpad_ref.dtype)
    hpad_ref[:, W + 1:W + 2, :] = jnp.zeros((TH + 2, 1, Cout), hpad_ref.dtype)
    hpad_ref[:, 1:W + 1, :] = h1.astype(hpad_ref.dtype)
    hp = hpad_ref[...]                              # (TH+2, W+2, Cout)

    # ---- conv2: im2col patch once, single MXU matmul (K = 9*Cout) ----
    M2 = TH * W
    for dy in range(3):
        for dx in range(3):
            tap = dy * 3 + dx
            p2_ref[:, tap * Cout:(tap + 1) * Cout] = (
                hp[dy:dy + TH, dx:dx + W, :].reshape(M2, Cout))
    h2 = jnp.dot(p2_ref[...], w2_ref[...],
                 preferred_element_type=jnp.float32) + b2_ref[0]
    h2 = jnp.maximum(h2, 0.0)                       # ReLU
    out_ref[0] = h2.reshape(TH, W, Cout).astype(out_ref.dtype)
    # Dropout(p=0.0) is the identity -> nothing to do.


def _fold_bn(w, cb, g, be, rm, rv):
    """Fold Conv2d bias + BatchNorm (eval) into one matmul weight/bias.
       y = ((x*w + cb) - rm)/sqrt(rv+eps)*g + be
         =  x*(w*s) + (cb - rm)*s + be ,   s = g/sqrt(rv+eps)
    """
    s = g / jnp.sqrt(rv + EPS)
    cout, cin = w.shape[0], w.shape[1]
    w_k = jnp.transpose(w, (2, 3, 1, 0)).reshape(9 * cin, cout)  # (tap*cin, cout)
    w_k = w_k * s[None, :]
    b = (cb - rm) * s + be
    return w_k.astype(MXU_DTYPE), b.reshape(1, cout).astype(jnp.float32)


def double_conv_pallas(x, params, tile_h=8):
    """x: (N, Cin, H, W) float32; params: PyTorch-shaped tensors."""
    (w1, cb1, g1, be1, rm1, rv1,
     w2, cb2, g2, be2, rm2, rv2) = params
    N, Cin, H, W = x.shape
    Cout = w1.shape[0]
    TH = tile_h if (H % tile_h == 0) else H          # H-tile size

    w1f, b1 = _fold_bn(w1, cb1, g1, be1, rm1, rv1)
    w2f, b2 = _fold_bn(w2, cb2, g2, be2, rm2, rv2)

    # NCHW -> NHWC; pad H by 2 (conv1 halo + conv2 tile halo) and W by 1.
    x_nhwc = jnp.transpose(x, (0, 2, 3, 1))
    x_pad = jnp.pad(x_nhwc, ((0, 0), (2, 2), (1, 1), (0, 0)))

    out_nhwc = pl.pallas_call(
        double_conv_kernel,
        out_shape=jax.ShapeDtypeStruct((N, H, W, Cout), x.dtype),
        grid=(N, H // TH),
        in_specs=[
            pl.BlockSpec((1, H + 4, W + 2, Cin), lambda n, t: (n, 0, 0, 0)),
            pl.BlockSpec((9 * Cin, Cout), lambda n, t: (0, 0)),
            pl.BlockSpec((1, Cout), lambda n, t: (0, 0)),
            pl.BlockSpec((9 * Cout, Cout), lambda n, t: (0, 0)),
            pl.BlockSpec((1, Cout), lambda n, t: (0, 0)),
        ],
        out_specs=pl.BlockSpec((1, TH, W, Cout), lambda n, t: (n, t, 0, 0)),
        scratch_shapes=[
            pltpu.VMEM(((TH + 2) * W, 9 * Cin), MXU_DTYPE),   # conv1 im2col
            pltpu.VMEM((TH + 2, W + 2, Cout), MXU_DTYPE),     # conv2 W-halo
            pltpu.VMEM((TH * W, 9 * Cout), MXU_DTYPE),        # conv2 im2col
        ],
        compiler_params=pltpu.CompilerParams(
            dimension_semantics=("parallel", "parallel")),
    )(x_pad, w1f, b1, w2f, b2)

    return jnp.transpose(out_nhwc, (0, 3, 1, 2))


def double_conv_reference(x, params):
    """Pure-JAX reference mirroring the PyTorch forward (eval mode, p=0)."""
    (w1, cb1, g1, be1, rm1, rv1,
     w2, cb2, g2, be2, rm2, rv2) = params

    def conv(x, w, b):
        y = jax.lax.conv_general_dilated(
            x, w, window_strides=(1, 1), padding=((1, 1), (1, 1)),
            dimension_numbers=('NCHW', 'OIHW', 'NCHW'))
        return y + b[None, :, None, None]

    def bn(x, g, be, rm, rv):
        return ((x - rm[None, :, None, None])
                / jnp.sqrt(rv[None, :, None, None] + EPS)
                * g[None, :, None, None] + be[None, :, None, None])

    h = jax.nn.relu(bn(conv(x, w1, cb1), g1, be1, rm1, rv1))
    return jax.nn.relu(bn(conv(h, w2, cb2), g2, be2, rm2, rv2))


def init_params(key, in_channels, out_channels):
    ks = jax.random.split(key, 10)
    w1 = jax.random.normal(ks[0], (out_channels, in_channels, 3, 3), jnp.float32) * 0.2
    cb1 = jax.random.normal(ks[1], (out_channels,), jnp.float32) * 0.1
    g1 = 1.0 + 0.1 * jax.random.normal(ks[2], (out_channels,), jnp.float32)
    be1 = 0.1 * jax.random.normal(ks[3], (out_channels,), jnp.float32)
    rm1 = 0.1 * jax.random.normal(ks[4], (out_channels,), jnp.float32)
    rv1 = jax.random.uniform(ks[5], (out_channels,), jnp.float32, 0.5, 1.5)
    w2 = jax.random.normal(ks[6], (out_channels, out_channels, 3, 3), jnp.float32) * 0.2
    cb2 = jax.random.normal(ks[7], (out_channels,), jnp.float32) * 0.1
    g2 = 1.0 + 0.1 * jax.random.normal(ks[8], (out_channels,), jnp.float32)
    be2 = 0.1 * jax.random.normal(ks[9], (out_channels,), jnp.float32)
    rm2 = 0.05 * jnp.arange(out_channels, dtype=jnp.float32)
    rv2 = 1.0 + 0.05 * jnp.arange(out_channels, dtype=jnp.float32)
    return (w1, cb1, g1, be1, rm1, rv1, w2, cb2, g2, be2, rm2, rv2)


if __name__ == "__main__":
    key = jax.random.PRNGKey(0)
    kx, kp = jax.random.split(key)

    N, Cin, Cout, H, W = 2, 4, 8, 16, 16
    x = jax.random.normal(kx, (N, Cin, H, W), jnp.float32)
    params = init_params(kp, Cin, Cout)

    out = jax.block_until_ready(double_conv_pallas(x, params))
    ref = jax.block_until_ready(double_conv_reference(x, params))

    assert out.shape == (N, Cout, H, W), out.shape
    err = float(jnp.max(jnp.abs(out - ref)))
    assert jnp.allclose(out, ref, atol=5e-4, rtol=5e-4), err
    print("KERNEL_OK")
</pallas_src>

<mosaic_0001>
module attributes {stable_mosaic.version = 11 : i64} {
  func.func @double_conv_kernel(%arg0: i32, %arg1: i32, %arg2: memref<1x20x18x4xf32, #tpu.memory_space<vmem>>, %arg3: memref<36x8xf32, #tpu.memory_space<vmem>>, %arg4: memref<1x8xf32, #tpu.memory_space<vmem>>, %arg5: memref<72x8xf32, #tpu.memory_space<vmem>>, %arg6: memref<1x8xf32, #tpu.memory_space<vmem>>, %arg7: memref<1x8x16x8xf32, #tpu.memory_space<vmem>>, %arg8: memref<160x36xf32, #tpu.memory_space<vmem>>, %arg9: memref<10x18x8xf32, #tpu.memory_space<vmem>>, %arg10: memref<128x72xf32, #tpu.memory_space<vmem>>) attributes {dimension_semantics = [#tpu.dimension_semantics<parallel>, #tpu.dimension_semantics<parallel>], iteration_bounds = array<i64: 2, 2>, scalar_prefetch = 0 : i64, scratch_operands = 3 : i64, tpu.core_type = #tpu.core_type<tc>, window_params = [{transform_indices = @transform_0, window_bounds = array<i64: 1, 20, 18, 4>}, {pipeline_mode = #tpu.pipeline_mode<synchronous>, transform_indices = @transform_1, window_bounds = array<i64: 36, 8>}, {pipeline_mode = #tpu.pipeline_mode<synchronous>, transform_indices = @transform_2, window_bounds = array<i64: 1, 8>}, {pipeline_mode = #tpu.pipeline_mode<synchronous>, transform_indices = @transform_3, window_bounds = array<i64: 72, 8>}, {pipeline_mode = #tpu.pipeline_mode<synchronous>, transform_indices = @transform_4, window_bounds = array<i64: 1, 8>}, {transform_indices = @transform_5, window_bounds = array<i64: 1, 8, 16, 8>}]} {
    %c8_i32 = arith.constant 8 : i32
    %0 = arith.muli %arg1, %c8_i32 : i32
    %c0 = arith.constant 0 : index
    %1 = arith.index_cast %0 : i32 to index
    %c0_0 = arith.constant 0 : index
    %c0_1 = arith.constant 0 : index
    %2 = vector.load %arg2[%c0, %1, %c0_0, %c0_1] : memref<1x20x18x4xf32, #tpu.memory_space<vmem>>, vector<1x12x18x4xf32>
    %3 = vector.shape_cast %2 : vector<1x12x18x4xf32> to vector<12x18x4xf32>
    %4 = vector.extract_strided_slice %3 {offsets = [0, 0, 0], sizes = [10, 16, 4], strides = [1, 1, 1]} : vector<12x18x4xf32> to vector<10x16x4xf32>
    %5 = vector.shape_cast %4 : vector<10x16x4xf32> to vector<160x4xf32>
    %c0_2 = arith.constant 0 : index
    %c0_3 = arith.constant 0 : index
    %6 = vector.load %arg8[%c0_2, %c0_3] : memref<160x36xf32, #tpu.memory_space<vmem>>, vector<160x4xf32>
    tpu.vector_store %arg8[%c0_2, %c0_3], %5 {strides = array<i32>} : memref<160x36xf32, #tpu.memory_space<vmem>>, vector<160x4xf32>,
    %7 = vector.extract_strided_slice %3 {offsets = [0, 1, 0], sizes = [10, 16, 4], strides = [1, 1, 1]} : vector<12x18x4xf32> to vector<10x16x4xf32>
    %8 = vector.shape_cast %7 : vector<10x16x4xf32> to vector<160x4xf32>
    %c0_4 = arith.constant 0 : index
    %c4 = arith.constant 4 : index
    %9 = vector.load %arg8[%c0_4, %c4] : memref<160x36xf32, #tpu.memory_space<vmem>>, vector<160x4xf32>
    tpu.vector_store %arg8[%c0_4, %c4], %8 {strides = array<i32>} : memref<160x36xf32, #tpu.memory_space<vmem>>, vector<160x4xf32>,
    %10 = vector.extract_strided_slice %3 {offsets = [0, 2, 0], sizes = [10, 16, 4], strides = [1, 1, 1]} : vector<12x18x4xf32> to vector<10x16x4xf32>
    %11 = vector.shape_cast %10 : vector<10x16x4xf32> to vector<160x4xf32>
    %c0_5 = arith.constant 0 : index
    %c8 = arith.constant 8 : index
    %12 = vector.load %arg8[%c0_5, %c8] : memref<160x36xf32, #tpu.memory_space<vmem>>, vector<160x4xf32>
    tpu.vector_store %arg8[%c0_5, %c8], %11 {strides = array<i32>} : memref<160x36xf32, #tpu.memory_space<vmem>>, vector<160x4xf32>,
    %13 = vector.extract_strided_slice %3 {offsets = [1, 0, 0], sizes = [10, 16, 4], strides = [1, 1, 1]} : vector<12x18x4xf32> to vector<10x16x4xf32>
    %14 = vector.shape_cast %13 : vector<10x16x4xf32> to vector<160x4xf32>
    %c0_6 = arith.constant 0 : index
    %c12 = arith.constant 12 : index
    %15 = vector.load %arg8[%c0_6, %c12] : memref<160x36xf32, #tpu.memory_space<vmem>>, vector<160x4xf32>
    tpu.vector_store %arg8[%c0_6, %c12], %14 {strides = array<i32>} : memref<160x36xf32, #tpu.memory_space<vmem>>, vector<160x4xf32>,
    %16 = vector.extract_strided_slice %3 {offsets = [1, 1, 0], sizes = [10, 16, 4], strides = [1, 1, 1]} : vector<12x18x4xf32> to vector<10x16x4xf32>
    %17 = vector.shape_cast %16 : vector<10x16x4xf32> to vector<160x4xf32>
    %c0_7 = arith.constant 0 : index
    %c16 = arith.constant 16 : index
    %18 = vector.load %arg8[%c0_7, %c16] : memref<160x36xf32, #tpu.memory_space<vmem>>, vector<160x4xf32>
    tpu.vector_store %arg8[%c0_7, %c16], %17 {strides = array<i32>} : memref<160x36xf32, #tpu.memory_space<vmem>>, vector<160x4xf32>,
    %19 = vector.extract_strided_slice %3 {offsets = [1, 2, 0], sizes = [10, 16, 4], strides = [1, 1, 1]} : vector<12x18x4xf32> to vector<10x16x4xf32>
    %20 = vector.shape_cast %19 : vector<10x16x4xf32> to vector<160x4xf32>
    %c0_8 = arith.constant 0 : index
    %c20 = arith.constant 20 : index
    %21 = vector.load %arg8[%c0_8, %c20] : memref<160x36xf32, #tpu.memory_space<vmem>>, vector<160x4xf32>
    tpu.vector_store %arg8[%c0_8, %c20], %20 {strides = array<i32>} : memref<160x36xf32, #tpu.memory_space<vmem>>, vector<160x4xf32>,
    %22 = vector.extract_strided_slice %3 {offsets = [2, 0, 0], sizes = [10, 16, 4], strides = [1, 1, 1]} : vector<12x18x4xf32> to vector<10x16x4xf32>
    %23 = vector.shape_cast %22 : vector<10x16x4xf32> to vector<160x4xf32>
    %c0_9 = arith.constant 0 : index
    %c24 = arith.constant 24 : index
    %24 = vector.load %arg8[%c0_9, %c24] : memref<160x36xf32, #tpu.memory_space<vmem>>, vector<160x4xf32>
    tpu.vector_store %arg8[%c0_9, %c24], %23 {strides = array<i32>} : memref<160x36xf32, #tpu.memory_space<vmem>>, vector<160x4xf32>,
    %25 = vector.extract_strided_slice %3 {offsets = [2, 1, 0], sizes = [10, 16, 4], strides = [1, 1, 1]} : vector<12x18x4xf32> to vector<10x16x4xf32>
    %26 = vector.shape_cast %25 : vector<10x16x4xf32> to vector<160x4xf32>
    %c0_10 = arith.constant 0 : index
    %c28 = arith.constant 28 : index
    %27 = vector.load %arg8[%c0_10, %c28] : memref<160x36xf32, #tpu.memory_space<vmem>>, vector<160x4xf32>
    tpu.vector_store %arg8[%c0_10, %c28], %26 {strides = array<i32>} : memref<160x36xf32, #tpu.memory_space<vmem>>, vector<160x4xf32>,
    %28 = vector.extract_strided_slice %3 {offsets = [2, 2, 0], sizes = [10, 16, 4], strides = [1, 1, 1]} : vector<12x18x4xf32> to vector<10x16x4xf32>
    %29 = vector.shape_cast %28 : vector<10x16x4xf32> to vector<160x4xf32>
    %c0_11 = arith.constant 0 : index
    %c32 = arith.constant 32 : index
    %30 = vector.load %arg8[%c0_11, %c32] : memref<160x36xf32, #tpu.memory_space<vmem>>, vector<160x4xf32>
    tpu.vector_store %arg8[%c0_11, %c32], %29 {strides = array<i32>} : memref<160x36xf32, #tpu.memory_space<vmem>>, vector<160x4xf32>,
    %c0_12 = arith.constant 0 : index
    %c0_13 = arith.constant 0 : index
    %31 = vector.load %arg8[%c0_12, %c0_13] : memref<160x36xf32, #tpu.memory_space<vmem>>, vector<160x36xf32>
    %c0_14 = arith.constant 0 : index
    %c0_15 = arith.constant 0 : index
    %32 = vector.load %arg3[%c0_14, %c0_15] : memref<36x8xf32, #tpu.memory_space<vmem>>, vector<36x8xf32>
    %cst = arith.constant dense<0.000000e+00> : vector<160x8xf32>
    %33 = tpu.matmul %31, %32, %cst {dimension_numbers = #tpu.dot_dimension_numbers<[1], [0], [0], [1], [0, 0, 1, 1], [], []>} : vector<160x36xf32>, vector<36x8xf32>, vector<160x8xf32> -> vector<160x8xf32>
    %c0_16 = arith.constant 0 : index
    %c0_17 = arith.constant 0 : index
    %34 = vector.load %arg4[%c0_16, %c0_17] : memref<1x8xf32, #tpu.memory_space<vmem>>, vector<1x8xf32>
    %35 = vector.shape_cast %34 : vector<1x8xf32> to vector<8xf32>
    %36 = vector.shape_cast %35 : vector<8xf32> to vector<1x8xf32>
    %37 = vector.broadcast %36 : vector<1x8xf32> to vector<160x8xf32>
    %38 = arith.addf %33, %37 : vector<160x8xf32>
    %cst_18 = arith.constant 0.000000e+00 : f32
    %39 = vector.broadcast %cst_18 : f32 to vector<160x8xf32>
    %40 = arith.maximumf %38, %39 : vector<160x8xf32>
    %41 = vector.shape_cast %40 : vector<160x8xf32> to vector<10x16x8xf32>
    %c1_i32 = arith.constant 1 : i32
    %42 = arith.subi %0, %c1_i32 : i32
    %43 = tpu.iota {dimensions = array<i32: 0>} : vector<10x1x1xi32>
    %44 = vector.broadcast %42 : i32 to vector<10x1x1xi32>
    %45 = arith.addi %44, %43 : vector<10x1x1xi32>
    %c0_i32 = arith.constant 0 : i32
    %46 = vector.broadcast %c0_i32 : i32 to vector<10x1x1xi32>
    %47 = arith.cmpi sge, %45, %46 : vector<10x1x1xi32>
    %c16_i32 = arith.constant 16 : i32
    %48 = vector.broadcast %c16_i32 : i32 to vector<10x1x1xi32>
    %49 = arith.cmpi slt, %45, %48 : vector<10x1x1xi32>
    %50 = arith.andi %47, %49 : vector<10x1x1xi1>
    %cst_19 = arith.constant 0.000000e+00 : f32
    %51 = vector.shape_cast %50 : vector<10x1x1xi1> to vector<10x1x1xi1>
    %52 = vector.broadcast %51 : vector<10x1x1xi1> to vector<10x16x8xi1>
    %53 = vector.broadcast %cst_19 : f32 to vector<10x16x8xf32>
    %54 = arith.select %52, %41, %53 : vector<10x16x8xi1>, vector<10x16x8xf32>
    %cst_20 = arith.constant 0.000000e+00 : f32
    %55 = vector.broadcast %cst_20 : f32 to vector<10x1x8xf32>
    %c0_21 = arith.constant 0 : index
    %c0_22 = arith.constant 0 : index
    %c0_23 = arith.constant 0 : index
    %56 = vector.load %arg9[%c0_21, %c0_22, %c0_23] : memref<10x18x8xf32, #tpu.memory_space<vmem>>, vector<10x1x8xf32>
    tpu.vector_store %arg9[%c0_21, %c0_22, %c0_23], %55 {strides = array<i32>} : memref<10x18x8xf32, #tpu.memory_space<vmem>>, vector<10x1x8xf32>,
    %cst_24 = arith.constant 0.000000e+00 : f32
    %57 = vector.broadcast %cst_24 : f32 to vector<10x1x8xf32>
    %c0_25 = arith.constant 0 : index
    %c17 = arith.constant 17 : index
    %c0_26 = arith.constant 0 : index
    %58 = vector.load %arg9[%c0_25, %c17, %c0_26] : memref<10x18x8xf32, #tpu.memory_space<vmem>>, vector<10x1x8xf32>
    tpu.vector_store %arg9[%c0_25, %c17, %c0_26], %57 {strides = array<i32>} : memref<10x18x8xf32, #tpu.memory_space<vmem>>, vector<10x1x8xf32>,
    %c0_27 = arith.constant 0 : index
    %c1 = arith.constant 1 : index
    %c0_28 = arith.constant 0 : index
    %59 = vector.load %arg9[%c0_27, %c1, %c0_28] : memref<10x18x8xf32, #tpu.memory_space<vmem>>, vector<10x16x8xf32>
    tpu.vector_store %arg9[%c0_27, %c1, %c0_28], %54 {strides = array<i32>} : memref<10x18x8xf32, #tpu.memory_space<vmem>>, vector<10x16x8xf32>,
    %c0_29 = arith.constant 0 : index
    %c0_30 = arith.constant 0 : index
    %c0_31 = arith.constant 0 : index
    %60 = vector.load %arg9[%c0_29, %c0_30, %c0_31] : memref<10x18x8xf32, #tpu.memory_space<vmem>>, vector<10x18x8xf32>
    %61 = vector.extract_strided_slice %60 {offsets = [0, 0, 0], sizes = [8, 16, 8], strides = [1, 1, 1]} : vector<10x18x8xf32> to vector<8x16x8xf32>
    %62 = vector.shape_cast %61 : vector<8x16x8xf32> to vector<128x8xf32>
    %c0_32 = arith.constant 0 : index
    %c0_33 = arith.constant 0 : index
    %63 = vector.load %arg10[%c0_32, %c0_33] : memref<128x72xf32, #tpu.memory_space<vmem>>, vector<128x8xf32>
    tpu.vector_store %arg10[%c0_32, %c0_33], %62 {strides = array<i32>} : memref<128x72xf32, #tpu.memory_space<vmem>>, vector<128x8xf32>,
    %64 = vector.extract_strided_slice %60 {offsets = [0, 1, 0], sizes = [8, 16, 8], strides = [1, 1, 1]} : vector<10x18x8xf32> to vector<8x16x8xf32>
    %65 = vector.shape_cast %64 : vector<8x16x8xf32> to vector<128x8xf32>
    %c0_34 = arith.constant 0 : index
    %c8_35 = arith.constant 8 : index
    %66 = vector.load %arg10[%c0_34, %c8_35] : memref<128x72xf32, #tpu.memory_space<vmem>>, vector<128x8xf32>
    tpu.vector_store %arg10[%c0_34, %c8_35], %65 {strides = array<i32>} : memref<128x72xf32, #tpu.memory_space<vmem>>, vector<128x8xf32>,
    %67 = vector.extract_strided_slice %60 {offsets = [0, 2, 0], sizes = [8, 16, 8], strides = [1, 1, 1]} : vector<10x18x8xf32> to vector<8x16x8xf32>
    %68 = vector.shape_cast %67 : vector<8x16x8xf32> to vector<128x8xf32>
    %c0_36 = arith.constant 0 : index
    %c16_37 = arith.constant 16 : index
    %69 = vector.load %arg10[%c0_36, %c16_37] : memref<128x72xf32, #tpu.memory_space<vmem>>, vector<128x8xf32>
    tpu.vector_store %arg10[%c0_36, %c16_37], %68 {strides = array<i32>} : memref<128x72xf32, #tpu.memory_space<vmem>>, vector<128x8xf32>,
    %70 = vector.extract_strided_slice %60 {offsets = [1, 0, 0], sizes = [8, 16, 8], strides = [1, 1, 1]} : vector<10x18x8xf32> to vector<8x16x8xf32>
    %71 = vector.shape_cast %70 : vector<8x16x8xf32> to vector<128x8xf32>
    %c0_38 = arith.constant 0 : index
    %c24_39 = arith.constant 24 : index
    %72 = vector.load %arg10[%c0_38, %c24_39] : memref<128x72xf32, #tpu.memory_space<vmem>>, vector<128x8xf32>
    tpu.vector_store %arg10[%c0_38, %c24_39], %71 {strides = array<i32>} : memref<128x72xf32, #tpu.memory_space<vmem>>, vector<128x8xf32>,
    %73 = vector.extract_strided_slice %60 {offsets = [1, 1, 0], sizes = [8, 16, 8], strides = [1, 1, 1]} : vector<10x18x8xf32> to vector<8x16x8xf32>
    %74 = vector.shape_cast %73 : vector<8x16x8xf32> to vector<128x8xf32>
    %c0_40 = arith.constant 0 : index
    %c32_41 = arith.constant 32 : index
    %75 = vector.load %arg10[%c0_40, %c32_41] : memref<128x72xf32, #tpu.memory_space<vmem>>, vector<128x8xf32>
    tpu.vector_store %arg10[%c0_40, %c32_41], %74 {strides = array<i32>} : memref<128x72xf32, #tpu.memory_space<vmem>>, vector<128x8xf32>,
    %76 = vector.extract_strided_slice %60 {offsets = [1, 2, 0], sizes = [8, 16, 8], strides = [1, 1, 1]} : vector<10x18x8xf32> to vector<8x16x8xf32>
    %77 = vector.shape_cast %76 : vector<8x16x8xf32> to vector<128x8xf32>
    %c0_42 = arith.constant 0 : index
    %c40 = arith.constant 40 : index
    %78 = vector.load %arg10[%c0_42, %c40] : memref<128x72xf32, #tpu.memory_space<vmem>>, vector<128x8xf32>
    tpu.vector_store %arg10[%c0_42, %c40], %77 {strides = array<i32>} : memref<128x72xf32, #tpu.memory_space<vmem>>, vector<128x8xf32>,
    %79 = vector.extract_strided_slice %60 {offsets = [2, 0, 0], sizes = [8, 16, 8], strides = [1, 1, 1]} : vector<10x18x8xf32> to vector<8x16x8xf32>
    %80 = vector.shape_cast %79 : vector<8x16x8xf32> to vector<128x8xf32>
    %c0_43 = arith.constant 0 : index
    %c48 = arith.constant 48 : index
    %81 = vector.load %arg10[%c0_43, %c48] : memref<128x72xf32, #tpu.memory_space<vmem>>, vector<128x8xf32>
    tpu.vector_store %arg10[%c0_43, %c48], %80 {strides = array<i32>} : memref<128x72xf32, #tpu.memory_space<vmem>>, vector<128x8xf32>,
    %82 = vector.extract_strided_slice %60 {offsets = [2, 1, 0], sizes = [8, 16, 8], strides = [1, 1, 1]} : vector<10x18x8xf32> to vector<8x16x8xf32>
    %83 = vector.shape_cast %82 : vector<8x16x8xf32> to vector<128x8xf32>
    %c0_44 = arith.constant 0 : index
    %c56 = arith.constant 56 : index
    %84 = vector.load %arg10[%c0_44, %c56] : memref<128x72xf32, #tpu.memory_space<vmem>>, vector<128x8xf32>
    tpu.vector_store %arg10[%c0_44, %c56], %83 {strides = array<i32>} : memref<128x72xf32, #tpu.memory_space<vmem>>, vector<128x8xf32>,
    %85 = vector.extract_strided_slice %60 {offsets = [2, 2, 0], sizes = [8, 16, 8], strides = [1, 1, 1]} : vector<10x18x8xf32> to vector<8x16x8xf32>
    %86 = vector.shape_cast %85 : vector<8x16x8xf32> to vector<128x8xf32>
    %c0_45 = arith.constant 0 : index
    %c64 = arith.constant 64 : index
    %87 = vector.load %arg10[%c0_45, %c64] : memref<128x72xf32, #tpu.memory_space<vmem>>, vector<128x8xf32>
    tpu.vector_store %arg10[%c0_45, %c64], %86 {strides = array<i32>} : memref<128x72xf32, #tpu.memory_space<vmem>>, vector<128x8xf32>,
    %c0_46 = arith.constant 0 : index
    %c0_47 = arith.constant 0 : index
    %88 = vector.load %arg10[%c0_46, %c0_47] : memref<128x72xf32, #tpu.memory_space<vmem>>, vector<128x72xf32>
    %c0_48 = arith.constant 0 : index
    %c0_49 = arith.constant 0 : index
    %89 = vector.load %arg5[%c0_48, %c0_49] : memref<72x8xf32, #tpu.memory_space<vmem>>, vector<72x8xf32>
    %cst_50 = arith.constant dense<0.000000e+00> : vector<128x8xf32>
    %90 = tpu.matmul %88, %89, %cst_50 {dimension_numbers = #tpu.dot_dimension_numbers<[1], [0], [0], [1], [0, 0, 1, 1], [], []>} : vector<128x72xf32>, vector<72x8xf32>, vector<128x8xf32> -> vector<128x8xf32>
    %c0_51 = arith.constant 0 : index
    %c0_52 = arith.constant 0 : index
    %91 = vector.load %arg6[%c0_51, %c0_52] : memref<1x8xf32, #tpu.memory_space<vmem>>, vector<1x8xf32>
    %92 = vector.shape_cast %91 : vector<1x8xf32> to vector<8xf32>
    %93 = vector.shape_cast %92 : vector<8xf32> to vector<1x8xf32>
    %94 = vector.broadcast %93 : vector<1x8xf32> to vector<128x8xf32>
    %95 = arith.addf %90, %94 : vector<128x8xf32>
    %cst_53 = arith.constant 0.000000e+00 : f32
    %96 = vector.broadcast %cst_53 : f32 to vector<128x8xf32>
    %97 = arith.maximumf %95, %96 : vector<128x8xf32>
    %98 = vector.shape_cast %97 : vector<128x8xf32> to vector<8x16x8xf32>
    %c0_54 = arith.constant 0 : index
    %c0_55 = arith.constant 0 : index
    %c0_56 = arith.constant 0 : index
    %c0_57 = arith.constant 0 : index
    %99 = vector.load %arg7[%c0_54, %c0_55, %c0_56, %c0_57] : memref<1x8x16x8xf32, #tpu.memory_space<vmem>>, vector<1x8x16x8xf32>
    %100 = vector.shape_cast %99 : vector<1x8x16x8xf32> to vector<8x16x8xf32>
    %101 = vector.shape_cast %98 : vector<8x16x8xf32> to vector<1x8x16x8xf32>
    tpu.vector_store %arg7[%c0_54, %c0_55, %c0_56, %c0_57], %101 {strides = array<i32>} : memref<1x8x16x8xf32, #tpu.memory_space<vmem>>, vector<1x8x16x8xf32>,
    return
  }
  func.func @transform_0(%arg0: i32, %arg1: i32) -> (i32, i32, i32, i32) {
    %c0_i32 = arith.constant 0 : i32
    %c0_i32_0 = arith.constant 0 : i32
    %c0_i32_1 = arith.constant 0 : i32
    %c0_i32_2 = arith.constant 0 : i32
    return %arg0, %c0_i32, %c0_i32_0, %c0_i32_1 : i32, i32, i32, i32
  }
  func.func @transform_1(%arg0: i32, %arg1: i32) -> (i32, i32) {
    %c0_i32 = arith.constant 0 : i32
    %c0_i32_0 = arith.constant 0 : i32
    %c0_i32_1 = arith.constant 0 : i32
    return %c0_i32, %c0_i32_0 : i32, i32
  }
  func.func @transform_2(%arg0: i32, %arg1: i32) -> (i32, i32) {
    %c0_i32 = arith.constant 0 : i32
    %c0_i32_0 = arith.constant 0 : i32
    %c0_i32_1 = arith.constant 0 : i32
    return %c0_i32, %c0_i32_0 : i32, i32
  }
  func.func @transform_3(%arg0: i32, %arg1: i32) -> (i32, i32) {
    %c0_i32 = arith.constant 0 : i32
    %c0_i32_0 = arith.constant 0 : i32
    %c0_i32_1 = arith.constant 0 : i32
    return %c0_i32, %c0_i32_0 : i32, i32
  }
  func.func @transform_4(%arg0: i32, %arg1: i32) -> (i32, i32) {
    %c0_i32 = arith.constant 0 : i32
    %c0_i32_0 = arith.constant 0 : i32
    %c0_i32_1 = arith.constant 0 : i32
    return %c0_i32, %c0_i32_0 : i32, i32
  }
  func.func @transform_5(%arg0: i32, %arg1: i32) -> (i32, i32, i32, i32) {
    %c0_i32 = arith.constant 0 : i32
    %c0_i32_0 = arith.constant 0 : i32
    %c0_i32_1 = arith.constant 0 : i32
    return %arg0, %arg1, %c0_i32, %c0_i32_0 : i32, i32, i32, i32
  }
}

</mosaic_0001>

<bundles_post_ra>
// kernel: tpu_custom_call.1
= control target key start
LH: loop header
LB: loop body
LE: loop exit
PB: predicated region body
PF: predicated region fallthrough
CT: control target
= control target key end

     0   :  { %s2598_s18 = smov 0   ;;  %s2600_s19 = smov 0   ;;  %s4363_s0 = inlined_call_operand.vmem [shape: f32[2,20,18,4], index: 0, kind: input, shape index: {}]   ;;  %s4364_s1 = inlined_call_operand.vmem [shape: f32[36,8], index: 1, kind: input, shape index: {}]   ;;  %s4365_s2 = inlined_call_operand.vmem [shape: f32[1,8], index: 2, kind: input, shape index: {}]   ;;  %s4366_s3 = inlined_call_operand.vmem [shape: f32[72,8], index: 3, kind: input, shape index: {}]   ;;  %s4367_s4 = inlined_call_operand.vmem [shape: f32[1,8], index: 4, kind: input, shape index: {}]   ;;  %s4368_s5 = inlined_call_operand.vmem [shape: f32[2,16,16,8], index: 5, kind: output, shape index: {}]  }
   0x1   :  { %s2602_s20 = smov 0   ;;  %s2604_s21 = smov 0  }
   0x2   :  { %s2606_s22 = smov 0  }
   0x3 LB: > { %s24_s23 = sadd.s32 1, %s2545_s20  ;;  %s27_s24 = sadd.s32 1, %s2549_s21  ;;  %s2553_s22 = sphi %s2606_s22, %s15_s22   ;;  %s2549_s21 = sphi %s2604_s21, %s4392_s21   ;;  %s2545_s20 = sphi %s2602_s20, %s4391_s20   ;;  %s2541_s19 = sphi %s2600_s19, %s4390_s19   ;;  %s2537_s18 = sphi %s2598_s18, %s4389_s18  }
   0x4   : > { %p25_p0 = scmp.ge.s32.totalorder %s24_s23, 2  ;;  %p2397_p1 = scmp.ge.s32.totalorder %s2553_s22, 1 }
   0x5   : > { %p201_p2 = scmp.lt.s32.totalorder %s2553_s22, 5 }
   0x6   : > { %s4394_s23 = smov (%p25_p0, %s24_s23), 0  ;;  %s4396_s24 = smov (!%p25_p0, %s27_s24), %s2549_s21 }
   0x7   : > { %p202_p3 = pnand %p2397_p1, %p201_p2  ;;  %p29_p4 = scmp.ge.s32.totalorder %s4396_s24, 2 }
   0x8   : > { %p234_p5 = scmp.lt.s32.totalorder (!%p202_p3), %s2541_s19, 1  ;;  %s2404_s25 = smul.u32 (!%p202_p3), 192, %s2537_s18 }
   0x9   : > { %s4398_s24 = smov (%p29_p4, %s4396_s24), 0  ;;  %205 = sbr.rel (%p202_p3) target bundleno = 1250 (0x4e2), region = 40 }
   0xa   : > { %s2555_s6 = smov (!%p202_p3), 4   ;;  %s2556_s7 = smov (!%p202_p3), 8  }
   0xb   : > { %s2557_s8 = smov (!%p202_p3), 12   ;;  %s2558_s9 = smov (!%p202_p3), 16  }
   0xc   : > { %s2559_s10 = smov (!%p202_p3), 20   ;;  %s2560_s11 = smov (!%p202_p3), 24  }
   0xd   : > { %s2561_s12 = smov (!%p202_p3), 28   ;;  %s2562_s13 = smov (!%p202_p3), 32  }
   0xe   : > { %s4400_s19 = smov (!%p234_p5, %s2541_s19), 1  ;;  %vm340_vm0 = vcmask 1046528   ;;  %vm472_vm1 = vcmask 1045504   ;;  %vm289_vm2 = vcmask 31744   ;;  %vm451_vm3 = vcmask 64544   ;;  %s2567_s14 = smov 64  }
   0xf   : > { %s2459_s26 = smul.u32 480, %s4400_s19  ;;  %vm583_vm4 = vcmask 97344   ;;  %vm666_vm5 = vcmask 130144   ;;  %vm753_vm6 = vcmask 162944   ;;  %vm839_vm7 = vcmask 195744  }
  0x10   : > { %vm922_vm8 = vcmask 228544   ;;  %vm1206_vm9 = vcmask 1043456   ;;  %vm1009_vm10 = vcmask 261344   ;;  %vm1095_vm11 = vcmask 294144  }
  0x11   : > { %s238_s29 = scalar_lea.vmem %s4363_s0, %s2459_s26  ;;  %vm1145_vm12 = vcmask 293888   ;;  %vm1388_vm13 = vcmask 57344  }
  0x12   : > { %s2637_s30 = scalar_lea.vmem %s238_s29, %s2404_s25 }
  0x13   : > { %v2640_v0 = vld [vmem:[%s2637_s30 + $0x18] sm:$0xff]  ;;  %v2643_v1 = vld [vmem:[%s2637_s30 + $0x20] sm:$0xff]  ;;  %v2651_v5 = vld [vmem:[%s2637_s30 + $0x8] sm:$0xff] }
  0x14   : > { %v2646_v2 = vld [vmem:[%s2637_s30] sm:$0xff]  ;;  %v346_v3 = vrot.slane %v2640_v0, 1  ;;  %v347_v4 = vrot.slane %v2643_v1, 1  ;;  %v342_v7 = vrot.slane %v2651_v5, 1  ;;  %v2656_v8 = vld [vmem:[%s2637_s30 + $0x28] sm:$0x3] }
  0x15   : > { %v341_v6 = vrot.slane %v2646_v2, 1  ;;  %v2662_v10 = vld [vmem:[%s2637_s30 + $0x10] sm:$0x3]  ;;  %v2671_v13 = vld [vmem:[%s2637_s30 + $0x38] sm:$0xff]  ;;  %v349_v15 = vrot.slane %v2656_v8, 1  ;;  %v2698_v25 = vld [vmem:[%s2637_s30 + $0x48] sm:$0xff] }
  0x16   : > { %v2659_v9 = vsel %vm340_vm0, %v346_v3, %v347_v4  ;;  %v2665_v11 = vld [vmem:[%s2637_s30 + $0x30] sm:$0xff]  ;;  %v352_v16 = vrot.slane %v2671_v13, 1  ;;  %v344_v17 = vrot.slane %v2662_v10, 1  ;;  %v2679_v18 = vld [vmem:[%s2637_s30 + $0x40] sm:$0x3]  ;;  %v356_v29 = vrot.slane %v2698_v25, 1 }
  0x17   : > { %395 = vrot.lane.b32.xlu1 %v2659_v9, %s2555_s6  ;;  %v343_v12 = vsel %vm340_vm0, %v341_v6, %v342_v7  ;;  %v351_v14 = vrot.slane %v2665_v11, 1  ;;  %v2687_v20 = vsel %vm340_vm0, %v347_v4, %v349_v15  ;;  %v354_v21 = vrot.slane %v2679_v18, 1  ;;  %v2692_v23 = vld [vmem:[%s2637_s30 + $0x50] sm:$0xff]  ;;  %v2695_v24 = vld [vmem:[%s2637_s30 + $0x58] sm:$0x3]  ;;  %v2710_v30 = vld [vmem:[%s2637_s30 + $0x60] sm:$0xff] }
  0x18   : > { %391 = vrot.lane.b32.xlu0 %v343_v12, %s2555_s6  ;;  %v345_v22 = vsel %vm340_vm0, %v342_v7, %v344_v17  ;;  %v357_v26 = vrot.slane %v2692_v23, 1  ;;  %v359_v27 = vrot.slane %v2695_v24, 1  ;;  %v2713_v31 = vld [vmem:[%s2637_s30 + $0x68] sm:$0xff]  ;;  %v361_v33 = vrot.slane %v2710_v30, 1  ;;  %v2725_v35 = vld [vmem:[%s2637_s30 + $0x78] sm:$0xff]  ;;  %v2728_v36 = vld [vmem:[%s2637_s30 + $0x80] sm:$0xff] }
  0x19   : > { %v2682_v19 = vsel %vm340_vm0, %v351_v14, %v352_v16  ;;  %v2706_v28 = vsel %vm340_vm0, %v352_v16, %v354_v21  ;;  %v2731_v37 = vld [vmem:[%s2637_s30 + $0x70] sm:$0x3]  ;;  %v362_v38 = vrot.slane %v2713_v31, 1  ;;  %v366_v39 = vrot.slane %v2725_v35, 1  ;;  %v2745_v43 = vld [vmem:[%s2637_s30 + $0x88] sm:$0x3] }
  0x1a   : > { %399 = vrot.lane.b32.xlu2 %v2682_v19, %s2555_s6  ;;  %v2718_v32 = vsel %vm340_vm0, %v357_v26, %v359_v27  ;;  %v2722_v34 = vsel %vm340_vm0, %v356_v29, %v357_v26  ;;  %v367_v40 = vrot.slane %v2728_v36, 1  ;;  %v364_v42 = vrot.slane %v2731_v37, 1  ;;  %v2757_v47 = vld [vmem:[%s2637_s30 + $0x98] sm:$0xff]  ;;  %v2760_v48 = vld [vmem:[%s2637_s30 + $0xa0] sm:$0x3]  ;;  %v2763_v49 = vld [vmem:[%s2637_s30 + $0x90] sm:$0xff] }
  0x1b   : > { %v2741_v41 = vsel %vm340_vm0, %v361_v33, %v362_v38  ;;  %v369_v45 = vrot.slane %v2745_v43, 1  ;;  %v372_v50 = vrot.slane %v2757_v47, 1  ;;  %v374_v51 = vrot.slane %v2760_v48, 1  ;;  %v2776_v54 = vld [vmem:[%s2637_s30 + $0xa8] sm:$0xff]  ;;  %v2779_v55 = vld [vmem:[%s2637_s30 + $0xb0] sm:$0xff]  ;;  %v2791_v59 = vld [vmem:[%s2637_s30 + $0xc0] sm:$0xff] }
  0x1c   : > { %v2750_v44 = vsel %vm340_vm0, %v366_v39, %v367_v40  ;;  %v2754_v46 = vsel %vm340_vm0, %v362_v38, %v364_v42  ;;  %v371_v53 = vrot.slane %v2763_v49, 1  ;;  %v376_v57 = vrot.slane %v2776_v54, 1  ;;  %v2794_v60 = vld [vmem:[%s2637_s30 + $0xc8] sm:$0xff]  ;;  %v2797_v61 = vld [vmem:[%s2637_s30 + $0xb8] sm:$0x3]  ;;  %v2823_v16 = vld [vmem:[%s2637_s30 + $0xe0] sm:$0xff] }
  0x1d   : > { %v2772_v52 = vsel %vm340_vm0, %v367_v40, %v369_v45  ;;  %v2784_v56 = vsel %vm340_vm0, %v372_v50, %v374_v51  ;;  %v377_v62 = vrot.slane %v2779_v55, 1  ;;  %v381_v63 = vrot.slane %v2791_v59, 1  ;;  %v2811_v7 = vld [vmem:[%s2637_s30 + $0xd0] sm:$0x3]  ;;  %v2826_v17 = vld [vmem:[%s2637_s30 + $0xe8] sm:$0x3] }
  0x1e   : > { %v2788_v58 = vsel %vm340_vm0, %v371_v53, %v372_v50  ;;  %v382_v3 = vrot.slane %v2794_v60, 1  ;;  %v379_v6 = vrot.slane %v2797_v61, 1  ;;  %v384_v14 = vrot.slane %v2811_v7, 1  ;;  %v2829_v21 = vld [vmem:[%s2637_s30 + $0xd8] sm:$0xff]  ;;  %294 = vst.msk [vmem:[#allocation2 + $0x20] sm:$0xff] %vm289_vm2, %v2665_v11 }
  0x1f   : > { %397 = vrot.lane.b32.xlu1 %v2687_v20, %s2555_s6  ;;  %v2807_v4 = vsel %vm340_vm0, %v376_v57, %v377_v62  ;;  %v389_v26 = vrot.slane %v2826_v17, 1  ;;  %v386_v29 = vrot.slane %v2829_v21, 1  ;;  %v473_v38 = vrot.slane %v2646_v2, 2  ;;  %290 = vst.msk [vmem:[#allocation2] sm:$0xff] %vm289_vm2, %v2646_v2 }
  0x20   : > { %393 = vrot.lane.b32.xlu0 %v345_v22, %s2555_s6  ;;  %v2816_v12 = vsel %vm340_vm0, %v381_v63, %v382_v3  ;;  %v2820_v15 = vsel %vm340_vm0, %v377_v62, %v379_v6  ;;  %v387_v22 = vrot.slane %v2823_v16, 1  ;;  %v2838_v27 = vsel %vm340_vm0, %v382_v3, %v384_v14  ;;  %291 = vst.msk [vmem:[#allocation2 + $0x8] sm:$0xff] %vm289_vm2, %v2651_v5 }
  0x21   : > { %v474_v40 = vrot.slane %v2651_v5, 2  ;;  %v478_v42 = vrot.slane %v2640_v0, 2  ;;  %v479_v45 = vrot.slane %v2643_v1, 2  ;;  %v476_v51 = vrot.slane %v2662_v10, 2  ;;  %292 = vst.msk [vmem:[#allocation2 + $0x10] sm:$0xff] %vm289_vm2, %v2640_v0 }
  0x22   : > { %401 = vrot.lane.b32.xlu2 %v2706_v28, %s2555_s6  ;;  %v2844_v33 = vsel %vm340_vm0, %v387_v22, %v389_v26  ;;  %v2848_v39 = vsel %vm340_vm0, %v386_v29, %v387_v22  ;;  %v481_v57 = vrot.slane %v2656_v8, 2  ;;  %v484_v63 = vrot.slane %v2671_v13, 2  ;;  %293 = vst.msk [vmem:[#allocation2 + $0x18] sm:$0xff] %vm289_vm2, %v2643_v1 }
  0x23   : > { %v475_v50 = vsel %vm472_vm1, %v473_v38, %v474_v40  ;;  %v2861_v53 = vsel %vm472_vm1, %v478_v42, %v479_v45  ;;  %v477_v62 = vsel %vm472_vm1, %v474_v40, %v476_v51  ;;  %v486_v3 = vrot.slane %v2679_v18, 2  ;;  %295 = vst.msk [vmem:[#allocation2 + $0x28] sm:$0xff] %vm289_vm2, %v2671_v13 }
  0x24   : > { %v2871_v10 = vsel %vm472_vm1, %v479_v45, %v481_v57  ;;  %v483_v6 = vrot.slane %v2665_v11, 2  ;;  %v488_v14 = vrot.slane %v2698_v25, 2  ;;  %v489_v26 = vrot.slane %v2692_v23, 2  ;;  %296 = vst.msk [vmem:[#allocation2 + $0x30] sm:$0xff] %vm289_vm2, %v2698_v25 }
  0x25   : > { %v2877_v8 = vsel %vm472_vm1, %v484_v63, %v486_v3  ;;  %v493_v18 = vrot.slane %v2710_v30, 2  ;;  %v494_v29 = vrot.slane %v2713_v31, 2  ;;  %v491_v40 = vrot.slane %v2695_v24, 2  ;;  %297 = vst.msk [vmem:[#allocation2 + $0x38] sm:$0xff] %vm289_vm2, %v2692_v23 }
  0x26   : > { %v2881_v22 = vsel %vm472_vm1, %v483_v6, %v484_v63  ;;  %v2891_v38 = vsel %vm472_vm1, %v488_v14, %v489_v26  ;;  %v496_v45 = vrot.slane %v2731_v37, 2  ;;  %v499_v51 = vrot.slane %v2728_v36, 2  ;;  %298 = vst.msk [vmem:[#allocation2 + $0x40] sm:$0xff] %vm289_vm2, %v2710_v30 }
  0x27   : > { %405 = vrot.lane.b32.xlu1 %v2718_v32, %s2555_s6  ;;  %v2897_v42 = vsel %vm472_vm1, %v493_v18, %v494_v29  ;;  %v501_v24 = vrot.slane %v2745_v43, 2  ;;  %v503_v63 = vrot.slane %v2763_v49, 2  ;;  %v504_v6 = vrot.slane %v2757_v47, 2  ;;  %299 = vst.msk [vmem:[#allocation2 + $0x48] sm:$0xff] %vm289_vm2, %v2713_v31 }
  0x28   : > { %403 = vrot.lane.b32.xlu0 %v2722_v34, %s2555_s6  ;;  %v2910_v57 = vsel %vm472_vm1, %v494_v29, %v496_v45  ;;  %v508_v43 = vrot.slane %v2776_v54, 2  ;;  %v509_v14 = vrot.slane %v2779_v55, 2  ;;  %v506_v18 = vrot.slane %v2760_v48, 2  ;;  %300 = vst.msk [vmem:[#allocation2 + $0x50] sm:$0xff] %vm289_vm2, %v2725_v35 }
  0x29   : > { %v2916_v37 = vsel %vm472_vm1, %v499_v51, %v501_v24  ;;  %v514_v2 = vrot.slane %v2794_v60, 2  ;;  %v516_v5 = vrot.slane %v2811_v7, 2  ;;  %v513_v45 = vrot.slane %v2791_v59, 2  ;;  %301 = vst.msk [vmem:[#allocation2 + $0x58] sm:$0xff] %vm289_vm2, %v2728_v36 }
  0x2a   : > { %407 = vrot.lane.b32.xlu2 %v2741_v41, %s2555_s6  ;;  %v2942_v29 = vsel %vm472_vm1, %v508_v43, %v509_v14  ;;  %v2948_v48 = vsel %vm472_vm1, %v504_v6, %v506_v18  ;;  %302 = vst.msk [vmem:[#allocation2 + $0x60] sm:$0xff] %vm289_vm2, %v2763_v49  ;;  %v521_v43 = vrot.slane %v2826_v17, 2 }
  0x2b   : > { %v2977_v7 = vsel %vm472_vm1, %v514_v2, %v516_v5  ;;  %v2983_v24 = vsel %vm472_vm1, %v513_v45, %v514_v2  ;;  %303 = vst.msk [vmem:[#allocation2 + $0x68] sm:$0xff] %vm289_vm2, %v2757_v47 }
  0x2c   : > { %304 = vst.msk [vmem:[#allocation2 + $0x70] sm:$0xff] %vm289_vm2, %v2776_v54 }
  0x2d   : > { %305 = vst.msk [vmem:[#allocation2 + $0x78] sm:$0xff] %vm289_vm2, %v2779_v55 }
  0x2e   : > { %306 = vst.msk [vmem:[#allocation2 + $0x80] sm:$0xff] %vm289_vm2, %v2791_v59 }
  0x2f   : > { %411 = vrot.lane.b32.xlu1 %v2750_v44, %s2555_s6  ;;  %307 = vst.msk [vmem:[#allocation2 + $0x88] sm:$0xff] %vm289_vm2, %v2794_v60 }
  0x30   : > { %409 = vrot.lane.b32.xlu0 %v2754_v46, %s2555_s6  ;;  %308 = vst.msk [vmem:[#allocation2 + $0x90] sm:$0xff] %vm289_vm2, %v2829_v21 }
  0x31   : > { %309 = vst.msk [vmem:[#allocation2 + $0x98] sm:$0xff] %vm289_vm2, %v2823_v16 }
  0x32   : > { %413 = vrot.lane.b32.xlu2 %v2772_v52, %s2555_s6 }
  0x37   : > { %417 = vrot.lane.b32.xlu1 %v2784_v56, %s2555_s6 }
  0x38   : > { %415 = vrot.lane.b32.xlu0 %v2788_v58, %s2555_s6 }
  0x3a   : > { %419 = vrot.lane.b32.xlu2 %v2807_v4, %s2555_s6 }
  0x3f   : > { %423 = vrot.lane.b32.xlu1 %v2816_v12, %s2555_s6 }
  0x40   : > { %421 = vrot.lane.b32.xlu0 %v2820_v15, %s2555_s6 }
  0x42   : > { %425 = vrot.lane.b32.xlu2 %v2838_v27, %s2555_s6 }
  0x47   : > { %429 = vrot.lane.b32.xlu1 %v2844_v33, %s2555_s6 }
  0x48   : > { %427 = vrot.lane.b32.xlu0 %v2848_v39, %s2555_s6 }
  0x4a   : > { %523 = vrot.lane.b32.xlu2 %v475_v50, %s2556_s7  ;;  %v2901_v50 = vsel %vm472_vm1, %v489_v26, %v491_v40  ;;  %v2930_v26 = vsel %vm472_vm1, %v503_v63, %v504_v6  ;;  %v511_v40 = vrot.slane %v2797_v61, 2  ;;  %v519_v63 = vrot.slane %v2823_v16, 2 }
  0x4c   : > { %v2963_v61 = vsel %vm472_vm1, %v509_v14, %v511_v40  ;;  %v3012_v14 = vsel %vm472_vm1, %v519_v63, %v521_v43 }
  0x4f   : > { %527 = vrot.lane.b32.xlu1 %v2861_v53, %s2556_s7 }
  0x50   : > { %525 = vrot.lane.b32.xlu0 %v477_v62, %s2556_s7  ;;  %v498_v62 = vrot.slane %v2725_v35, 2 }
  0x52   : > { %529 = vrot.lane.b32.xlu2 %v2871_v10, %s2556_s7  ;;  %v2920_v3 = vsel %vm472_vm1, %v498_v62, %v499_v51  ;;  %v518_v51 = vrot.slane %v2829_v21, 2 }
  0x54   : > { %v2998_v6 = vsel %vm472_vm1, %v518_v51, %v519_v63 }
  0x57   : > { %533 = vrot.lane.b32.xlu1 %v2877_v8, %s2556_s7 }
  0x58   : > { %531 = vrot.lane.b32.xlu0 %v2881_v22, %s2556_s7 }
  0x5a   : > { %535 = vrot.lane.b32.xlu2 %v2891_v38, %s2556_s7 }
  0x5f   : > { %539 = vrot.lane.b32.xlu1 %v2897_v42, %s2556_s7 }
  0x60   : > { %537 = vrot.lane.b32.xlu0 %v2901_v50, %s2556_s7 }
  0x62   : > { %541 = vrot.lane.b32.xlu2 %v2910_v57, %s2556_s7 }
  0x67   : > { %545 = vrot.lane.b32.xlu1 %v2916_v37, %s2556_s7 }
  0x68   : > { %543 = vrot.lane.b32.xlu0 %v2920_v3, %s2556_s7 }
  0x6a   : > { %547 = vrot.lane.b32.xlu2 %v2930_v26, %s2556_s7 }
  0x6f   : > { %551 = vrot.lane.b32.xlu1 %v2942_v29, %s2556_s7 }
  0x70   : > { %549 = vrot.lane.b32.xlu0 %v2948_v48, %s2556_s7 }
  0x72   : > { %553 = vrot.lane.b32.xlu2 %v2963_v61, %s2556_s7 }
  0x74   : > { %v400_v62 = vpop.permute.xlu2 %399 }
  0x75   : > { %456 = vst.msk [vmem:[#allocation2 + $0x20] sm:$0xff] %vm451_vm3, %v400_v62 }
  0x77   : > { %557 = vrot.lane.b32.xlu1 %v2977_v7, %s2556_s7 }
  0x78   : > { %555 = vrot.lane.b32.xlu0 %v2983_v24, %s2556_s7 }
  0x7a   : > { %559 = vrot.lane.b32.xlu2 %v2998_v6, %s2556_s7 }
  0x7c   : > { %v402_v17 = vpop.permute.xlu2 %401 }
  0x7d   : > { %457 = vst.msk [vmem:[#allocation2 + $0x28] sm:$0xff] %vm451_vm3, %v402_v17 }
  0x7f   : > { %606 = vrot.lane.b32.xlu1 %v2640_v0, %s2557_s8 }
  0x80   : > { %561 = vrot.lane.b32.xlu0 %v3012_v14, %s2556_s7 }
  0x82   : > { %608 = vrot.lane.b32.xlu2 %v2643_v1, %s2557_s8 }
  0x84   : > { %v408_v18 = vpop.permute.xlu2 %407 }
  0x85   : > { %460 = vst.msk [vmem:[#allocation2 + $0x40] sm:$0xff] %vm451_vm3, %v408_v18 }
  0x87   : > { %612 = vrot.lane.b32.xlu1 %v2671_v13, %s2557_s8 }
  0x88   : > { %610 = vrot.lane.b32.xlu0 %v2665_v11, %s2557_s8 }
  0x89   : > { %v396_v40 = vpop.permute.xlu1 %395 }
  0x8a   : > { %454 = vst.msk [vmem:[#allocation2 + $0x10] sm:$0xff] %vm451_vm3, %v396_v40  ;;  %v392_v2 = vpop.permute.xlu0 %391  ;;  %614 = vrot.lane.b32.xlu2 %v2698_v25, %s2557_s8 }
  0x8b   : > { %452 = vst.msk [vmem:[#allocation2] sm:$0xff] %vm451_vm3, %v392_v2 }
  0x8c   : > { %v414_v0 = vpop.permute.xlu2 %413 }
  0x8d   : > { %463 = vst.msk [vmem:[#allocation2 + $0x58] sm:$0xff] %vm451_vm3, %v414_v0  ;;  %v3069_v0 = vld [vmem:[%s2637_s30 + $0xf0] sm:$0xff] }
  0x8f   : > { %618 = vrot.lane.b32.xlu1 %v2710_v30, %s2557_s8 }
  0x90   : > { %616 = vrot.lane.b32.xlu0 %v2692_v23, %s2557_s8 }
  0x91   : > { %v398_v1 = vpop.permute.xlu1 %397 }
  0x92   : > { %455 = vst.msk [vmem:[#allocation2 + $0x18] sm:$0xff] %vm451_vm3, %v398_v1  ;;  %v394_v5 = vpop.permute.xlu0 %393  ;;  %620 = vrot.lane.b32.xlu2 %v2713_v31, %s2557_s8 }
  0x93   : > { %453 = vst.msk [vmem:[#allocation2 + $0x8] sm:$0xff] %vm451_vm3, %v394_v5  ;;  %v3077_v5 = vld [vmem:[%s2637_s30 + $0xf8] sm:$0xff] }
  0x94   : > { %v420_v45 = vpop.permute.xlu2 %419 }
  0x95   : > { %466 = vst.msk [vmem:[#allocation2 + $0x70] sm:$0xff] %vm451_vm3, %v420_v45 }
  0x97   : > { %624 = vrot.lane.b32.xlu1 %v2728_v36, %s2557_s8 }
  0x98   : > { %622 = vrot.lane.b32.xlu0 %v2725_v35, %s2557_s8 }
  0x99   : > { %v406_v51 = vpop.permute.xlu1 %405 }
  0x9a   : > { %459 = vst.msk [vmem:[#allocation2 + $0x38] sm:$0xff] %vm451_vm3, %v406_v51  ;;  %v404_v62 = vpop.permute.xlu0 %403  ;;  %626 = vrot.lane.b32.xlu2 %v2763_v49, %s2557_s8 }
  0x9b   : > { %458 = vst.msk [vmem:[#allocation2 + $0x30] sm:$0xff] %vm451_vm3, %v404_v62 }
  0x9c   : > { %v426_v63 = vpop.permute.xlu2 %425 }
  0x9d   : > { %469 = vst.msk [vmem:[#allocation2 + $0x88] sm:$0xff] %vm451_vm3, %v426_v63 }
  0x9f   : > { %630 = vrot.lane.b32.xlu1 %v2776_v54, %s2557_s8 }
  0xa0   : > { %628 = vrot.lane.b32.xlu0 %v2757_v47, %s2557_s8 }
  0xa1   : > { %v412_v43 = vpop.permute.xlu1 %411 }
  0xa2   : > { %462 = vst.msk [vmem:[#allocation2 + $0x50] sm:$0xff] %vm451_vm3, %v412_v43  ;;  %v410_v17 = vpop.permute.xlu0 %409  ;;  %632 = vrot.lane.b32.xlu2 %v2779_v55, %s2557_s8 }
  0xa3   : > { %461 = vst.msk [vmem:[#allocation2 + $0x48] sm:$0xff] %vm451_vm3, %v410_v17 }
  0xa4   : > { %v524_v18 = vpop.permute.xlu2 %523 }
  0xa5   : > { %584 = vst.msk [vmem:[#allocation2] sm:$0xff] %vm583_vm4, %v524_v18 }
  0xa7   : > { %636 = vrot.lane.b32.xlu1 %v2794_v60, %s2557_s8 }
  0xa8   : > { %634 = vrot.lane.b32.xlu0 %v2791_v59, %s2557_s8 }
  0xa9   : > { %v418_v40 = vpop.permute.xlu1 %417 }
  0xaa   : > { %465 = vst.msk [vmem:[#allocation2 + $0x68] sm:$0xff] %vm451_vm3, %v418_v40  ;;  %v416_v2 = vpop.permute.xlu0 %415  ;;  %638 = vrot.lane.b32.xlu2 %v2829_v21, %s2557_s8 }
  0xab   : > { %464 = vst.msk [vmem:[#allocation2 + $0x60] sm:$0xff] %vm451_vm3, %v416_v2 }
  0xac   : > { %v530_v1 = vpop.permute.xlu2 %529 }
  0xad   : > { %587 = vst.msk [vmem:[#allocation2 + $0x18] sm:$0xff] %vm583_vm4, %v530_v1 }
  0xaf   : > { %642 = vrot.lane.b32.xlu1 %v3069_v0, %s2557_s8 }
  0xb0   : > { %640 = vrot.lane.b32.xlu0 %v2823_v16, %s2557_s8 }
  0xb1   : > { %v424_v45 = vpop.permute.xlu1 %423 }
  0xb2   : > { %468 = vst.msk [vmem:[#allocation2 + $0x80] sm:$0xff] %vm451_vm3, %v424_v45  ;;  %v422_v51 = vpop.permute.xlu0 %421  ;;  %644 = vrot.lane.b32.xlu2 %v3077_v5, %s2557_s8  ;;  %s3479_s8 = sshll.u32 %s2537_s18, 3 }
  0xb3   : > { %467 = vst.msk [vmem:[#allocation2 + $0x78] sm:$0xff] %vm451_vm3, %v422_v51  ;;  %p242_p6 = scmp.lt.s32.totalorder %s3479_s8, 15 }
  0xb4   : > { %v536_v62 = vpop.permute.xlu2 %535 }
  0xb5   : > { %590 = vst.msk [vmem:[#allocation2 + $0x30] sm:$0xff] %vm583_vm4, %v536_v62 }
  0xb7   : > { %695 = vrot.lane.b32.xlu1 %v2687_v20, %s2558_s9 }
  0xb8   : > { %693 = vrot.lane.b32.xlu0 %v2659_v9, %s2558_s9 }
  0xb9   : > { %v430_v63 = vpop.permute.xlu1 %429 }
  0xba   : > { %471 = vst.msk [vmem:[#allocation2 + $0x98] sm:$0xff] %vm451_vm3, %v430_v63  ;;  %v428_v43 = vpop.permute.xlu0 %427  ;;  %697 = vrot.lane.b32.xlu2 %v2682_v19, %s2558_s9 }
  0xbb   : > { %470 = vst.msk [vmem:[#allocation2 + $0x90] sm:$0xff] %vm451_vm3, %v428_v43  ;;  %vm1409_vm3 = vcmask 64512  }
  0xbc   : > { %v542_v17 = vpop.permute.xlu2 %541 }
  0xbd   : > { %593 = vst.msk [vmem:[#allocation2 + $0x48] sm:$0xff] %vm583_vm4, %v542_v17  ;;  %v3129_v17 = vld [vmem:[%s2637_s30 + $0x100] sm:$0x3] }
  0xbf   : > { %701 = vrot.lane.b32.xlu1 %v2722_v34, %s2558_s9 }
  0xc0   : > { %699 = vrot.lane.b32.xlu0 %v2706_v28, %s2558_s9 }
  0xc1   : > { %v528_v20 = vpop.permute.xlu1 %527 }
  0xc2   : > { %586 = vst.msk [vmem:[#allocation2 + $0x10] sm:$0xff] %vm583_vm4, %v528_v20  ;;  %v526_v9 = vpop.permute.xlu0 %525  ;;  %703 = vrot.lane.b32.xlu2 %v2718_v32, %s2558_s9 }
  0xc3   : > { %585 = vst.msk [vmem:[#allocation2 + $0x8] sm:$0xff] %vm583_vm4, %v526_v9  ;;  %v689_v9 = vrot.slane %v3077_v5, 1 }
  0xc4   : > { %v548_v18 = vpop.permute.xlu2 %547 }
  0xc5   : > { %596 = vst.msk [vmem:[#allocation2 + $0x60] sm:$0xff] %vm583_vm4, %v548_v18  ;;  %v691_v18 = vrot.slane %v3129_v17, 1 }
  0xc7   : > { %707 = vrot.lane.b32.xlu1 %v2754_v46, %s2558_s9 }
  0xc8   : > { %705 = vrot.lane.b32.xlu0 %v2741_v41, %s2558_s9 }
  0xc9   : > { %v534_v40 = vpop.permute.xlu1 %533 }
  0xca   : > { %589 = vst.msk [vmem:[#allocation2 + $0x28] sm:$0xff] %vm583_vm4, %v534_v40  ;;  %v532_v2 = vpop.permute.xlu0 %531  ;;  %709 = vrot.lane.b32.xlu2 %v2750_v44, %s2558_s9 }
  0xcb   : > { %588 = vst.msk [vmem:[#allocation2 + $0x20] sm:$0xff] %vm583_vm4, %v532_v2  ;;  %v688_v2 = vrot.slane %v3069_v0, 1 }
  0xcc   : > { %v554_v1 = vpop.permute.xlu2 %553 }
  0xcd   : > { %599 = vst.msk [vmem:[#allocation2 + $0x78] sm:$0xff] %vm583_vm4, %v554_v1 }
  0xcf   : > { %713 = vrot.lane.b32.xlu1 %v2788_v58, %s2558_s9 }
  0xd0   : > { %711 = vrot.lane.b32.xlu0 %v2772_v52, %s2558_s9 }
  0xd1   : > { %v540_v45 = vpop.permute.xlu1 %539 }
  0xd2   : > { %592 = vst.msk [vmem:[#allocation2 + $0x40] sm:$0xff] %vm583_vm4, %v540_v45  ;;  %v538_v51 = vpop.permute.xlu0 %537  ;;  %715 = vrot.lane.b32.xlu2 %v2784_v56, %s2558_s9  ;;  %v3144_v45 = vsel %vm340_vm0, %v689_v9, %v691_v18 }
  0xd3   : > { %591 = vst.msk [vmem:[#allocation2 + $0x38] sm:$0xff] %vm583_vm4, %v538_v51  ;;  %v3147_v51 = vsel %vm340_vm0, %v688_v2, %v689_v9 }
  0xd4   : > { %v560_v62 = vpop.permute.xlu2 %559 }
  0xd5   : > { %602 = vst.msk [vmem:[#allocation2 + $0x90] sm:$0xff] %vm583_vm4, %v560_v62 }
  0xd7   : > { %719 = vrot.lane.b32.xlu1 %v2820_v15, %s2558_s9 }
  0xd8   : > { %717 = vrot.lane.b32.xlu0 %v2807_v4, %s2558_s9 }
  0xd9   : > { %v546_v63 = vpop.permute.xlu1 %545 }
  0xda   : > { %595 = vst.msk [vmem:[#allocation2 + $0x58] sm:$0xff] %vm583_vm4, %v546_v63  ;;  %v544_v43 = vpop.permute.xlu0 %543  ;;  %721 = vrot.lane.b32.xlu2 %v2816_v12, %s2558_s9 }
  0xdb   : > { %594 = vst.msk [vmem:[#allocation2 + $0x50] sm:$0xff] %vm583_vm4, %v544_v43 }
  0xdc   : > { %v609_v20 = vpop.permute.xlu2 %608 }
  0xdd   : > { %668 = vst.msk [vmem:[#allocation2 + $0x8] sm:$0xff] %vm666_vm5, %v609_v20 }
  0xdf   : > { %725 = vrot.lane.b32.xlu1 %v2848_v39, %s2558_s9 }
  0xe0   : > { %723 = vrot.lane.b32.xlu0 %v2838_v27, %s2558_s9 }
  0xe1   : > { %v552_v40 = vpop.permute.xlu1 %551 }
  0xe2   : > { %598 = vst.msk [vmem:[#allocation2 + $0x70] sm:$0xff] %vm583_vm4, %v552_v40  ;;  %v550_v1 = vpop.permute.xlu0 %549  ;;  %727 = vrot.lane.b32.xlu2 %v2844_v33, %s2558_s9 }
  0xe3   : > { %597 = vst.msk [vmem:[#allocation2 + $0x68] sm:$0xff] %vm583_vm4, %v550_v1 }
  0xe4   : > { %v615_v62 = vpop.permute.xlu2 %614 }
  0xe5   : > { %671 = vst.msk [vmem:[#allocation2 + $0x20] sm:$0xff] %vm666_vm5, %v615_v62 }
  0xe7   : > { %731 = vrot.lane.b32.xlu1 %v3144_v45, %s2558_s9 }
  0xe8   : > { %729 = vrot.lane.b32.xlu0 %v3147_v51, %s2558_s9 }
  0xe9   : > { %v558_v63 = vpop.permute.xlu1 %557 }
  0xea   : > { %601 = vst.msk [vmem:[#allocation2 + $0x88] sm:$0xff] %vm583_vm4, %v558_v63  ;;  %v556_v43 = vpop.permute.xlu0 %555  ;;  %779 = vrot.lane.b32.xlu2 %v2861_v53, %s2559_s10 }
  0xeb   : > { %600 = vst.msk [vmem:[#allocation2 + $0x80] sm:$0xff] %vm583_vm4, %v556_v43 }
  0xec   : > { %v621_v20 = vpop.permute.xlu2 %620 }
  0xed   : > { %674 = vst.msk [vmem:[#allocation2 + $0x38] sm:$0xff] %vm666_vm5, %v621_v20 }
  0xef   : > { %783 = vrot.lane.b32.xlu1 %v2881_v22, %s2559_s10 }
  0xf0   : > { %781 = vrot.lane.b32.xlu0 %v2871_v10, %s2559_s10 }
  0xf1   : > { %v607_v9 = vpop.permute.xlu1 %606 }
  0xf2   : > { %667 = vst.msk [vmem:[#allocation2] sm:$0xff] %vm666_vm5, %v607_v9  ;;  %v562_v18 = vpop.permute.xlu0 %561  ;;  %785 = vrot.lane.b32.xlu2 %v2877_v8, %s2559_s10 }
  0xf3   : > { %603 = vst.msk [vmem:[#allocation2 + $0x98] sm:$0xff] %vm583_vm4, %v562_v18 }
  0xf4   : > { %v627_v40 = vpop.permute.xlu2 %626 }
  0xf5   : > { %677 = vst.msk [vmem:[#allocation2 + $0x50] sm:$0xff] %vm666_vm5, %v627_v40 }
  0xf7   : > { %789 = vrot.lane.b32.xlu1 %v2901_v50, %s2559_s10 }
  0xf8   : > { %787 = vrot.lane.b32.xlu0 %v2891_v38, %s2559_s10 }
  0xf9   : > { %v613_v53 = vpop.permute.xlu1 %612 }
  0xfa   : > { %670 = vst.msk [vmem:[#allocation2 + $0x18] sm:$0xff] %vm666_vm5, %v613_v53  ;;  %v611_v10 = vpop.permute.xlu0 %610  ;;  %791 = vrot.lane.b32.xlu2 %v2897_v42, %s2559_s10  ;;  %v774_v53 = vrot.slane %v3069_v0, 2 }
  0xfb   : > { %669 = vst.msk [vmem:[#allocation2 + $0x10] sm:$0xff] %vm666_vm5, %v611_v10 }
  0xfc   : > { %v633_v2 = vpop.permute.xlu2 %632 }
  0xfd   : > { %680 = vst.msk [vmem:[#allocation2 + $0x68] sm:$0xff] %vm666_vm5, %v633_v2  ;;  %v775_v2 = vrot.slane %v3077_v5, 2 }
  0xff   : > { %795 = vrot.lane.b32.xlu1 %v2920_v3, %s2559_s10 }
 0x100   : > { %793 = vrot.lane.b32.xlu0 %v2910_v57, %s2559_s10 }
 0x101   : > { %v619_v1 = vpop.permute.xlu1 %618 }
 0x102   : > { %673 = vst.msk [vmem:[#allocation2 + $0x30] sm:$0xff] %vm666_vm5, %v619_v1  ;;  %v617_v62 = vpop.permute.xlu0 %616  ;;  %797 = vrot.lane.b32.xlu2 %v2916_v37, %s2559_s10  ;;  %v3211_v1 = vsel %vm472_vm1, %v774_v53, %v775_v2 }
 0x103   : > { %672 = vst.msk [vmem:[#allocation2 + $0x28] sm:$0xff] %vm666_vm5, %v617_v62 }
 0x104   : > { %v639_v63 = vpop.permute.xlu2 %638 }
 0x105   : > { %683 = vst.msk [vmem:[#allocation2 + $0x80] sm:$0xff] %vm666_vm5, %v639_v63  ;;  %v777_v63 = vrot.slane %v3129_v17, 2 }
 0x107   : > { %801 = vrot.lane.b32.xlu1 %v2948_v48, %s2559_s10 }
 0x108   : > { %799 = vrot.lane.b32.xlu0 %v2930_v26, %s2559_s10 }
 0x109   : > { %v625_v43 = vpop.permute.xlu1 %624 }
 0x10a   : > { %676 = vst.msk [vmem:[#allocation2 + $0x48] sm:$0xff] %vm666_vm5, %v625_v43  ;;  %v623_v20 = vpop.permute.xlu0 %622  ;;  %803 = vrot.lane.b32.xlu2 %v2942_v29, %s2559_s10 }
 0x10b   : > { %675 = vst.msk [vmem:[#allocation2 + $0x40] sm:$0xff] %vm666_vm5, %v623_v20  ;;  %v3219_v20 = vsel %vm472_vm1, %v775_v2, %v777_v63 }
 0x10c   : > { %v645_v9 = vpop.permute.xlu2 %644 }
 0x10d   : > { %686 = vst.msk [vmem:[#allocation2 + $0x98] sm:$0xff] %vm666_vm5, %v645_v9 }
 0x10f   : > { %807 = vrot.lane.b32.xlu1 %v2983_v24, %s2559_s10 }
 0x110   : > { %805 = vrot.lane.b32.xlu0 %v2963_v61, %s2559_s10 }
 0x111   : > { %v631_v18 = vpop.permute.xlu1 %630 }
 0x112   : > { %679 = vst.msk [vmem:[#allocation2 + $0x60] sm:$0xff] %vm666_vm5, %v631_v18  ;;  %v629_v40 = vpop.permute.xlu0 %628  ;;  %809 = vrot.lane.b32.xlu2 %v2977_v7, %s2559_s10 }
 0x113   : > { %678 = vst.msk [vmem:[#allocation2 + $0x58] sm:$0xff] %vm666_vm5, %v629_v40 }
 0x114   : > { %v698_v10 = vpop.permute.xlu2 %697 }
 0x115   : > { %756 = vst.msk [vmem:[#allocation2 + $0x10] sm:$0xff] %vm753_vm6, %v698_v10 }
 0x117   : > { %813 = vrot.lane.b32.xlu1 %v3012_v14, %s2559_s10 }
 0x118   : > { %811 = vrot.lane.b32.xlu0 %v2998_v6, %s2559_s10 }
 0x119   : > { %v637_v62 = vpop.permute.xlu1 %636 }
 0x11a   : > { %682 = vst.msk [vmem:[#allocation2 + $0x78] sm:$0xff] %vm666_vm5, %v637_v62  ;;  %v635_v43 = vpop.permute.xlu0 %634  ;;  %815 = vrot.lane.b32.xlu2 %v3211_v1, %s2559_s10 }
 0x11b   : > { %681 = vst.msk [vmem:[#allocation2 + $0x70] sm:$0xff] %vm666_vm5, %v635_v43 }
 0x11c   : > { %v704_v9 = vpop.permute.xlu2 %703 }
 0x11d   : > { %759 = vst.msk [vmem:[#allocation2 + $0x28] sm:$0xff] %vm753_vm6, %v704_v9  ;;  %v1138_v9 = vld [vmem:[%s4364_s1 + $0x10] sm:$0xff] }
 0x11f   : > { %862 = vrot.lane.b32.xlu1 %v2665_v11, %s2560_s11 }
 0x120   : > { %817 = vrot.lane.b32.xlu0 %v3219_v20, %s2559_s10 }
 0x121   : > { %v643_v17 = vpop.permute.xlu1 %642 }
 0x122   : > { %685 = vst.msk [vmem:[#allocation2 + $0x90] sm:$0xff] %vm666_vm5, %v643_v17  ;;  %v641_v18 = vpop.permute.xlu0 %640  ;;  %864 = vrot.lane.b32.xlu2 %v2671_v13, %s2560_s11  ;;  %v1136_v17 = vld [vmem:[%s4364_s1] sm:$0xff] }
 0x123   : > { %684 = vst.msk [vmem:[#allocation2 + $0x88] sm:$0xff] %vm666_vm5, %v641_v18 }
 0x124   : > { %v710_v40 = vpop.permute.xlu2 %709 }
 0x125   : > { %762 = vst.msk [vmem:[#allocation2 + $0x40] sm:$0xff] %vm753_vm6, %v710_v40 }
 0x127   : > { %868 = vrot.lane.b32.xlu1 %v2692_v23, %s2560_s11 }
 0x128   : > { %866 = vrot.lane.b32.xlu0 %v2698_v25, %s2560_s11 }
 0x129   : > { %v696_v11 = vpop.permute.xlu1 %695 }
 0x12a   : > { %755 = vst.msk [vmem:[#allocation2 + $0x8] sm:$0xff] %vm753_vm6, %v696_v11  ;;  %v694_v53 = vpop.permute.xlu0 %693  ;;  %870 = vrot.lane.b32.xlu2 %v2710_v30, %s2560_s11 }
 0x12b   : > { %754 = vst.msk [vmem:[#allocation2] sm:$0xff] %vm753_vm6, %v694_v53 }
 0x12c   : > { %v716_v10 = vpop.permute.xlu2 %715 }
 0x12d   : > { %765 = vst.msk [vmem:[#allocation2 + $0x58] sm:$0xff] %vm753_vm6, %v716_v10 }
 0x12f   : > { %874 = vrot.lane.b32.xlu1 %v2725_v35, %s2560_s11 }
 0x130   : > { %872 = vrot.lane.b32.xlu0 %v2713_v31, %s2560_s11 }
 0x131   : > { %v702_v13 = vpop.permute.xlu1 %701 }
 0x132   : > { %758 = vst.msk [vmem:[#allocation2 + $0x20] sm:$0xff] %vm753_vm6, %v702_v13  ;;  %v700_v23 = vpop.permute.xlu0 %699  ;;  %876 = vrot.lane.b32.xlu2 %v2728_v36, %s2560_s11 }
 0x133   : > { %757 = vst.msk [vmem:[#allocation2 + $0x18] sm:$0xff] %vm753_vm6, %v700_v23 }
 0x134   : > { %v722_v25 = vpop.permute.xlu2 %721 }
 0x135   : > { %768 = vst.msk [vmem:[#allocation2 + $0x70] sm:$0xff] %vm753_vm6, %v722_v25 }
 0x137   : > { %880 = vrot.lane.b32.xlu1 %v2757_v47, %s2560_s11 }
 0x138   : > { %878 = vrot.lane.b32.xlu0 %v2763_v49, %s2560_s11 }
 0x139   : > { %v708_v30 = vpop.permute.xlu1 %707 }
 0x13a   : > { %761 = vst.msk [vmem:[#allocation2 + $0x38] sm:$0xff] %vm753_vm6, %v708_v30  ;;  %v706_v31 = vpop.permute.xlu0 %705  ;;  %882 = vrot.lane.b32.xlu2 %v2776_v54, %s2560_s11 }
 0x13b   : > { %760 = vst.msk [vmem:[#allocation2 + $0x30] sm:$0xff] %vm753_vm6, %v706_v31 }
 0x13c   : > { %v728_v35 = vpop.permute.xlu2 %727 }
 0x13d   : > { %771 = vst.msk [vmem:[#allocation2 + $0x88] sm:$0xff] %vm753_vm6, %v728_v35 }
 0x13f   : > { %886 = vrot.lane.b32.xlu1 %v2791_v59, %s2560_s11  ;;  %v3276_v59 = vld [vmem:[%s2637_s30 + $0x108] sm:$0xff] }
 0x140   : > { %884 = vrot.lane.b32.xlu0 %v2779_v55, %s2560_s11 }
 0x141   : > { %v714_v36 = vpop.permute.xlu1 %713 }
 0x142   : > { %764 = vst.msk [vmem:[#allocation2 + $0x50] sm:$0xff] %vm753_vm6, %v714_v36  ;;  %v712_v47 = vpop.permute.xlu0 %711  ;;  %888 = vrot.lane.b32.xlu2 %v2794_v60, %s2560_s11 }
 0x143   : > { %763 = vst.msk [vmem:[#allocation2 + $0x48] sm:$0xff] %vm753_vm6, %v712_v47 }
 0x144   : > { %v780_v49 = vpop.permute.xlu2 %779 }
 0x145   : > { %840 = vst.msk [vmem:[#allocation2] sm:$0xff] %vm839_vm7, %v780_v49 }
 0x147   : > { %892 = vrot.lane.b32.xlu1 %v2823_v16, %s2560_s11  ;;  %v3284_v16 = vld [vmem:[%s2637_s30 + $0x110] sm:$0xff] }
 0x148   : > { %890 = vrot.lane.b32.xlu0 %v2829_v21, %s2560_s11 }
 0x149   : > { %v720_v54 = vpop.permute.xlu1 %719 }
 0x14a   : > { %767 = vst.msk [vmem:[#allocation2 + $0x68] sm:$0xff] %vm753_vm6, %v720_v54  ;;  %v718_v55 = vpop.permute.xlu0 %717  ;;  %894 = vrot.lane.b32.xlu2 %v3069_v0, %s2560_s11 }
 0x14b   : > { %766 = vst.msk [vmem:[#allocation2 + $0x60] sm:$0xff] %vm753_vm6, %v718_v55 }
 0x14c   : > { %v786_v60 = vpop.permute.xlu2 %785 }
 0x14d   : > { %843 = vst.msk [vmem:[#allocation2 + $0x18] sm:$0xff] %vm839_vm7, %v786_v60 }
 0x14f   : > { %898 = vrot.lane.b32.xlu1 %v3276_v59, %s2560_s11 }
 0x150   : > { %896 = vrot.lane.b32.xlu0 %v3077_v5, %s2560_s11 }
 0x151   : > { %v726_v21 = vpop.permute.xlu1 %725 }
 0x152   : > { %770 = vst.msk [vmem:[#allocation2 + $0x80] sm:$0xff] %vm753_vm6, %v726_v21  ;;  %v724_v2 = vpop.permute.xlu0 %723  ;;  %900 = vrot.lane.b32.xlu2 %v3284_v16, %s2560_s11 }
 0x153   : > { %769 = vst.msk [vmem:[#allocation2 + $0x78] sm:$0xff] %vm753_vm6, %v724_v2 }
 0x154   : > { %v792_v0 = vpop.permute.xlu2 %791 }
 0x155   : > { %846 = vst.msk [vmem:[#allocation2 + $0x30] sm:$0xff] %vm839_vm7, %v792_v0 }
 0x157   : > { %951 = vrot.lane.b32.xlu1 %v2706_v28, %s2561_s12 }
 0x158   : > { %949 = vrot.lane.b32.xlu0 %v2682_v19, %s2561_s12 }
 0x159   : > { %v732_v5 = vpop.permute.xlu1 %731 }
 0x15a   : > { %773 = vst.msk [vmem:[#allocation2 + $0x98] sm:$0xff] %vm753_vm6, %v732_v5  ;;  %v730_v62 = vpop.permute.xlu0 %729  ;;  %953 = vrot.lane.b32.xlu2 %v2722_v34, %s2561_s12 }
 0x15b   : > { %772 = vst.msk [vmem:[#allocation2 + $0x90] sm:$0xff] %vm753_vm6, %v730_v62 }
 0x15c   : > { %v798_v63 = vpop.permute.xlu2 %797 }
 0x15d   : > { %849 = vst.msk [vmem:[#allocation2 + $0x48] sm:$0xff] %vm839_vm7, %v798_v63 }
 0x15f   : > { %957 = vrot.lane.b32.xlu1 %v2741_v41, %s2561_s12 }
 0x160   : > { %955 = vrot.lane.b32.xlu0 %v2718_v32, %s2561_s12 }
 0x161   : > { %v784_v28 = vpop.permute.xlu1 %783 }
 0x162   : > { %842 = vst.msk [vmem:[#allocation2 + $0x10] sm:$0xff] %vm839_vm7, %v784_v28  ;;  %v782_v19 = vpop.permute.xlu0 %781  ;;  %1035 = vrot.lane.b32.xlu2 %v2881_v22, %s2562_s13 }
 0x163   : > { %841 = vst.msk [vmem:[#allocation2 + $0x8] sm:$0xff] %vm839_vm7, %v782_v19 }
 0x164   : > { %v804_v34 = vpop.permute.xlu2 %803 }
 0x165   : > { %852 = vst.msk [vmem:[#allocation2 + $0x60] sm:$0xff] %vm839_vm7, %v804_v34 }
 0x167   : > { %1037 = vrot.lane.b32.xlu1 %v2877_v8, %s2562_s13 }
 0x168   : > { %959 = vrot.lane.b32.xlu0 %v2754_v46, %s2561_s12 }
 0x169   : > { %v790_v32 = vpop.permute.xlu1 %789 }
 0x16a   : > { %845 = vst.msk [vmem:[#allocation2 + $0x28] sm:$0xff] %vm839_vm7, %v790_v32  ;;  %v788_v41 = vpop.permute.xlu0 %787  ;;  %961 = vrot.lane.b32.xlu2 %v2750_v44, %s2561_s12 }
 0x16b   : > { %844 = vst.msk [vmem:[#allocation2 + $0x20] sm:$0xff] %vm839_vm7, %v788_v41 }
 0x16c   : > { %v810_v43 = vpop.permute.xlu2 %809 }
 0x16d   : > { %855 = vst.msk [vmem:[#allocation2 + $0x78] sm:$0xff] %vm839_vm7, %v810_v43 }
 0x16f   : > { %1039 = vrot.lane.b32.xlu1 %v2891_v38, %s2562_s13 }
 0x170   : > { %963 = vrot.lane.b32.xlu0 %v2772_v52, %s2561_s12 }
 0x171   : > { %v796_v8 = vpop.permute.xlu1 %795 }
 0x172   : > { %848 = vst.msk [vmem:[#allocation2 + $0x40] sm:$0xff] %vm839_vm7, %v796_v8  ;;  %v794_v46 = vpop.permute.xlu0 %793  ;;  %965 = vrot.lane.b32.xlu2 %v2788_v58, %s2561_s12 }
 0x173   : > { %847 = vst.msk [vmem:[#allocation2 + $0x38] sm:$0xff] %vm839_vm7, %v794_v46 }
 0x174   : > { %v816_v22 = vpop.permute.xlu2 %815 }
 0x175   : > { %858 = vst.msk [vmem:[#allocation2 + $0x90] sm:$0xff] %vm839_vm7, %v816_v22 }
 0x177   : > { %1041 = vrot.lane.b32.xlu1 %v2901_v50, %s2562_s13 }
 0x178   : > { %967 = vrot.lane.b32.xlu0 %v2784_v56, %s2561_s12 }
 0x179   : > { %v802_v44 = vpop.permute.xlu1 %801 }
 0x17a   : > { %851 = vst.msk [vmem:[#allocation2 + $0x58] sm:$0xff] %vm839_vm7, %v802_v44  ;;  %v800_v52 = vpop.permute.xlu0 %799  ;;  %1053 = vrot.lane.b32.xlu2 %v2948_v48, %s2562_s13 }
 0x17b   : > { %850 = vst.msk [vmem:[#allocation2 + $0x50] sm:$0xff] %vm839_vm7, %v800_v52 }
 0x17c   : > { %v865_v58 = vpop.permute.xlu2 %864 }
 0x17d   : > { %924 = vst.msk [vmem:[#allocation2 + $0x8] sm:$0xff] %vm922_vm8, %v865_v58 }
 0x17f   : > { %1043 = vrot.lane.b32.xlu1 %v2897_v42, %s2562_s13 }
 0x180   : > { %969 = vrot.lane.b32.xlu0 %v2807_v4, %s2561_s12 }
 0x181   : > { %v808_v56 = vpop.permute.xlu1 %807 }
 0x182   : > { %854 = vst.msk [vmem:[#allocation2 + $0x70] sm:$0xff] %vm839_vm7, %v808_v56  ;;  %v806_v38 = vpop.permute.xlu0 %805  ;;  %1055 = vrot.lane.b32.xlu2 %v2942_v29, %s2562_s13 }
 0x183   : > { %853 = vst.msk [vmem:[#allocation2 + $0x68] sm:$0xff] %vm839_vm7, %v806_v38 }
 0x184   : > { %v871_v50 = vpop.permute.xlu2 %870 }
 0x185   : > { %927 = vst.msk [vmem:[#allocation2 + $0x20] sm:$0xff] %vm922_vm8, %v871_v50 }
 0x187   : > { %1045 = vrot.lane.b32.xlu1 %v2910_v57, %s2562_s13 }
 0x188   : > { %971 = vrot.lane.b32.xlu0 %v2820_v15, %s2561_s12 }
 0x189   : > { %v814_v42 = vpop.permute.xlu1 %813 }
 0x18a   : > { %857 = vst.msk [vmem:[#allocation2 + $0x88] sm:$0xff] %vm839_vm7, %v814_v42  ;;  %v812_v4 = vpop.permute.xlu0 %811  ;;  %1057 = vrot.lane.b32.xlu2 %v2963_v61, %s2562_s13 }
 0x18b   : > { %856 = vst.msk [vmem:[#allocation2 + $0x80] sm:$0xff] %vm839_vm7, %v812_v4 }
 0x18c   : > { %v877_v48 = vpop.permute.xlu2 %876 }
 0x18d   : > { %930 = vst.msk [vmem:[#allocation2 + $0x38] sm:$0xff] %vm922_vm8, %v877_v48 }
 0x18f   : > { %1047 = vrot.lane.b32.xlu1 %v2920_v3, %s2562_s13 }
 0x190   : > { %973 = vrot.lane.b32.xlu0 %v2816_v12, %s2561_s12 }
 0x191   : > { %v863_v57 = vpop.permute.xlu1 %862 }
 0x192   : > { %923 = vst.msk [vmem:[#allocation2] sm:$0xff] %vm922_vm8, %v863_v57  ;;  %v818_v15 = vpop.permute.xlu0 %817  ;;  %1059 = vrot.lane.b32.xlu2 %v2983_v24, %s2562_s13 }
 0x193   : > { %859 = vst.msk [vmem:[#allocation2 + $0x98] sm:$0xff] %vm839_vm7, %v818_v15 }
 0x194   : > { %v883_v29 = vpop.permute.xlu2 %882 }
 0x195   : > { %933 = vst.msk [vmem:[#allocation2 + $0x50] sm:$0xff] %vm922_vm8, %v883_v29 }
 0x197   : > { %1049 = vrot.lane.b32.xlu1 %v2916_v37, %s2562_s13 }
 0x198   : > { %975 = vrot.lane.b32.xlu0 %v2838_v27, %s2561_s12 }
 0x199   : > { %v869_v3 = vpop.permute.xlu1 %868 }
 0x19a   : > { %926 = vst.msk [vmem:[#allocation2 + $0x18] sm:$0xff] %vm922_vm8, %v869_v3  ;;  %v867_v12 = vpop.permute.xlu0 %866  ;;  %1061 = vrot.lane.b32.xlu2 %v2977_v7, %s2562_s13  ;;  %v1140_v7 = vld [vmem:[%s4364_s1 + $0x20] sm:$0xf] }
 0x19b   : > { %925 = vst.msk [vmem:[#allocation2 + $0x10] sm:$0xff] %vm922_vm8, %v867_v12  ;;  %2405 = vmatpush.msk.msra.mxu0 %vm1206_vm9, %v1140_v7  ;;  %2445 = vmatpush.msk.msra.mxu2 %vm1206_vm9, %v1140_v7  ;;  %v945_v7 = vrot.slane %v3284_v16, 1 }
 0x19c   : > { %v889_v61 = vpop.permute.xlu2 %888 }
 0x19d   : > { %936 = vst.msk [vmem:[#allocation2 + $0x68] sm:$0xff] %vm922_vm8, %v889_v61 }
 0x19f   : > { %1051 = vrot.lane.b32.xlu1 %v2930_v26, %s2562_s13 }
 0x1a0   : > { %977 = vrot.lane.b32.xlu0 %v2848_v39, %s2561_s12 }
 0x1a1   : > { %v875_v37 = vpop.permute.xlu1 %874 }
 0x1a2   : > { %929 = vst.msk [vmem:[#allocation2 + $0x30] sm:$0xff] %vm922_vm8, %v875_v37  ;;  %v873_v27 = vpop.permute.xlu0 %872  ;;  %1063 = vrot.lane.b32.xlu2 %v2998_v6, %s2562_s13 }
 0x1a3   : > { %928 = vst.msk [vmem:[#allocation2 + $0x28] sm:$0xff] %vm922_vm8, %v873_v27 }
 0x1a4   : > { %v895_v24 = vpop.permute.xlu2 %894 }
 0x1a5   : > { %939 = vst.msk [vmem:[#allocation2 + $0x80] sm:$0xff] %vm922_vm8, %v895_v24 }
 0x1a7   : > { %1065 = vrot.lane.b32.xlu1 %v3012_v14, %s2562_s13 }
 0x1a8   : > { %979 = vrot.lane.b32.xlu0 %v2844_v33, %s2561_s12 }
 0x1a9   : > { %v881_v26 = vpop.permute.xlu1 %880 }
 0x1aa   : > { %932 = vst.msk [vmem:[#allocation2 + $0x48] sm:$0xff] %vm922_vm8, %v881_v26  ;;  %v879_v39 = vpop.permute.xlu0 %878  ;;  %981 = vrot.lane.b32.xlu2 %v3147_v51, %s2561_s12  ;;  %v1139_v51 = vld [vmem:[%s4364_s1 + $0x18] sm:$0xff]  ;;  %v2563_v26 = vmov 0.0  }
 0x1ab   : > { %931 = vst.msk [vmem:[#allocation2 + $0x40] sm:$0xff] %vm922_vm8, %v879_v39  ;;  %1222 = vmatpush.msra.mxu0 %v1139_v51  ;;  %2446 = vmatpush.msra.mxu2 %v1139_v51  ;;  %v1030_v39 = vrot.slane %v3276_v59, 2 }
 0x1ac   : > { %v901_v6 = vpop.permute.xlu2 %900  ;;  %1399 = vst.msk [vmem:[#allocation3 + $0x11] sm:$0x1] %vm1388_vm13, %v2563_v26 }
 0x1ad   : > { %942 = vst.msk [vmem:[#allocation2 + $0x98] sm:$0xff] %vm922_vm8, %v901_v6  ;;  %1223 = vmatpush.msra.mxu0 %v1138_v9  ;;  %2447 = vmatpush.msra.mxu2 %v1138_v9  ;;  %v1031_v6 = vrot.slane %v3284_v16, 2  ;;  %v944_v16 = vrot.slane %v3276_v59, 1 }
 0x1ae   : > { %1389 = vst.msk [vmem:[#allocation3] sm:$0x1] %vm1388_vm13, %v2563_v26 }
 0x1af   : > { %983 = vrot.lane.b32.xlu1 %v3144_v45, %s2561_s12  ;;  %1390 = vst.msk [vmem:[#allocation3 + $0x18] sm:$0x1] %vm1388_vm13, %v2563_v26  ;;  %v1032_v51 = vsel %vm472_vm1, %v1030_v39, %v1031_v6  ;;  %v946_v59 = vsel %vm340_vm0, %v944_v16, %v945_v7 }
 0x1b0   : > { %1067 = vrot.lane.b32.xlu0 %v3211_v1, %s2562_s13  ;;  %v1137_v1 = vld [vmem:[%s4364_s1 + $0x8] sm:$0xff]  ;;  %1391 = vst.msk [vmem:[#allocation3 + $0x30] sm:$0x1] %vm1388_vm13, %v2563_v26 }
 0x1b1   : > { %v887_v33 = vpop.permute.xlu1 %886  ;;  %1224 = vmatpush.msra.mxu0 %v1137_v1  ;;  %2448 = vmatpush.msra.mxu2 %v1137_v1  ;;  %1392 = vst.msk [vmem:[#allocation3 + $0x48] sm:$0x1] %vm1388_vm13, %v2563_v26 }
 0x1b2   : > { %935 = vst.msk [vmem:[#allocation2 + $0x60] sm:$0xff] %vm922_vm8, %v887_v33  ;;  %v885_v14 = vpop.permute.xlu0 %884  ;;  %1069 = vrot.lane.b32.xlu2 %v3219_v20, %s2562_s13  ;;  %v288_v33 = vld [vmem:[%s2637_s30 + $0x118] sm:$0x3]  ;;  %s2426_s30 = sadd.s32 4294967295, %s3479_s8  ;;  %s4402_s8 = smov (!%p242_p6, %s3479_s8), 15 }
 0x1b3   : > { %934 = vst.msk [vmem:[#allocation2 + $0x58] sm:$0xff] %vm922_vm8, %v885_v14  ;;  %1225 = vmatpush.msra.mxu0 %v1136_v17  ;;  %2449 = vmatpush.msra.mxu2 %v1136_v17  ;;  %v947_v14 = vrot.slane %v288_v33, 1 }
 0x1b4   : > { %v954_v45 = vpop.permute.xlu2 %953  ;;  %1393 = vst.msk [vmem:[#allocation3 + $0x60] sm:$0x1] %vm1388_vm13, %v2563_v26 }
 0x1b5   : > { %1012 = vst.msk [vmem:[#allocation2 + $0x10] sm:$0xff] %vm1009_vm10, %v954_v45  ;;  %v948_v9 = vsel %vm340_vm0, %v945_v7, %v947_v14  ;;  %v3493_v45 = vstv %s2426_s30 }
 0x1b6   : > { %1394 = vst.msk [vmem:[#allocation3 + $0x78] sm:$0x1] %vm1388_vm13, %v2563_v26  ;;  %vm1318_vm14 = vcmp.ge.s32.totalorder %v3493_v45, 0  ;;  %vm1328_vm15 = vcmp.lt.s32.totalorder %v3493_v45, 16 }
 0x1b7   : > { %1395 = vst.msk [vmem:[#allocation3 + $0x90] sm:$0x1] %vm1388_vm13, %v2563_v26  ;;  %1071 = vrot.lane.b32.xlu1 %v1032_v51, %s2562_s13  ;;  %vm3511_vm2 = vmand %vm1318_vm14, %vm1328_vm15 }
 0x1b8   : > { %1396 = vst.msk [vmem:[#allocation3 + $0xa8] sm:$0x1] %vm1388_vm13, %v2563_v26  ;;  %985 = vrot.lane.b32.xlu0 %v946_v59, %s2561_s12 }
 0x1b9   : > { %v893_v18 = vpop.permute.xlu1 %892  ;;  %1397 = vst.msk [vmem:[#allocation3 + $0xc0] sm:$0x1] %vm1388_vm13, %v2563_v26 }
 0x1ba   : > { %938 = vst.msk [vmem:[#allocation2 + $0x78] sm:$0xff] %vm922_vm8, %v893_v18  ;;  %v891_v20 = vpop.permute.xlu0 %890  ;;  %987 = vrot.lane.b32.xlu2 %v948_v9, %s2561_s12  ;;  %v3499_v18 = vld [vmem:[%s4365_s2] ss:$0 sm:$0xff]  ;;  %s2566_s12 = smov 56  }
 0x1bb   : > { %937 = vst.msk [vmem:[#allocation2 + $0x70] sm:$0xff] %vm922_vm8, %v891_v20 }
 0x1bc   : > { %v1036_v40 = vpop.permute.xlu2 %1035  ;;  %1398 = vst.msk [vmem:[#allocation3 + $0xd8] sm:$0x1] %vm1388_vm13, %v2563_v26 }
 0x1bd   : > { %1400 = vst.msk [vmem:[#allocation3 + $0x29] sm:$0x1] %vm1388_vm13, %v2563_v26 }
 0x1be   : > { %1401 = vst.msk [vmem:[#allocation3 + $0x41] sm:$0x1] %vm1388_vm13, %v2563_v26 }
 0x1bf   : > { %1402 = vst.msk [vmem:[#allocation3 + $0x59] sm:$0x1] %vm1388_vm13, %v2563_v26 }
 0x1c0   : > { %1403 = vst.msk [vmem:[#allocation3 + $0x71] sm:$0x1] %vm1388_vm13, %v2563_v26 }
 0x1c1   : > { %v899_v11 = vpop.permute.xlu1 %898  ;;  %1404 = vst.msk [vmem:[#allocation3 + $0x89] sm:$0x1] %vm1388_vm13, %v2563_v26 }
 0x1c2   : > { %941 = vst.msk [vmem:[#allocation2 + $0x90] sm:$0xff] %vm922_vm8, %v899_v11  ;;  %v897_v53 = vpop.permute.xlu0 %896 }
 0x1c3   : > { %940 = vst.msk [vmem:[#allocation2 + $0x88] sm:$0xff] %vm922_vm8, %v897_v53 }
 0x1c4   : > { %v962_v10 = vpop.permute.xlu2 %961  ;;  %1405 = vst.msk [vmem:[#allocation3 + $0xa1] sm:$0x1] %vm1388_vm13, %v2563_v26 }
 0x1c5   : > { %1016 = vst.msk [vmem:[#allocation2 + $0x30] sm:$0xff] %vm1009_vm10, %v962_v10 }
 0x1c6   : > { %1406 = vst.msk [vmem:[#allocation3 + $0xb9] sm:$0x1] %vm1388_vm13, %v2563_v26 }
 0x1c7   : > { %1407 = vst.msk [vmem:[#allocation3 + $0xd1] sm:$0x1] %vm1388_vm13, %v2563_v26 }
 0x1c8   : > { %1408 = vst.msk [vmem:[#allocation3 + $0xe9] sm:$0x1] %vm1388_vm13, %v2563_v26 }
 0x1c9   : > { %v952_v13 = vpop.permute.xlu1 %951 }
 0x1ca   : > { %1011 = vst.msk [vmem:[#allocation2 + $0x8] sm:$0xff] %vm1009_vm10, %v952_v13  ;;  %v950_v23 = vpop.permute.xlu0 %949  ;;  %v1033_v13 = vrot.slane %v288_v33, 2 }
 0x1cb   : > { %1010 = vst.msk [vmem:[#allocation2] sm:$0xff] %vm1009_vm10, %v950_v23 }
 0x1cc   : > { %1096 = vst.msk [vmem:[#allocation2] sm:$0xff] %vm1095_vm11, %v1036_v40  ;;  %v966_v25 = vpop.permute.xlu2 %965 }
 0x1cd   : > { %1018 = vst.msk [vmem:[#allocation2 + $0x40] sm:$0xff] %vm1009_vm10, %v966_v25  ;;  %v1034_v25 = vsel %vm472_vm1, %v1031_v6, %v1033_v13 }
 0x1ce   : > { %1073 = vrot.lane.b32.xlu0 %v1034_v25, %s2562_s13 }
 0x1d1   : > { %v958_v30 = vpop.permute.xlu1 %957 }
 0x1d2   : > { %1014 = vst.msk [vmem:[#allocation2 + $0x20] sm:$0xff] %vm1009_vm10, %v958_v30  ;;  %v956_v31 = vpop.permute.xlu0 %955 }
 0x1d3   : > { %1013 = vst.msk [vmem:[#allocation2 + $0x18] sm:$0xff] %vm1009_vm10, %v956_v31  ;;  %v1116_v35 = vld [vmem:[#allocation2] sm:$0xff] }
 0x1d4   : > { %2406 = vmatmul.msk.f32.vlgmr.msra.gmra.mxu0 %vm1145_vm12, %v1116_v35  ;;  %v1054_v49 = vpop.permute.xlu2 %1053 }
 0x1d9   : > { %v1038_v36 = vpop.permute.xlu1 %1037 }
 0x1da   : > { %1097 = vst.msk [vmem:[#allocation2 + $0x8] sm:$0xff] %vm1095_vm11, %v1038_v36  ;;  %v960_v47 = vpop.permute.xlu0 %959 }
 0x1db   : > { %1015 = vst.msk [vmem:[#allocation2 + $0x28] sm:$0xff] %vm1009_vm10, %v960_v47  ;;  %v1309_v47 = vadd.s32 1, %v3493_v45 }
 0x1dc   : > { %v1056_v0 = vpop.permute.xlu2 %1055 }
 0x1dd   : > { %vm1319_vm4 = vcmp.ge.s32.totalorder %v1309_v47, 0  ;;  %vm1329_vm5 = vcmp.lt.s32.totalorder %v1309_v47, 16 }
 0x1de   : > { %vm3529_vm6 = vmand %vm1319_vm4, %vm1329_vm5 }
 0x1e1   : > { %v1040_v54 = vpop.permute.xlu1 %1039  ;;  %v1117_v55 = vld [vmem:[#allocation2 + $0x8] sm:$0xff] }
 0x1e2   : > { %1098 = vst.msk [vmem:[#allocation2 + $0x10] sm:$0xff] %vm1095_vm11, %v1040_v54  ;;  %v964_v60 = vpop.permute.xlu0 %963  ;;  %2407 = vmatmul.msk.f32.gmra.mxu0 %vm1145_vm12, %v1117_v55 }
 0x1e3   : > { %1017 = vst.msk [vmem:[#allocation2 + $0x38] sm:$0xff] %vm1009_vm10, %v964_v60 }
 0x1e4   : > { %v1058_v34 = vpop.permute.xlu2 %1057 }
 0x1e9   : > { %v1042_v21 = vpop.permute.xlu1 %1041  ;;  %v1118_v2 = vld [vmem:[#allocation2 + $0x10] sm:$0xff] }
 0x1ea   : > { %1099 = vst.msk [vmem:[#allocation2 + $0x18] sm:$0xff] %vm1095_vm11, %v1042_v21  ;;  %v968_v5 = vpop.permute.xlu0 %967  ;;  %2408 = vmatmul.msk.f32.gmra.mxu0 %vm1145_vm12, %v1118_v2 }
 0x1eb   : > { %1019 = vst.msk [vmem:[#allocation2 + $0x48] sm:$0xff] %vm1009_vm10, %v968_v5 }
 0x1ec   : > { %1105 = vst.msk [vmem:[#allocation2 + $0x48] sm:$0xff] %vm1095_vm11, %v1054_v49  ;;  %v1060_v46 = vpop.permute.xlu2 %1059 }
 0x1f1   : > { %v1044_v62 = vpop.permute.xlu1 %1043  ;;  %v1119_v63 = vld [vmem:[#allocation2 + $0x18] sm:$0xff] }
 0x1f2   : > { %1100 = vst.msk [vmem:[#allocation2 + $0x20] sm:$0xff] %vm1095_vm11, %v1044_v62  ;;  %v970_v28 = vpop.permute.xlu0 %969  ;;  %2409 = vmatmul.msk.f32.gmra.mxu0 %vm1145_vm12, %v1119_v63 }
 0x1f3   : > { %1020 = vst.msk [vmem:[#allocation2 + $0x50] sm:$0xff] %vm1009_vm10, %v970_v28  ;;  %v1125_v19 = vld [vmem:[#allocation2 + $0x48] sm:$0xff] }
 0x1f4   : > { %1106 = vst.msk [vmem:[#allocation2 + $0x50] sm:$0xff] %vm1095_vm11, %v1056_v0  ;;  %2415 = vmatmul.msk.f32.vlgmr.msra.gmra.mxu2 %vm1145_vm12, %v1125_v19  ;;  %v1062_v56 = vpop.permute.xlu2 %1061 }
 0x1f9   : > { %v1046_v32 = vpop.permute.xlu1 %1045  ;;  %v1120_v41 = vld [vmem:[#allocation2 + $0x20] sm:$0xff] }
 0x1fa   : > { %1101 = vst.msk [vmem:[#allocation2 + $0x28] sm:$0xff] %vm1095_vm11, %v1046_v32  ;;  %v972_v43 = vpop.permute.xlu0 %971  ;;  %2410 = vmatmul.msk.f32.gmra.mxu0 %vm1145_vm12, %v1120_v41 }
 0x1fb   : > { %1021 = vst.msk [vmem:[#allocation2 + $0x58] sm:$0xff] %vm1009_vm10, %v972_v43  ;;  %v1126_v8 = vld [vmem:[#allocation2 + $0x50] sm:$0xff] }
 0x1fc   : > { %1107 = vst.msk [vmem:[#allocation2 + $0x58] sm:$0xff] %vm1095_vm11, %v1058_v34  ;;  %2416 = vmatmul.msk.f32.gmra.mxu2 %vm1145_vm12, %v1126_v8  ;;  %v1064_v57 = vpop.permute.xlu2 %1063 }
 0x201   : > { %v1048_v22 = vpop.permute.xlu1 %1047  ;;  %v1121_v44 = vld [vmem:[#allocation2 + $0x28] sm:$0xff] }
 0x202   : > { %1102 = vst.msk [vmem:[#allocation2 + $0x30] sm:$0xff] %vm1095_vm11, %v1048_v22  ;;  %v974_v52 = vpop.permute.xlu0 %973  ;;  %2411 = vmatmul.msk.f32.gmra.mxu0 %vm1145_vm12, %v1121_v44 }
 0x203   : > { %1022 = vst.msk [vmem:[#allocation2 + $0x60] sm:$0xff] %vm1009_vm10, %v974_v52  ;;  %v1127_v58 = vld [vmem:[#allocation2 + $0x58] sm:$0xff] }
 0x204   : > { %1108 = vst.msk [vmem:[#allocation2 + $0x60] sm:$0xff] %vm1095_vm11, %v1060_v46  ;;  %2417 = vmatmul.msk.f32.gmra.mxu2 %vm1145_vm12, %v1127_v58  ;;  %v982_v1 = vpop.permute.xlu2 %981 }
 0x205   : > { %1026 = vst.msk [vmem:[#allocation2 + $0x80] sm:$0xff] %vm1009_vm10, %v982_v1 }
 0x209   : > { %v1050_v38 = vpop.permute.xlu1 %1049  ;;  %v1122_v50 = vld [vmem:[#allocation2 + $0x30] sm:$0xff] }
 0x20a   : > { %1103 = vst.msk [vmem:[#allocation2 + $0x38] sm:$0xff] %vm1095_vm11, %v1050_v38  ;;  %v976_v42 = vpop.permute.xlu0 %975  ;;  %2412 = vmatmul.msk.f32.gmra.mxu0 %vm1145_vm12, %v1122_v50  ;;  %v1310_v50 = vadd.s32 2, %v3493_v45 }
 0x20b   : > { %1023 = vst.msk [vmem:[#allocation2 + $0x68] sm:$0xff] %vm1009_vm10, %v976_v42  ;;  %v1128_v4 = vld [vmem:[#allocation2 + $0x60] sm:$0xff] }
 0x20c   : > { %1109 = vst.msk [vmem:[#allocation2 + $0x68] sm:$0xff] %vm1095_vm11, %v1062_v56  ;;  %2418 = vmatmul.msk.f32.gmra.mxu2 %vm1145_vm12, %v1128_v4  ;;  %v1070_v0 = vpop.permute.xlu2 %1069  ;;  %v1312_v56 = vadd.s32 4, %v3493_v45  ;;  %vm1320_vm9 = vcmp.ge.s32.totalorder %v1310_v50, 0  ;;  %vm1330_vm13 = vcmp.lt.s32.totalorder %v1310_v50, 16 }
 0x20d   : > { %vm3566_vm15 = vmand %vm1320_vm9, %vm1330_vm13 }
 0x20e   : > { %vm1322_vm7 = vcmp.ge.s32.totalorder %v1312_v56, 0  ;;  %vm1332_vm8 = vcmp.lt.s32.totalorder %v1312_v56, 16 }
 0x20f   : > { %vm3561_vm14 = vmand %vm1322_vm7, %vm1332_vm8 }
 0x211   : > { %v1052_v48 = vpop.permute.xlu1 %1051  ;;  %v1123_v15 = vld [vmem:[#allocation2 + $0x38] sm:$0xff] }
 0x212   : > { %1104 = vst.msk [vmem:[#allocation2 + $0x40] sm:$0xff] %vm1095_vm11, %v1052_v48  ;;  %v978_v29 = vpop.permute.xlu0 %977  ;;  %2413 = vmatmul.msk.f32.gmra.mxu0 %vm1145_vm12, %v1123_v15 }
 0x213   : > { %1024 = vst.msk [vmem:[#allocation2 + $0x70] sm:$0xff] %vm1009_vm10, %v978_v29  ;;  %v1129_v3 = vld [vmem:[#allocation2 + $0x68] sm:$0xff] }
 0x214   : > { %1110 = vst.msk [vmem:[#allocation2 + $0x70] sm:$0xff] %vm1095_vm11, %v1064_v57  ;;  %2419 = vmatmul.msk.f32.gmra.mxu2 %vm1145_vm12, %v1129_v3 }
 0x219   : > { %v1066_v12 = vpop.permute.xlu1 %1065  ;;  %v1124_v61 = vld [vmem:[#allocation2 + $0x40] sm:$0xff] }
 0x21a   : > { %v980_v37 = vpop.permute.xlu0 %979  ;;  %2414 = vmatmul.msk.f32.gmra.mxu0 %vm1145_vm12, %v1124_v61 }
 0x21b   : > { %1025 = vst.msk [vmem:[#allocation2 + $0x78] sm:$0xff] %vm1009_vm10, %v980_v37  ;;  %v1130_v27 = vld [vmem:[#allocation2 + $0x70] sm:$0xff] }
 0x21c   : > { %1111 = vst.msk [vmem:[#allocation2 + $0x78] sm:$0xff] %vm1095_vm11, %v1066_v12  ;;  %2420 = vmatmul.msk.f32.gmra.mxu2 %vm1145_vm12, %v1130_v27 }
 0x221   : > { %v984_v21 = vpop.permute.xlu1 %983 }
 0x222   : > { %v1068_v17 = vpop.permute.xlu0 %1067  ;;  %1027 = vst.msk [vmem:[#allocation2 + $0x88] sm:$0xff] %vm1009_vm10, %v984_v21 }
 0x223   : > { %v1131_v24 = vld [vmem:[#allocation2 + $0x78] sm:$0xff]  ;;  %1112 = vst.msk [vmem:[#allocation2 + $0x80] sm:$0xff] %vm1095_vm11, %v1068_v17 }
 0x224   : > { %2421 = vmatmul.msk.f32.gmra.mxu2 %vm1145_vm12, %v1131_v24  ;;  %1113 = vst.msk [vmem:[#allocation2 + $0x88] sm:$0xff] %vm1095_vm11, %v1070_v0  ;;  %v1313_v24 = vadd.s32 5, %v3493_v45 }
 0x226   : > { %vm1333_vm4 = vcmp.lt.s32.totalorder %v1313_v24, 16 }
 0x22a   : > { %v1132_v23 = vld [vmem:[#allocation2 + $0x80] sm:$0xff] }
 0x22b   : > { %v1133_v42 = vld [vmem:[#allocation2 + $0x88] sm:$0xff] }
 0x22c   : > { %2422 = vmatmul.msk.f32.gmra.mxu2 %vm1145_vm12, %v1132_v23 }
 0x234   : > { %2423 = vmatmul.msk.f32.gmra.mxu2 %vm1145_vm12, %v1133_v42 }
 0x251   : > { %v1227_v20 = vpop.f32.mrf.mxu0 }
 0x252   : > { %v1228_v40 = vadd.f32 %v3499_v18, %v1227_v20 }
 0x254   : > { %v1287_v53 = vmax.f32 %v1228_v40, 0.0 }
 0x256   : > { %v1368_v10 = vsel %vm3511_vm2, %v1287_v53, 0.0 }
 0x257   : > { %1410 = vst.msk [vmem:[#allocation3 + $0x1] sm:$0xff] %vm1409_vm3, %v1368_v10  ;;  %v1311_v10 = vadd.s32 3, %v3493_v45 }
 0x259   : > { %vm1331_vm7 = vcmp.lt.s32.totalorder %v1311_v10, 16 }
 0x25e   : > { %v1430_v30 = vld [vmem:[#allocation3] sm:$0xff] }
 0x25f   : > { %v1230_v31 = vpop.f32.mrf.mxu0  ;;  %1460 = vst.msk [vmem:[#allocation4] sm:$0xff] %vm1409_vm3, %v1430_v30  ;;  %v1500_v28 = vrot.slane %v1430_v30, 1  ;;  %v1605_v19 = vrot.slane %v1430_v30, 2 }
 0x260   : > { %v1231_v35 = vadd.f32 %v3499_v18, %v1230_v31 }
 0x262   : > { %v1288_v36 = vmax.f32 %v1231_v35, 0.0 }
 0x264   : > { %v1369_v49 = vsel %vm3511_vm2, %v1288_v36, 0.0  ;;  %vm1323_vm2 = vcmp.ge.s32.totalorder %v1313_v24, 0 }
 0x265   : > { %1411 = vst.msk [vmem:[#allocation3 + $0x9] sm:$0xff] %vm1409_vm3, %v1369_v49  ;;  %vm3598_vm5 = vmand %vm1323_vm2, %vm1333_vm4  ;;  %v1314_v49 = vadd.s32 6, %v3493_v45 }
 0x267   : > { %v1233_v54 = vpop.f32.mrf.mxu0  ;;  %vm1324_vm9 = vcmp.ge.s32.totalorder %v1314_v49, 0  ;;  %vm1334_vm13 = vcmp.lt.s32.totalorder %v1314_v49, 16 }
 0x268   : > { %v1234_v55 = vadd.f32 %v3499_v18, %v1233_v54 }
 0x26a   : > { %v1289_v2 = vmax.f32 %v1234_v55, 0.0 }
 0x26c   : > { %v1370_v5 = vsel %vm3529_vm6, %v1289_v2, 0.0  ;;  %v1431_v62 = vld [vmem:[#allocation3 + $0x8] sm:$0xff]  ;;  %v1432_v63 = vld [vmem:[#allocation3 + $0x10] sm:$0x3] }
 0x26d   : > { %1412 = vst.msk [vmem:[#allocation3 + $0x19] sm:$0xff] %vm1409_vm3, %v1370_v5  ;;  %v1501_v34 = vrot.slane %v1431_v62, 1  ;;  %v1503_v32 = vrot.slane %v1432_v63, 1  ;;  %v1606_v41 = vrot.slane %v1431_v62, 2  ;;  %v1608_v43 = vrot.slane %v1432_v63, 2 }
 0x26e   : > { %1461 = vst.msk [vmem:[#allocation4 + $0x8] sm:$0xff] %vm1409_vm3, %v1431_v62 }
 0x26f   : > { %v1236_v8 = vpop.f32.mrf.mxu0  ;;  %v1504_v46 = vsel %vm340_vm0, %v1501_v34, %v1503_v32  ;;  %v1502_v22 = vsel %vm340_vm0, %v1500_v28, %v1501_v34  ;;  %v3542_v44 = vsel %vm472_vm1, %v1605_v19, %v1606_v41  ;;  %v3545_v52 = vsel %vm472_vm1, %v1606_v41, %v1608_v43 }
 0x270   : > { %v1237_v58 = vadd.f32 %v3499_v18, %v1236_v8  ;;  %1542 = vrot.lane.b32.xlu2 %v1504_v46, %s2556_s7  ;;  %1540 = vrot.lane.b32.xlu1 %v1502_v22, %s2556_s7 }
 0x272   : > { %v1290_v38 = vmax.f32 %v1237_v58, 0.0 }
 0x274   : > { %v1371_v4 = vsel %vm3529_vm6, %v1290_v38, 0.0  ;;  %v3555_v48 = vld [vmem:[#allocation3 + $0x18] sm:$0xff]  ;;  %vm1321_vm6 = vcmp.ge.s32.totalorder %v1311_v10, 0  ;;  %v988_v10 = vpop.permute.xlu2 %987 }
 0x275   : > { %1413 = vst.msk [vmem:[#allocation3 + $0x21] sm:$0xff] %vm1409_vm3, %v1371_v4  ;;  %v1505_v33 = vrot.slane %v3555_v48, 1  ;;  %vm3615_vm8 = vmand %vm1321_vm6, %vm1331_vm7  ;;  %vm1760_vm7 = vcmask 261312  }
 0x276   : > { %1462 = vst.msk [vmem:[#allocation4 + $0x10] sm:$0xff] %vm1409_vm3, %v3555_v48 }
 0x277   : > { %v1254_v57 = vpop.f32.mrf.mxu2  ;;  %v1239_v15 = vpop.f32.mrf.mxu0  ;;  %1029 = vst.msk [vmem:[#allocation2 + $0x98] sm:$0xff] %vm1009_vm10, %v988_v10 }
 0x278   : > { %v1255_v29 = vadd.f32 %v3499_v18, %v1254_v57  ;;  %v1240_v12 = vadd.f32 %v3499_v18, %v1239_v15 }
 0x27a   : > { %v1296_v37 = vmax.f32 %v1255_v29, 0.0  ;;  %v1291_v27 = vmax.f32 %v1240_v12, 0.0  ;;  %v1315_v12 = vadd.s32 7, %v3493_v45 }
 0x27c   : > { %v1377_v26 = vsel %vm3561_vm14, %v1296_v37, 0.0  ;;  %v1372_v39 = vsel %vm3566_vm15, %v1291_v27, 0.0  ;;  %v3575_v7 = vld [vmem:[#allocation3 + $0x20] sm:$0xff]  ;;  %v3577_v6 = vld [vmem:[#allocation3 + $0x28] sm:$0x3]  ;;  %vm1325_vm2 = vcmp.ge.s32.totalorder %v1315_v12, 0 }
 0x27d   : > { %1419 = vst.msk [vmem:[#allocation3 + $0x69] sm:$0xff] %vm1409_vm3, %v1377_v26  ;;  %v1506_v14 = vrot.slane %v3575_v7, 1  ;;  %v1508_v51 = vrot.slane %v3577_v6, 1  ;;  %vm1335_vm4 = vcmp.lt.s32.totalorder %v1315_v12, 16 }
 0x27e   : > { %1414 = vst.msk [vmem:[#allocation3 + $0x31] sm:$0xff] %vm1409_vm3, %v1372_v39 }
 0x27f   : > { %v1257_v9 = vpop.f32.mrf.mxu2  ;;  %v1242_v16 = vpop.f32.mrf.mxu0  ;;  %v3585_v1 = vsel %vm340_vm0, %v1505_v33, %v1506_v14  ;;  %1463 = vst.msk [vmem:[#allocation4 + $0x18] sm:$0xff] %vm1409_vm3, %v3575_v7  ;;  %v3590_v17 = vsel %vm340_vm0, %v1506_v14, %v1508_v51 }
 0x280   : > { %v1258_v59 = vadd.f32 %v3499_v18, %v1257_v9  ;;  %v1243_v20 = vadd.f32 %v3499_v18, %v1242_v16  ;;  %1544 = vrot.lane.b32.xlu0 %v3585_v1, %s2556_s7  ;;  %1546 = vrot.lane.b32.xlu1 %v3590_v17, %s2556_s7 }
 0x282   : > { %v1297_v11 = vmax.f32 %v1258_v59, 0.0  ;;  %v1292_v53 = vmax.f32 %v1243_v20, 0.0 }
 0x284   : > { %v1378_v13 = vsel %vm3598_vm5, %v1297_v11, 0.0  ;;  %v1373_v23 = vsel %vm3566_vm15, %v1292_v53, 0.0  ;;  %vm3648_vm15 = vmand %vm1324_vm9, %vm1334_vm13  ;;  %v3708_v53 = vld [vmem:[#allocation3 + $0x70] sm:$0x3] }
 0x285   : > { %1420 = vst.msk [vmem:[#allocation3 + $0x79] sm:$0xff] %vm1409_vm3, %v1378_v13  ;;  %v3608_v25 = vld [vmem:[#allocation3 + $0x30] sm:$0xff] }
 0x286   : > { %1415 = vst.msk [vmem:[#allocation3 + $0x39] sm:$0xff] %vm1409_vm3, %v1373_v23  ;;  %v1510_v28 = vrot.slane %v3608_v25, 1 }
 0x287   : > { %v1260_v30 = vpop.f32.mrf.mxu2  ;;  %v1245_v31 = vpop.f32.mrf.mxu0  ;;  %1464 = vst.msk [vmem:[#allocation4 + $0x20] sm:$0xff] %vm1409_vm3, %v3608_v25 }
 0x288   : > { %v1261_v35 = vadd.f32 %v3499_v18, %v1260_v30  ;;  %v1246_v36 = vadd.f32 %v3499_v18, %v1245_v31 }
 0x28a   : > { %v1298_v54 = vmax.f32 %v1261_v35, 0.0  ;;  %v1293_v55 = vmax.f32 %v1246_v36, 0.0 }
 0x28c   : > { %v1379_v60 = vsel %vm3598_vm5, %v1298_v54, 0.0  ;;  %v1374_v21 = vsel %vm3615_vm8, %v1293_v55, 0.0  ;;  %v3629_v5 = vld [vmem:[#allocation3 + $0x78] sm:$0xff]  ;;  %v1523_v54 = vrot.slane %v3708_v53, 1  ;;  %vm1588_vm5 = vcmask 130112  }
 0x28d   : > { %1421 = vst.msk [vmem:[#allocation3 + $0x81] sm:$0xff] %vm1409_vm3, %v1379_v60  ;;  %v3625_v2 = vld [vmem:[#allocation3 + $0x38] sm:$0xff]  ;;  %v3627_v0 = vld [vmem:[#allocation3 + $0x40] sm:$0x3]  ;;  %v1525_v49 = vrot.slane %v3629_v5, 1 }
 0x28e   : > { %1416 = vst.msk [vmem:[#allocation3 + $0x49] sm:$0xff] %vm1409_vm3, %v1374_v21  ;;  %v1511_v62 = vrot.slane %v3625_v2, 1  ;;  %v1513_v63 = vrot.slane %v3627_v0, 1  ;;  %v1618_v10 = vrot.slane %v3627_v0, 2 }
 0x28f   : > { %v1263_v19 = vpop.f32.mrf.mxu2  ;;  %v1248_v34 = vpop.f32.mrf.mxu0  ;;  %1465 = vst.msk [vmem:[#allocation4 + $0x28] sm:$0xff] %vm1409_vm3, %v3625_v2 }
 0x290   : > { %v1264_v32 = vadd.f32 %v3499_v18, %v1263_v19  ;;  %v1249_v41 = vadd.f32 %v3499_v18, %v1248_v34  ;;  %v3640_v43 = vsel %vm340_vm0, %v1511_v62, %v1513_v63  ;;  %v3643_v8 = vsel %vm340_vm0, %v1510_v28, %v1511_v62  ;;  %1470 = vst.msk [vmem:[#allocation4 + $0x50] sm:$0xff] %vm1409_vm3, %v3629_v5 }
 0x291   : > { %1550 = vrot.lane.b32.xlu0 %v3640_v43, %s2556_s7  ;;  %1548 = vrot.lane.b32.xlu2 %v3643_v8, %s2556_s7 }
 0x292   : > { %v1299_v22 = vmax.f32 %v1264_v32, 0.0  ;;  %v1294_v58 = vmax.f32 %v1249_v41, 0.0 }
 0x294   : > { %v1380_v56 = vsel %vm3648_vm15, %v1299_v22, 0.0  ;;  %v1375_v38 = vsel %vm3615_vm8, %v1294_v58, 0.0  ;;  %v3663_v42 = vld [vmem:[#allocation3 + $0x80] sm:$0xff]  ;;  %v3745_v28 = vld [vmem:[#allocation3 + $0x88] sm:$0x3] }
 0x295   : > { %1422 = vst.msk [vmem:[#allocation3 + $0x91] sm:$0xff] %vm1409_vm3, %v1380_v56  ;;  %v3661_v50 = vld [vmem:[#allocation3 + $0x48] sm:$0xff]  ;;  %v1526_v23 = vrot.slane %v3663_v42, 1  ;;  %v1528_v41 = vrot.slane %v3745_v28, 1 }
 0x296   : > { %1417 = vst.msk [vmem:[#allocation3 + $0x51] sm:$0xff] %vm1409_vm3, %v1375_v38  ;;  %v1515_v9 = vrot.slane %v3661_v50, 1 }
 0x297   : > { %v1266_v4 = vpop.f32.mrf.mxu2  ;;  %v1251_v57 = vpop.f32.mrf.mxu0  ;;  %1466 = vst.msk [vmem:[#allocation4 + $0x30] sm:$0xff] %vm1409_vm3, %v3661_v50  ;;  %v3734_v62 = vsel %vm340_vm0, %v1525_v49, %v1526_v23  ;;  %v3763_v38 = vsel %vm340_vm0, %v1526_v23, %v1528_v41 }
 0x298   : > { %v1267_v15 = vadd.f32 %v3499_v18, %v1266_v4  ;;  %v1252_v29 = vadd.f32 %v3499_v18, %v1251_v57  ;;  %1471 = vst.msk [vmem:[#allocation4 + $0x58] sm:$0xff] %vm1409_vm3, %v3663_v42 }
 0x29a   : > { %v1300_v61 = vmax.f32 %v1267_v15, 0.0  ;;  %v1295_v37 = vmax.f32 %v1252_v29, 0.0 }
 0x29c   : > { %v1381_v27 = vsel %vm3648_vm15, %v1300_v61, 0.0  ;;  %v1376_v24 = vsel %vm3561_vm14, %v1295_v37, 0.0  ;;  %v3682_v33 = vld [vmem:[#allocation3 + $0x90] sm:$0xff]  ;;  %vm3700_vm14 = vmand %vm1325_vm2, %vm1335_vm4  ;;  %vm1831_vm15 = vcmask 326912   ;;  %vm1901_vm2 = vcmask 392512  }
 0x29d   : > { %1423 = vst.msk [vmem:[#allocation3 + $0x99] sm:$0xff] %vm1409_vm3, %v1381_v27  ;;  %v3678_v26 = vld [vmem:[#allocation3 + $0x50] sm:$0xff]  ;;  %v3680_v39 = vld [vmem:[#allocation3 + $0x58] sm:$0x3]  ;;  %v1530_v56 = vrot.slane %v3682_v33, 1  ;;  %vm1968_vm4 = vcmask 458112  }
 0x29e   : > { %1418 = vst.msk [vmem:[#allocation3 + $0x61] sm:$0xff] %vm1409_vm3, %v1376_v24  ;;  %v1516_v14 = vrot.slane %v3678_v26, 1  ;;  %v1518_v51 = vrot.slane %v3680_v39, 1  ;;  %v1621_v40 = vrot.slane %v3678_v26, 2 }
 0x29f   : > { %v1269_v3 = vpop.f32.mrf.mxu2  ;;  %1467 = vst.msk [vmem:[#allocation4 + $0x38] sm:$0xff] %vm1409_vm3, %v3678_v26 }
 0x2a0   : > { %v1270_v16 = vadd.f32 %v3499_v18, %v1269_v3  ;;  %v3692_v59 = vsel %vm340_vm0, %v1516_v14, %v1518_v51  ;;  %v3695_v20 = vsel %vm340_vm0, %v1515_v9, %v1516_v14  ;;  %1472 = vst.msk [vmem:[#allocation4 + $0x60] sm:$0xff] %vm1409_vm3, %v3682_v33  ;;  %v1611_v14 = vrot.slane %v3575_v7, 2 }
 0x2a1   : > { %1554 = vrot.lane.b32.xlu2 %v3692_v59, %s2556_s7  ;;  %1552 = vrot.lane.b32.xlu1 %v3695_v20, %s2556_s7  ;;  %v1613_v51 = vrot.slane %v3577_v6, 2  ;;  %v1610_v9 = vrot.slane %v3555_v48, 2  ;;  %v1616_v6 = vrot.slane %v3625_v2, 2 }
 0x2a2   : > { %v1301_v11 = vmax.f32 %v1270_v16, 0.0  ;;  %v986_v16 = vpop.permute.xlu0 %985 }
 0x2a3   : > { %v3802_v3 = vsel %vm472_vm1, %v1611_v14, %v1613_v51  ;;  %1028 = vst.msk [vmem:[#allocation2 + $0x90] sm:$0xff] %vm1009_vm10, %v986_v16  ;;  %v3831_v0 = vsel %vm472_vm1, %v1616_v6, %v1618_v10 }
 0x2a4   : > { %v1382_v13 = vsel %vm3700_vm14, %v1301_v11, 0.0  ;;  %v3719_v35 = vld [vmem:[#allocation3 + $0x98] sm:$0xff]  ;;  %v3747_v19 = vld [vmem:[#allocation3 + $0xa0] sm:$0x3]  ;;  %v1072_v11 = vpop.permute.xlu1 %1071 }
 0x2a5   : > { %1424 = vst.msk [vmem:[#allocation3 + $0xa9] sm:$0xff] %vm1409_vm3, %v1382_v13  ;;  %v3715_v30 = vld [vmem:[#allocation3 + $0x60] sm:$0xff]  ;;  %v3717_v31 = vld [vmem:[#allocation3 + $0x68] sm:$0xff]  ;;  %v1531_v46 = vrot.slane %v3719_v35, 1  ;;  %v1533_v22 = vrot.slane %v3747_v19, 1  ;;  %v1620_v13 = vrot.slane %v3661_v50, 2 }
 0x2a6   : > { %v1520_v36 = vrot.slane %v3715_v30, 1  ;;  %v1521_v47 = vrot.slane %v3717_v31, 1  ;;  %1468 = vst.msk [vmem:[#allocation4 + $0x40] sm:$0xff] %vm1409_vm3, %v3715_v30  ;;  %v1638_v51 = vrot.slane %v3747_v19, 2 }
 0x2a7   : > { %v1272_v55 = vpop.f32.mrf.mxu2  ;;  %1469 = vst.msk [vmem:[#allocation4 + $0x48] sm:$0xff] %vm1409_vm3, %v3717_v31  ;;  %v3766_v4 = vsel %vm340_vm0, %v1531_v46, %v1533_v22  ;;  %v3773_v57 = vsel %vm340_vm0, %v1530_v56, %v1531_v46  ;;  %v1636_v46 = vrot.slane %v3719_v35, 2  ;;  %v1633_v22 = vrot.slane %v3745_v28, 2 }
 0x2a8   : > { %v1273_v60 = vadd.f32 %v3499_v18, %v1272_v55  ;;  %v3731_v21 = vsel %vm340_vm0, %v1520_v36, %v1521_v47  ;;  %v3737_v63 = vsel %vm340_vm0, %v1521_v47, %v1523_v54  ;;  %1473 = vst.msk [vmem:[#allocation4 + $0x68] sm:$0xff] %vm1409_vm3, %v3719_v35  ;;  %v3824_v36 = vsel %vm472_vm1, %v1620_v13, %v1621_v40 }
 0x2a9   : > { %1556 = vrot.lane.b32.xlu0 %v3731_v21, %s2556_s7  ;;  %1560 = vrot.lane.b32.xlu2 %v3734_v62, %s2556_s7  ;;  %1114 = vst.msk [vmem:[#allocation2 + $0x90] sm:$0xff] %vm1095_vm11, %v1072_v11  ;;  %v1623_v54 = vrot.slane %v3680_v39, 2  ;;  %v1626_v55 = vrot.slane %v3717_v31, 2  ;;  %v1630_v56 = vrot.slane %v3629_v5, 2  ;;  %v1316_v28 = vadd.s32 8, %v3493_v45 }
 0x2aa   : > { %v1302_v34 = vmax.f32 %v1273_v60, 0.0  ;;  %1558 = vrot.lane.b32.xlu1 %v3737_v63, %s2556_s7  ;;  %v1074_v49 = vpop.permute.xlu0 %1073  ;;  %v1625_v60 = vrot.slane %v3715_v30, 2  ;;  %v3888_v19 = vsel %vm472_vm1, %v1636_v46, %v1638_v51 }
 0x2ab   : > { %1115 = vst.msk [vmem:[#allocation2 + $0x98] sm:$0xff] %vm1095_vm11, %v1074_v49  ;;  %vm1326_vm10 = vcmp.ge.s32.totalorder %v1316_v28, 0  ;;  %vm1336_vm11 = vcmp.lt.s32.totalorder %v1316_v28, 16 }
 0x2ac   : > { %v1383_v32 = vsel %vm3700_vm14, %v1302_v34, 0.0  ;;  %v3756_v58 = vld [vmem:[#allocation3 + $0xa8] sm:$0xff]  ;;  %v1628_v34 = vrot.slane %v3708_v53, 2  ;;  %v3852_v39 = vsel %vm472_vm1, %v1625_v60, %v1626_v55  ;;  %v1631_v53 = vrot.slane %v3663_v42, 2  ;;  %vm3881_vm6 = vmand %vm1326_vm10, %vm1336_vm11 }
 0x2ad   : > { %1425 = vst.msk [vmem:[#allocation3 + $0xb1] sm:$0xff] %vm1409_vm3, %v1383_v32  ;;  %v1535_v12 = vrot.slane %v3756_v58, 1  ;;  %v3842_v32 = vsel %vm472_vm1, %v1621_v40, %v1623_v54  ;;  %v1640_v13 = vrot.slane %v3756_v58, 2  ;;  %vm2039_vm14 = vcmask 523712  }
 0x2ae   : > { %1474 = vst.msk [vmem:[#allocation4 + $0x70] sm:$0xff] %vm1409_vm3, %v3756_v58  ;;  %v3845_v41 = vsel %vm472_vm1, %v1626_v55, %v1628_v34  ;;  %vm2155_vm10 = vcmask 588800  }
 0x2af   : > { %v1275_v16 = vpop.f32.mrf.mxu2 }
 0x2b0   : > { %v1276_v40 = vadd.f32 %v3499_v18, %v1275_v16  ;;  %v1134_v11 = vld [vmem:[#allocation2 + $0x90] sm:$0xff] }
 0x2b1   : > { %1562 = vrot.lane.b32.xlu0 %v3763_v38, %s2556_s7  ;;  %1566 = vrot.lane.b32.xlu2 %v3766_v4, %s2556_s7 }
 0x2b2   : > { %1564 = vrot.lane.b32.xlu1 %v3773_v57, %s2556_s7  ;;  %2424 = vmatmul.msk.f32.gmra.mxu2 %vm1145_vm12, %v1134_v11  ;;  %v1135_v55 = vld [vmem:[#allocation2 + $0x98] sm:$0xff] }
 0x2b4   : > { %v3777_v15 = vld [vmem:[#allocation3 + $0xb0] sm:$0xff]  ;;  %v3779_v29 = vld [vmem:[#allocation3 + $0xb8] sm:$0x3] }
 0x2b5   : > { %v1536_v61 = vrot.slane %v3777_v15, 1  ;;  %1475 = vst.msk [vmem:[#allocation4 + $0x78] sm:$0xff] %vm1409_vm3, %v3777_v15  ;;  %v1538_v37 = vrot.slane %v3779_v29, 1 }
 0x2b7   : > { %v3787_v27 = vsel %vm340_vm0, %v1535_v12, %v1536_v61  ;;  %v3790_v24 = vsel %vm340_vm0, %v1536_v61, %v1538_v37  ;;  %v1635_v12 = vrot.slane %v3682_v33, 2  ;;  %v3862_v61 = vsel %vm472_vm1, %v1630_v56, %v1631_v53 }
 0x2b9   : > { %1568 = vrot.lane.b32.xlu0 %v3787_v27, %s2556_s7  ;;  %1645 = vrot.lane.b32.xlu2 %v3542_v44, %s2558_s9  ;;  %v3809_v44 = vsel %vm472_vm1, %v1610_v9, %v1611_v14  ;;  %v3865_v37 = vsel %vm472_vm1, %v1635_v12, %v1636_v46  ;;  %v3872_v14 = vsel %vm472_vm1, %v1631_v53, %v1633_v22  ;;  %v1641_v9 = vrot.slane %v3777_v15, 2  ;;  %v1278_v53 = vpop.f32.mrf.mxu2 }
 0x2ba   : > { %1570 = vrot.lane.b32.xlu1 %v3790_v24, %s2556_s7  ;;  %2425 = vmatmul.msk.f32.gmra.mxu2 %vm1145_vm12, %v1135_v55  ;;  %s2564_s7 = smov 48   ;;  %vm1693_vm12 = vcmask 195712  }
 0x2bb   : > { %v3900_v49 = vsel %vm472_vm1, %v1640_v13, %v1641_v9 }
 0x2c1   : > { %1647 = vrot.lane.b32.xlu0 %v3545_v52, %s2558_s9  ;;  %1651 = vrot.lane.b32.xlu2 %v3802_v3, %s2558_s9  ;;  %v1615_v52 = vrot.slane %v3608_v25, 2 }
 0x2c2   : > { %1649 = vrot.lane.b32.xlu1 %v3809_v44, %s2558_s9 }
 0x2c3   : > { %v3821_v23 = vsel %vm472_vm1, %v1615_v52, %v1616_v6  ;;  %v1643_v6 = vrot.slane %v3779_v29, 2  ;;  %v1303_v52 = vmax.f32 %v1276_v40, 0.0 }
 0x2c5   : > { %v1384_v29 = vsel %vm3881_vm6, %v1303_v52, 0.0 }
 0x2c6   : > { %1426 = vst.msk [vmem:[#allocation3 + $0xc1] sm:$0xff] %vm1409_vm3, %v1384_v29 }
 0x2c9   : > { %1653 = vrot.lane.b32.xlu0 %v3821_v23, %s2558_s9  ;;  %1657 = vrot.lane.b32.xlu2 %v3824_v36, %s2558_s9 }
 0x2ca   : > { %1655 = vrot.lane.b32.xlu1 %v3831_v0, %s2558_s9  ;;  %v1543_v47 = vpop.permute.xlu2 %1542 }
 0x2cb   : > { %1590 = vst.msk [vmem:[#allocation4 + $0x8] sm:$0xff] %vm1588_vm5, %v1543_v47  ;;  %v3891_v47 = vsel %vm472_vm1, %v1641_v9, %v1643_v6 }
 0x2cd   : > { %v3941_v51 = vld [vmem:[#allocation3 + $0xc0] sm:$0xff] }
 0x2d1   : > { %1659 = vrot.lane.b32.xlu0 %v3842_v32, %s2558_s9  ;;  %1663 = vrot.lane.b32.xlu2 %v3845_v41, %s2558_s9 }
 0x2d2   : > { %1661 = vrot.lane.b32.xlu1 %v3852_v39, %s2558_s9 }
 0x2d9   : > { %1665 = vrot.lane.b32.xlu0 %v3862_v61, %s2558_s9  ;;  %1669 = vrot.lane.b32.xlu2 %v3865_v37, %s2558_s9 }
 0x2da   : > { %1667 = vrot.lane.b32.xlu1 %v3872_v14, %s2558_s9 }
 0x2e1   : > { %1671 = vrot.lane.b32.xlu0 %v3888_v19, %s2558_s9  ;;  %1675 = vrot.lane.b32.xlu2 %v3891_v47, %s2558_s9 }
 0x2e2   : > { %1673 = vrot.lane.b32.xlu1 %v3900_v49, %s2558_s9  ;;  %v1541_v54 = vpop.permute.xlu1 %1540  ;;  %s2565_s9 = smov 40  }
 0x2e3   : > { %1589 = vst.msk [vmem:[#allocation4] sm:$0xff] %vm1588_vm5, %v1541_v54 }
 0x2e9   : > { %1712 = vrot.lane.b32.xlu0 %v3555_v48, %s2560_s11  ;;  %1716 = vrot.lane.b32.xlu2 %v3608_v25, %s2560_s11 }
 0x2ea   : > { %1714 = vrot.lane.b32.xlu1 %v3575_v7, %s2560_s11  ;;  %v1279_v7 = vadd.f32 %v3499_v18, %v1278_v53 }
 0x2eb   : > { %v1549_v60 = vpop.permute.xlu2 %1548 }
 0x2ec   : > { %1593 = vst.msk [vmem:[#allocation4 + $0x20] sm:$0xff] %vm1588_vm5, %v1549_v60  ;;  %v1304_v46 = vmax.f32 %v1279_v7, 0.0 }
 0x2ee   : > { %v1385_v56 = vsel %vm3881_vm6, %v1304_v46, 0.0 }
 0x2ef   : > { %1427 = vst.msk [vmem:[#allocation3 + $0xc9] sm:$0xff] %vm1409_vm3, %v1385_v56 }
 0x2f1   : > { %1718 = vrot.lane.b32.xlu0 %v3625_v2, %s2560_s11  ;;  %1722 = vrot.lane.b32.xlu2 %v3678_v26, %s2560_s11 }
 0x2f2   : > { %1720 = vrot.lane.b32.xlu1 %v3661_v50, %s2560_s11  ;;  %v1545_v34 = vpop.permute.xlu0 %1544  ;;  %v1547_v48 = vpop.permute.xlu1 %1546 }
 0x2f3   : > { %1591 = vst.msk [vmem:[#allocation4 + $0x10] sm:$0xff] %vm1588_vm5, %v1545_v34 }
 0x2f4   : > { %1592 = vst.msk [vmem:[#allocation4 + $0x18] sm:$0xff] %vm1588_vm5, %v1547_v48 }
 0x2f9   : > { %1724 = vrot.lane.b32.xlu0 %v3715_v30, %s2560_s11  ;;  %1728 = vrot.lane.b32.xlu2 %v3629_v5, %s2560_s11 }
 0x2fa   : > { %1726 = vrot.lane.b32.xlu1 %v3717_v31, %s2560_s11 }
 0x2fb   : > { %v1555_v22 = vpop.permute.xlu2 %1554 }
 0x2fc   : > { %1596 = vst.msk [vmem:[#allocation4 + $0x38] sm:$0xff] %vm1588_vm5, %v1555_v22  ;;  %v1317_v22 = vadd.s32 9, %v3493_v45 }
 0x2fe   : > { %vm1327_vm8 = vcmp.ge.s32.totalorder %v1317_v22, 0  ;;  %vm1337_vm9 = vcmp.lt.s32.totalorder %v1317_v22, 16 }
 0x2ff   : > { %vm4047_vm13 = vmand %vm1327_vm8, %vm1337_vm9 }
 0x301   : > { %1730 = vrot.lane.b32.xlu0 %v3663_v42, %s2560_s11  ;;  %1734 = vrot.lane.b32.xlu2 %v3719_v35, %s2560_s11 }
 0x302   : > { %1732 = vrot.lane.b32.xlu1 %v3682_v33, %s2560_s11 }
 0x303   : > { %v1551_v12 = vpop.permute.xlu0 %1550  ;;  %v1561_v28 = vpop.permute.xlu2 %1560 }
 0x304   : > { %1594 = vst.msk [vmem:[#allocation4 + $0x28] sm:$0xff] %vm1588_vm5, %v1551_v12 }
 0x305   : > { %1599 = vst.msk [vmem:[#allocation4 + $0x50] sm:$0xff] %vm1588_vm5, %v1561_v28 }
 0x309   : > { %1736 = vrot.lane.b32.xlu0 %v3756_v58, %s2560_s11  ;;  %1740 = vrot.lane.b32.xlu2 %v3941_v51, %s2560_s11 }
 0x30a   : > { %1738 = vrot.lane.b32.xlu1 %v3777_v15, %s2560_s11 }
 0x30b   : > { %v1567_v9 = vpop.permute.xlu2 %1566 }
 0x30c   : > { %1602 = vst.msk [vmem:[#allocation4 + $0x68] sm:$0xff] %vm1588_vm5, %v1567_v9 }
 0x311   : > { %1783 = vrot.lane.b32.xlu0 %v3585_v1, %s2562_s13  ;;  %1920 = vrot.lane.b32.xlu2 %v3608_v25, %s2564_s7 }
 0x312   : > { %1853 = vrot.lane.b32.xlu1 %v3809_v44, %s2565_s9 }
 0x313   : > { %v1646_v16 = vpop.permute.xlu2 %1645  ;;  %v1553_v6 = vpop.permute.xlu1 %1552 }
 0x314   : > { %1694 = vst.msk [vmem:[#allocation4] sm:$0xff] %vm1693_vm12, %v1646_v16  ;;  %v2150_v16 = vld [vmem:[%s4366_s3 + $0x40] sm:$0xff] }
 0x315   : > { %1595 = vst.msk [vmem:[#allocation4 + $0x30] sm:$0xff] %vm1588_vm5, %v1553_v6  ;;  %2211 = vmatpush.msra.mxu1 %v2150_v16  ;;  %2450 = vmatpush.msra.mxu3 %v2150_v16  ;;  %v2148_v6 = vld [vmem:[%s4366_s3 + $0x30] sm:$0xff] }
 0x319   : > { %1991 = vrot.lane.b32.xlu0 %v3643_v8, %s2566_s12  ;;  %1785 = vrot.lane.b32.xlu2 %v3590_v17, %s2562_s13 }
 0x31a   : > { %2061 = vrot.lane.b32.xlu1 %v3821_v23, %s2567_s14 }
 0x31b   : > { %v1557_v1 = vpop.permute.xlu0 %1556  ;;  %v1652_v25 = vpop.permute.xlu2 %1651 }
 0x31c   : > { %1597 = vst.msk [vmem:[#allocation4 + $0x40] sm:$0xff] %vm1588_vm5, %v1557_v1  ;;  %v1559_v44 = vpop.permute.xlu1 %1558 }
 0x31d   : > { %1697 = vst.msk [vmem:[#allocation4 + $0x18] sm:$0xff] %vm1693_vm12, %v1652_v25 }
 0x31e   : > { %1598 = vst.msk [vmem:[#allocation4 + $0x48] sm:$0xff] %vm1588_vm5, %v1559_v44  ;;  %v2147_v44 = vld [vmem:[%s4366_s3 + $0x28] sm:$0xff] }
 0x321   : > { %1855 = vrot.lane.b32.xlu0 %v3802_v3, %s2565_s9  ;;  %1922 = vrot.lane.b32.xlu2 %v3625_v2, %s2564_s7 }
 0x322   : > { %1801 = vrot.lane.b32.xlu1 %v3763_v38, %s2562_s13 }
 0x323   : > { %v1563_v17 = vpop.permute.xlu0 %1562  ;;  %v1658_v40 = vpop.permute.xlu2 %1657 }
 0x324   : > { %1600 = vst.msk [vmem:[#allocation4 + $0x58] sm:$0xff] %vm1588_vm5, %v1563_v17  ;;  %v1565_v11 = vpop.permute.xlu1 %1564 }
 0x325   : > { %1700 = vst.msk [vmem:[#allocation4 + $0x30] sm:$0xff] %vm1693_vm12, %v1658_v40 }
 0x326   : > { %1601 = vst.msk [vmem:[#allocation4 + $0x60] sm:$0xff] %vm1588_vm5, %v1565_v11 }
 0x329   : > { %1871 = vrot.lane.b32.xlu0 %v3872_v14, %s2565_s9  ;;  %1938 = vrot.lane.b32.xlu2 %v3719_v35, %s2564_s7 }
 0x32a   : > { %1993 = vrot.lane.b32.xlu1 %v3640_v43, %s2566_s12 }
 0x32b   : > { %v1569_v2 = vpop.permute.xlu0 %1568  ;;  %v1664_v3 = vpop.permute.xlu2 %1663 }
 0x32c   : > { %1603 = vst.msk [vmem:[#allocation4 + $0x70] sm:$0xff] %vm1588_vm5, %v1569_v2  ;;  %v1571_v10 = vpop.permute.xlu1 %1570 }
 0x32d   : > { %1703 = vst.msk [vmem:[#allocation4 + $0x48] sm:$0xff] %vm1693_vm12, %v1664_v3 }
 0x32e   : > { %1604 = vst.msk [vmem:[#allocation4 + $0x78] sm:$0xff] %vm1588_vm5, %v1571_v10  ;;  %v2144_v10 = vld [vmem:[%s4366_s3 + $0x10] sm:$0xff]  ;;  %vm2109_vm5 = vcmask 589312  }
 0x331   : > { %2063 = vrot.lane.b32.xlu0 %v3831_v0, %s2567_s14  ;;  %2079 = vrot.lane.b32.xlu2 %v3888_v19, %s2567_s14 }
 0x332   : > { %2009 = vrot.lane.b32.xlu1 %v3766_v4, %s2566_s12 }
 0x333   : > { %v1648_v35 = vpop.permute.xlu0 %1647  ;;  %v1670_v52 = vpop.permute.xlu2 %1669 }
 0x334   : > { %1695 = vst.msk [vmem:[#allocation4 + $0x8] sm:$0xff] %vm1693_vm12, %v1648_v35  ;;  %v1650_v13 = vpop.permute.xlu1 %1649  ;;  %v2143_v35 = vld [vmem:[%s4366_s3 + $0x8] sm:$0xff] }
 0x335   : > { %1706 = vst.msk [vmem:[#allocation4 + $0x60] sm:$0xff] %vm1693_vm12, %v1670_v52 }
 0x336   : > { %1696 = vst.msk [vmem:[#allocation4 + $0x10] sm:$0xff] %vm1693_vm12, %v1650_v13 }
 0x339   : > { %1787 = vrot.lane.b32.xlu0 %v3643_v8, %s2562_s13  ;;  %1803 = vrot.lane.b32.xlu2 %v3773_v57, %s2562_s13 }
 0x33a   : > { %1857 = vrot.lane.b32.xlu1 %v3821_v23, %s2565_s9 }
 0x33b   : > { %v1654_v29 = vpop.permute.xlu0 %1653  ;;  %v1676_v54 = vpop.permute.xlu2 %1675 }
 0x33c   : > { %1698 = vst.msk [vmem:[#allocation4 + $0x20] sm:$0xff] %vm1693_vm12, %v1654_v29  ;;  %v1656_v55 = vpop.permute.xlu1 %1655 }
 0x33d   : > { %1709 = vst.msk [vmem:[#allocation4 + $0x78] sm:$0xff] %vm1693_vm12, %v1676_v54 }
 0x33e   : > { %1699 = vst.msk [vmem:[#allocation4 + $0x28] sm:$0xff] %vm1693_vm12, %v1656_v55  ;;  %v1848_v55 = vrot.slane %v3941_v51, 2 }
 0x341   : > { %1924 = vrot.lane.b32.xlu0 %v3661_v50, %s2564_s7  ;;  %1995 = vrot.lane.b32.xlu2 %v3695_v20, %s2566_s12 }
 0x342   : > { %1873 = vrot.lane.b32.xlu1 %v3865_v37, %s2565_s9 }
 0x343   : > { %v1660_v8 = vpop.permute.xlu0 %1659  ;;  %v1717_v23 = vpop.permute.xlu2 %1716 }
 0x344   : > { %1701 = vst.msk [vmem:[#allocation4 + $0x38] sm:$0xff] %vm1693_vm12, %v1660_v8  ;;  %v1662_v60 = vpop.permute.xlu1 %1661 }
 0x345   : > { %1763 = vst.msk [vmem:[#allocation4 + $0x10] sm:$0xff] %vm1760_vm7, %v1717_v23 }
 0x346   : > { %1702 = vst.msk [vmem:[#allocation4 + $0x40] sm:$0xff] %vm1693_vm12, %v1662_v60 }
 0x349   : > { %1940 = vrot.lane.b32.xlu0 %v3756_v58, %s2564_s7  ;;  %2011 = vrot.lane.b32.xlu2 %v3787_v27, %s2566_s12 }
 0x34a   : > { %2065 = vrot.lane.b32.xlu1 %v3824_v36, %s2567_s14 }
 0x34b   : > { %v1666_v50 = vpop.permute.xlu0 %1665  ;;  %v1723_v34 = vpop.permute.xlu2 %1722 }
 0x34c   : > { %1704 = vst.msk [vmem:[#allocation4 + $0x50] sm:$0xff] %vm1693_vm12, %v1666_v50  ;;  %v1668_v48 = vpop.permute.xlu1 %1667 }
 0x34d   : > { %1766 = vst.msk [vmem:[#allocation4 + $0x28] sm:$0xff] %vm1760_vm7, %v1723_v34 }
 0x34e   : > { %1705 = vst.msk [vmem:[#allocation4 + $0x58] sm:$0xff] %vm1693_vm12, %v1668_v48 }
 0x351   : > { %2081 = vrot.lane.b32.xlu0 %v3900_v49, %s2567_s14  ;;  %1859 = vrot.lane.b32.xlu2 %v3831_v0, %s2565_s9 }
 0x352   : > { %1789 = vrot.lane.b32.xlu1 %v3640_v43, %s2562_s13 }
 0x353   : > { %v1672_v58 = vpop.permute.xlu0 %1671  ;;  %v1729_v53 = vpop.permute.xlu2 %1728 }
 0x354   : > { %1707 = vst.msk [vmem:[#allocation4 + $0x68] sm:$0xff] %vm1693_vm12, %v1672_v58  ;;  %v1674_v7 = vpop.permute.xlu1 %1673 }
 0x355   : > { %1769 = vst.msk [vmem:[#allocation4 + $0x40] sm:$0xff] %vm1760_vm7, %v1729_v53 }
 0x356   : > { %1708 = vst.msk [vmem:[#allocation4 + $0x70] sm:$0xff] %vm1693_vm12, %v1674_v7 }
 0x359   : > { %1805 = vrot.lane.b32.xlu0 %v3766_v4, %s2562_s13  ;;  %1875 = vrot.lane.b32.xlu2 %v3888_v19, %s2565_s9  ;;  %v1281_v4 = vpop.f32.mrf.mxu2 }
 0x35a   : > { %1926 = vrot.lane.b32.xlu1 %v3678_v26, %s2564_s7  ;;  %v1282_v26 = vadd.f32 %v3499_v18, %v1281_v4 }
 0x35b   : > { %v1713_v0 = vpop.permute.xlu0 %1712  ;;  %v1735_v43 = vpop.permute.xlu2 %1734 }
 0x35c   : > { %1761 = vst.msk [vmem:[#allocation4] sm:$0xff] %vm1760_vm7, %v1713_v0  ;;  %v1715_v46 = vpop.permute.xlu1 %1714  ;;  %v1305_v12 = vmax.f32 %v1282_v26, 0.0 }
 0x35d   : > { %1772 = vst.msk [vmem:[#allocation4 + $0x58] sm:$0xff] %vm1760_vm7, %v1735_v43 }
 0x35e   : > { %1762 = vst.msk [vmem:[#allocation4 + $0x8] sm:$0xff] %vm1760_vm7, %v1715_v46  ;;  %v1386_v9 = vsel %vm4047_vm13, %v1305_v12, 0.0 }
 0x35f   : > { %1428 = vst.msk [vmem:[#allocation3 + $0xd9] sm:$0xff] %vm1409_vm3, %v1386_v9 }
 0x361   : > { %1997 = vrot.lane.b32.xlu0 %v3692_v59, %s2566_s12  ;;  %2067 = vrot.lane.b32.xlu2 %v3842_v32, %s2567_s14  ;;  %v1284_v1 = vpop.f32.mrf.mxu2 }
 0x362   : > { %1942 = vrot.lane.b32.xlu1 %v3777_v15, %s2564_s7  ;;  %v2149_v15 = vld [vmem:[%s4366_s3 + $0x38] sm:$0xff]  ;;  %v1285_v25 = vadd.f32 %v3499_v18, %v1284_v1 }
 0x363   : > { %v1719_v45 = vpop.permute.xlu0 %1718  ;;  %v1741_v56 = vpop.permute.xlu2 %1740  ;;  %2212 = vmatpush.msra.mxu1 %v2149_v15  ;;  %2451 = vmatpush.msra.mxu3 %v2149_v15  ;;  %v2145_v18 = vld [vmem:[%s4366_s3 + $0x18] sm:$0xff] }
 0x364   : > { %1764 = vst.msk [vmem:[#allocation4 + $0x18] sm:$0xff] %vm1760_vm7, %v1719_v45  ;;  %v1721_v28 = vpop.permute.xlu1 %1720  ;;  %v1306_v2 = vmax.f32 %v1285_v25, 0.0 }
 0x365   : > { %1775 = vst.msk [vmem:[#allocation4 + $0x70] sm:$0xff] %vm1760_vm7, %v1741_v56  ;;  %2213 = vmatpush.msra.mxu1 %v2148_v6  ;;  %2452 = vmatpush.msra.mxu3 %v2148_v6 }
 0x366   : > { %1765 = vst.msk [vmem:[#allocation4 + $0x20] sm:$0xff] %vm1760_vm7, %v1721_v28  ;;  %v1387_v3 = vsel %vm4047_vm13, %v1306_v2, 0.0 }
 0x367   : > { %2214 = vmatpush.msra.mxu1 %v2147_v44  ;;  %2453 = vmatpush.msra.mxu3 %v2147_v44  ;;  %1429 = vst.msk [vmem:[#allocation3 + $0xe1] sm:$0xff] %vm1409_vm3, %v1387_v3 }
 0x369   : > { %2013 = vrot.lane.b32.xlu0 %v3790_v24, %s2566_s12  ;;  %1791 = vrot.lane.b32.xlu2 %v3695_v20, %s2562_s13  ;;  %v2146_v20 = vld [vmem:[%s4366_s3 + $0x20] sm:$0xff] }
 0x36a   : > { %2083 = vrot.lane.b32.xlu1 %v3891_v47, %s2567_s14  ;;  %2215 = vmatpush.msra.mxu1 %v2146_v20 }
 0x36b   : > { %v1725_v17 = vpop.permute.xlu0 %1724  ;;  %v1921_v40 = vpop.permute.xlu2 %1920  ;;  %2454 = vmatpush.msra.mxu3 %v2146_v20 }
 0x36c   : > { %1767 = vst.msk [vmem:[#allocation4 + $0x30] sm:$0xff] %vm1760_vm7, %v1725_v17  ;;  %v1727_v11 = vpop.permute.xlu1 %1726  ;;  %2216 = vmatpush.msra.mxu1 %v2145_v18 }
 0x36d   : > { %1768 = vst.msk [vmem:[#allocation4 + $0x38] sm:$0xff] %vm1760_vm7, %v1727_v11  ;;  %2455 = vmatpush.msra.mxu3 %v2145_v18 }
 0x36e   : > { %2217 = vmatpush.msra.mxu1 %v2144_v10  ;;  %v1458_v6 = vld [vmem:[#allocation3 + $0xe0] sm:$0xff] }
 0x36f   : > { %2456 = vmatpush.msra.mxu3 %v2144_v10  ;;  %v2057_v2 = vrot.slane %v1458_v6, 2 }
 0x370   : > { %2218 = vmatpush.msra.mxu1 %v2143_v35 }
 0x371   : > { %1861 = vrot.lane.b32.xlu0 %v3824_v36, %s2565_s9  ;;  %1928 = vrot.lane.b32.xlu2 %v3715_v30, %s2564_s7  ;;  %v2142_v30 = vld [vmem:[%s4366_s3] sm:$0xff] }
 0x372   : > { %1807 = vrot.lane.b32.xlu1 %v3787_v27, %s2562_s13  ;;  %2219 = vmatpush.msra.mxu1 %v2142_v30  ;;  %v4109_v27 = vld [vmem:[#allocation3 + $0xc8] sm:$0xff] }
 0x373   : > { %v1731_v52 = vpop.permute.xlu0 %1730  ;;  %v1786_v13 = vpop.permute.xlu2 %1785  ;;  %2457 = vmatpush.msra.mxu3 %v2143_v35  ;;  %v1849_v23 = vrot.slane %v4109_v27, 2  ;;  %v1779_v60 = vrot.slane %v4109_v27, 1 }
 0x374   : > { %1770 = vst.msk [vmem:[#allocation4 + $0x48] sm:$0xff] %vm1760_vm7, %v1731_v52  ;;  %v1733_v29 = vpop.permute.xlu1 %1732 }
 0x375   : > { %1833 = vst.msk [vmem:[#allocation4 + $0x8] sm:$0xff] %vm1831_vm15, %v1786_v13  ;;  %2458 = vmatpush.msra.mxu3 %v2142_v30  ;;  %v1850_v50 = vsel %vm472_vm1, %v1848_v55, %v1849_v23 }
 0x376   : > { %1771 = vst.msk [vmem:[#allocation4 + $0x50] sm:$0xff] %vm1760_vm7, %v1733_v29 }
 0x379   : > { %1877 = vrot.lane.b32.xlu0 %v3900_v49, %s2565_s9  ;;  %1944 = vrot.lane.b32.xlu2 %v3941_v51, %s2564_s7  ;;  %v1778_v49 = vrot.slane %v3941_v51, 1 }
 0x37a   : > { %1999 = vrot.lane.b32.xlu1 %v3731_v21, %s2566_s12 }
 0x37b   : > { %v1737_v36 = vpop.permute.xlu0 %1736  ;;  %v1923_v54 = vpop.permute.xlu2 %1922  ;;  %v1780_v34 = vsel %vm340_vm0, %v1778_v49, %v1779_v60 }
 0x37c   : > { %1773 = vst.msk [vmem:[#allocation4 + $0x60] sm:$0xff] %vm1760_vm7, %v1737_v36  ;;  %v1739_v8 = vpop.permute.xlu1 %1738 }
 0x37d   : > { %1774 = vst.msk [vmem:[#allocation4 + $0x68] sm:$0xff] %vm1760_vm7, %v1739_v8 }
 0x381   : > { %2069 = vrot.lane.b32.xlu0 %v3852_v39, %s2567_s14  ;;  %2085 = vrot.lane.b32.xlu2 %v1850_v50, %s2567_s14 }
 0x382   : > { %2015 = vrot.lane.b32.xlu1 %v1780_v34, %s2566_s12 }
 0x383   : > { %v1784_v48 = vpop.permute.xlu0 %1783  ;;  %v1939_v58 = vpop.permute.xlu2 %1938 }
 0x384   : > { %1832 = vst.msk [vmem:[#allocation4] sm:$0xff] %vm1831_vm15, %v1784_v48  ;;  %v1854_v51 = vpop.permute.xlu1 %1853 }
 0x385   : > { %1902 = vst.msk [vmem:[#allocation4] sm:$0xff] %vm1901_vm2, %v1854_v51 }
 0x386   : > { %1969 = vst.msk [vmem:[#allocation4] sm:$0xff] %vm1968_vm4, %v1921_v40  ;;  %v1987_v40 = vrot.slane %v1458_v6, 1 }
 0x389   : > { %1793 = vrot.lane.b32.xlu0 %v3692_v59, %s2562_s13  ;;  %1809 = vrot.lane.b32.xlu2 %v3790_v24, %s2562_s13  ;;  %v1456_v59 = vld [vmem:[#allocation3 + $0xd0] sm:$0x3] }
 0x38a   : > { %1863 = vrot.lane.b32.xlu1 %v3842_v32, %s2565_s9  ;;  %v1781_v22 = vrot.slane %v1456_v59, 1  ;;  %v1851_v19 = vrot.slane %v1456_v59, 2 }
 0x38b   : > { %v1992_v53 = vpop.permute.xlu0 %1991  ;;  %v2080_v7 = vpop.permute.xlu2 %2079 }
 0x38c   : > { %2040 = vst.msk [vmem:[#allocation4] sm:$0xff] %vm2039_vm14, %v1992_v53  ;;  %v2062_v0 = vpop.permute.xlu1 %2061  ;;  %v1852_v45 = vsel %vm472_vm1, %v1849_v23, %v1851_v19 }
 0x38d   : > { %2110 = vst.msk [vmem:[#allocation4] sm:$0xff] %vm2109_vm5, %v2062_v0 }
 0x391   : > { %1930 = vrot.lane.b32.xlu0 %v3717_v31, %s2564_s7  ;;  %2001 = vrot.lane.b32.xlu2 %v3737_v63, %s2566_s12  ;;  %v1782_v31 = vsel %vm340_vm0, %v1779_v60, %v1781_v22 }
 0x392   : > { %1879 = vrot.lane.b32.xlu1 %v3891_v47, %s2565_s9 }
 0x393   : > { %v1856_v24 = vpop.permute.xlu0 %1855  ;;  %v1804_v32 = vpop.permute.xlu2 %1803 }
 0x394   : > { %1903 = vst.msk [vmem:[#allocation4 + $0x8] sm:$0xff] %vm1901_vm2, %v1856_v24  ;;  %v1802_v43 = vpop.permute.xlu1 %1801  ;;  %v2126_v46 = vld [vmem:[#allocation4] sm:$0xff] }
 0x395   : > { %1970 = vst.msk [vmem:[#allocation4 + $0x8] sm:$0xff] %vm1968_vm4, %v1923_v54  ;;  %2427 = vmatmul.msk.f32.vlgmr.msra.gmra.mxu1 %vm2155_vm10, %v2126_v46 }
 0x396   : > { %1842 = vst.msk [vmem:[#allocation4 + $0x50] sm:$0xff] %vm1831_vm15, %v1804_v32 }
 0x397   : > { %1841 = vst.msk [vmem:[#allocation4 + $0x48] sm:$0xff] %vm1831_vm15, %v1802_v43 }
 0x399   : > { %1946 = vrot.lane.b32.xlu0 %v4109_v27, %s2564_s7  ;;  %2017 = vrot.lane.b32.xlu2 %v1782_v31, %s2566_s12 }
 0x39a   : > { %2071 = vrot.lane.b32.xlu1 %v3845_v41, %s2567_s14 }
 0x39b   : > { %v1872_v47 = vpop.permute.xlu0 %1871  ;;  %v1996_v4 = vpop.permute.xlu2 %1995 }
 0x39c   : > { %1911 = vst.msk [vmem:[#allocation4 + $0x48] sm:$0xff] %vm1901_vm2, %v1872_v47  ;;  %v1994_v26 = vpop.permute.xlu1 %1993 }
 0x39d   : > { %1978 = vst.msk [vmem:[#allocation4 + $0x48] sm:$0xff] %vm1968_vm4, %v1939_v58 }
 0x39e   : > { %2041 = vst.msk [vmem:[#allocation4 + $0x8] sm:$0xff] %vm2039_vm14, %v1994_v26 }
 0x3a1   : > { %2087 = vrot.lane.b32.xlu0 %v1852_v45, %s2567_s14  ;;  %1865 = vrot.lane.b32.xlu2 %v3852_v39, %s2565_s9 }
 0x3a2   : > { %1795 = vrot.lane.b32.xlu1 %v3731_v21, %s2562_s13 }
 0x3a3   : > { %v2064_v56 = vpop.permute.xlu0 %2063  ;;  %v2012_v12 = vpop.permute.xlu2 %2011 }
 0x3a4   : > { %2111 = vst.msk [vmem:[#allocation4 + $0x8] sm:$0xff] %vm2109_vm5, %v2064_v56  ;;  %v2010_v28 = vpop.permute.xlu1 %2009 }
 0x3a5   : > { %2049 = vst.msk [vmem:[#allocation4 + $0x48] sm:$0xff] %vm2039_vm14, %v2010_v28 }
 0x3a6   : > { %2119 = vst.msk [vmem:[#allocation4 + $0x48] sm:$0xff] %vm2109_vm5, %v2080_v7 }
 0x3a9   : > { %1811 = vrot.lane.b32.xlu0 %v1780_v34, %s2562_s13  ;;  %1881 = vrot.lane.b32.xlu2 %v1850_v50, %s2565_s9 }
 0x3aa   : > { %1932 = vrot.lane.b32.xlu1 %v3629_v5, %s2564_s7  ;;  %v1457_v5 = vld [vmem:[#allocation3 + $0xd8] sm:$0xff] }
 0x3ab   : > { %v1788_v39 = vpop.permute.xlu0 %1787  ;;  %v1860_v9 = vpop.permute.xlu2 %1859  ;;  %v2127_v16 = vld [vmem:[#allocation4 + $0x8] sm:$0xff]  ;;  %v1986_v44 = vrot.slane %v1457_v5, 1  ;;  %v2056_v11 = vrot.slane %v1457_v5, 2 }
 0x3ac   : > { %1834 = vst.msk [vmem:[#allocation4 + $0x10] sm:$0xff] %vm1831_vm15, %v1788_v39  ;;  %v1858_v21 = vpop.permute.xlu1 %1857  ;;  %2428 = vmatmul.msk.f32.gmra.mxu1 %vm2155_vm10, %v2127_v16 }
 0x3ad   : > { %1904 = vst.msk [vmem:[#allocation4 + $0x10] sm:$0xff] %vm1901_vm2, %v1858_v21  ;;  %v2135_v15 = vld [vmem:[#allocation4 + $0x48] sm:$0xff]  ;;  %v1988_v20 = vsel %vm340_vm0, %v1986_v44, %v1987_v40  ;;  %v2058_v18 = vsel %vm472_vm1, %v2056_v11, %v2057_v2 }
 0x3ae   : > { %2436 = vmatmul.msk.f32.vlgmr.msra.gmra.mxu3 %vm2155_vm10, %v2135_v15 }
 0x3b1   : > { %2003 = vrot.lane.b32.xlu0 %v3734_v62, %s2566_s12  ;;  %2073 = vrot.lane.b32.xlu2 %v3862_v61, %s2567_s14 }
 0x3b2   : > { %1948 = vrot.lane.b32.xlu1 %v1457_v5, %s2564_s7 }
 0x3b3   : > { %v1925_v1 = vpop.permute.xlu0 %1924  ;;  %v1876_v25 = vpop.permute.xlu2 %1875 }
 0x3b4   : > { %1971 = vst.msk [vmem:[#allocation4 + $0x10] sm:$0xff] %vm1968_vm4, %v1925_v1  ;;  %v1874_v17 = vpop.permute.xlu1 %1873 }
 0x3b5   : > { %2042 = vst.msk [vmem:[#allocation4 + $0x10] sm:$0xff] %vm2039_vm14, %v1996_v4 }
 0x3b6   : > { %1912 = vst.msk [vmem:[#allocation4 + $0x50] sm:$0xff] %vm1901_vm2, %v1874_v17 }
 0x3b9   : > { %2019 = vrot.lane.b32.xlu0 %v1988_v20, %s2566_s12  ;;  %1797 = vrot.lane.b32.xlu2 %v3737_v63, %s2562_s13 }
 0x3ba   : > { %2089 = vrot.lane.b32.xlu1 %v2058_v18, %s2567_s14 }
 0x3bb   : > { %v1941_v3 = vpop.permute.xlu0 %1940  ;;  %v2068_v10 = vpop.permute.xlu2 %2067 }
 0x3bc   : > { %1979 = vst.msk [vmem:[#allocation4 + $0x50] sm:$0xff] %vm1968_vm4, %v1941_v3  ;;  %v2066_v35 = vpop.permute.xlu1 %2065 }
 0x3bd   : > { %2050 = vst.msk [vmem:[#allocation4 + $0x50] sm:$0xff] %vm2039_vm14, %v2012_v12 }
 0x3be   : > { %2112 = vst.msk [vmem:[#allocation4 + $0x10] sm:$0xff] %vm2109_vm5, %v2066_v35 }
 0x3c1   : > { %1742 = vrot.lane.b32.xlu0 %v4109_v27, %s2560_s11  ;;  %1813 = vrot.lane.b32.xlu2 %v1782_v31, %s2562_s13  ;;  %s2400_s11 = sshll.u32 %s4402_s8, 1 }
 0x3c2   : > { %1867 = vrot.lane.b32.xlu1 %v3845_v41, %s2565_s9  ;;  %v1459_v41 = vld [vmem:[#allocation3 + $0xe8] sm:$0x3] }
 0x3c3   : > { %v2082_v63 = vpop.permute.xlu0 %2081  ;;  %v1792_v52 = vpop.permute.xlu2 %1791  ;;  %v1989_v55 = vrot.slane %v1459_v41, 1  ;;  %v2059_v49 = vrot.slane %v1459_v41, 2 }
 0x3c4   : > { %2120 = vst.msk [vmem:[#allocation4 + $0x50] sm:$0xff] %vm2109_vm5, %v2082_v63  ;;  %v1790_v13 = vpop.permute.xlu1 %1789 }
 0x3c5   : > { %1836 = vst.msk [vmem:[#allocation4 + $0x20] sm:$0xff] %vm1831_vm15, %v1792_v52  ;;  %v2128_v29 = vld [vmem:[#allocation4 + $0x10] sm:$0xff]  ;;  %v2060_v60 = vsel %vm472_vm1, %v2057_v2, %v2059_v49 }
 0x3c6   : > { %1835 = vst.msk [vmem:[#allocation4 + $0x18] sm:$0xff] %vm1831_vm15, %v1790_v13  ;;  %2429 = vmatmul.msk.f32.gmra.mxu1 %vm2155_vm10, %v2128_v29 }
 0x3c7   : > { %1905 = vst.msk [vmem:[#allocation4 + $0x18] sm:$0xff] %vm1901_vm2, %v1860_v9 }
 0x3c9   : > { %1934 = vrot.lane.b32.xlu0 %v3663_v42, %s2564_s7  ;;  %2005 = vrot.lane.b32.xlu2 %v3763_v38, %s2566_s12  ;;  %v1990_v42 = vsel %vm340_vm0, %v1987_v40, %v1989_v55 }
 0x3ca   : > { %1883 = vrot.lane.b32.xlu1 %v1852_v45, %s2565_s9  ;;  %v4259_v45 = vld [vmem:[%s4367_s4] ss:$0 sm:$0xff] }
 0x3cb   : > { %v1806_v30 = vpop.permute.xlu0 %1805  ;;  %v1929_v27 = vpop.permute.xlu2 %1928  ;;  %v2136_v36 = vld [vmem:[#allocation4 + $0x50] sm:$0xff] }
 0x3cc   : > { %1843 = vst.msk [vmem:[#allocation4 + $0x58] sm:$0xff] %vm1831_vm15, %v1806_v30  ;;  %v1927_v54 = vpop.permute.xlu1 %1926  ;;  %2437 = vmatmul.msk.f32.gmra.mxu3 %vm2155_vm10, %v2136_v36 }
 0x3cd   : > { %1913 = vst.msk [vmem:[#allocation4 + $0x58] sm:$0xff] %vm1901_vm2, %v1876_v25 }
 0x3ce   : > { %1972 = vst.msk [vmem:[#allocation4 + $0x18] sm:$0xff] %vm1968_vm4, %v1927_v54 }
 0x3d1   : > { %1950 = vrot.lane.b32.xlu0 %v1458_v6, %s2564_s7  ;;  %2021 = vrot.lane.b32.xlu2 %v1990_v42, %s2566_s12 }
 0x3d2   : > { %2075 = vrot.lane.b32.xlu1 %v3872_v14, %s2567_s14 }
 0x3d3   : > { %v1998_v38 = vpop.permute.xlu0 %1997  ;;  %v1945_v8 = vpop.permute.xlu2 %1944 }
 0x3d4   : > { %2043 = vst.msk [vmem:[#allocation4 + $0x18] sm:$0xff] %vm2039_vm14, %v1998_v38  ;;  %v1943_v23 = vpop.permute.xlu1 %1942 }
 0x3d5   : > { %2113 = vst.msk [vmem:[#allocation4 + $0x18] sm:$0xff] %vm2109_vm5, %v2068_v10 }
 0x3d6   : > { %1980 = vst.msk [vmem:[#allocation4 + $0x58] sm:$0xff] %vm1968_vm4, %v1943_v23 }
 0x3d9   : > { %2091 = vrot.lane.b32.xlu0 %v2060_v60, %s2567_s14  ;;  %1869 = vrot.lane.b32.xlu2 %v3862_v61, %s2565_s9 }
 0x3da   : > { %1799 = vrot.lane.b32.xlu1 %v3734_v62, %s2562_s13  ;;  %s2401_s13 = sshll.u32 %s4400_s19, 5 }
 0x3db   : > { %v2014_v14 = vpop.permute.xlu0 %2013  ;;  %v2086_v50 = vpop.permute.xlu2 %2085 }
 0x3dc   : > { %2051 = vst.msk [vmem:[#allocation4 + $0x58] sm:$0xff] %vm2039_vm14, %v2014_v14  ;;  %v2084_v34 = vpop.permute.xlu1 %2083  ;;  %v2129_v48 = vld [vmem:[#allocation4 + $0x18] sm:$0xff] }
 0x3dd   : > { %2121 = vst.msk [vmem:[#allocation4 + $0x58] sm:$0xff] %vm2109_vm5, %v2084_v34  ;;  %2430 = vmatmul.msk.f32.gmra.mxu1 %vm2155_vm10, %v2129_v48 }
 0x3e1   : > { %1936 = vrot.lane.b32.xlu0 %v3682_v33, %s2564_s7  ;;  %2077 = vrot.lane.b32.xlu2 %v3865_v37, %s2567_s14  ;;  %s246_s7 = sadd.s32 %s2401_s13, %s2400_s11 }
 0x3e2   : > { %2007 = vrot.lane.b32.xlu1 %v3773_v57, %s2566_s12  ;;  %s2402_s14 = sshll.u32 %s246_s7, 3 }
 0x3e3   : > { %v1862_v62 = vpop.permute.xlu0 %1861  ;;  %v1810_v61 = vpop.permute.xlu2 %1809  ;;  %s4265_s28 = scalar_lea.vmem %s4368_s5, %s2402_s14 }
 0x3e4   : > { %1906 = vst.msk [vmem:[#allocation4 + $0x20] sm:$0xff] %vm1901_vm2, %v1862_v62  ;;  %v1808_v58 = vpop.permute.xlu1 %1807  ;;  %v2137_v51 = vld [vmem:[#allocation4 + $0x58] sm:$0xff] }
 0x3e5   : > { %1973 = vst.msk [vmem:[#allocation4 + $0x20] sm:$0xff] %vm1968_vm4, %v1929_v27  ;;  %2438 = vmatmul.msk.f32.gmra.mxu3 %vm2155_vm10, %v2137_v51 }
 0x3e6   : > { %1845 = vst.msk [vmem:[#allocation4 + $0x68] sm:$0xff] %vm1831_vm15, %v1810_v61 }
 0x3e7   : > { %1844 = vst.msk [vmem:[#allocation4 + $0x60] sm:$0xff] %vm1831_vm15, %v1808_v58 }
 0x3eb   : > { %v1878_v33 = vpop.permute.xlu0 %1877  ;;  %v2002_v53 = vpop.permute.xlu2 %2001 }
 0x3ec   : > { %1914 = vst.msk [vmem:[#allocation4 + $0x60] sm:$0xff] %vm1901_vm2, %v1878_v33  ;;  %v2000_v37 = vpop.permute.xlu1 %1999 }
 0x3ed   : > { %1981 = vst.msk [vmem:[#allocation4 + $0x60] sm:$0xff] %vm1968_vm4, %v1945_v8 }
 0x3ee   : > { %2044 = vst.msk [vmem:[#allocation4 + $0x20] sm:$0xff] %vm2039_vm14, %v2000_v37 }
 0x3f3   : > { %v2070_v57 = vpop.permute.xlu0 %2069  ;;  %v2018_v7 = vpop.permute.xlu2 %2017 }
 0x3f4   : > { %2114 = vst.msk [vmem:[#allocation4 + $0x20] sm:$0xff] %vm2109_vm5, %v2070_v57  ;;  %v2016_v0 = vpop.permute.xlu1 %2015 }
 0x3f5   : > { %2052 = vst.msk [vmem:[#allocation4 + $0x60] sm:$0xff] %vm2039_vm14, %v2016_v0 }
 0x3f6   : > { %2122 = vst.msk [vmem:[#allocation4 + $0x60] sm:$0xff] %vm2109_vm5, %v2086_v50 }
 0x3fb   : > { %v1794_v59 = vpop.permute.xlu0 %1793  ;;  %v1866_v24 = vpop.permute.xlu2 %1865  ;;  %v2130_v32 = vld [vmem:[#allocation4 + $0x20] sm:$0xff] }
 0x3fc   : > { %1837 = vst.msk [vmem:[#allocation4 + $0x28] sm:$0xff] %vm1831_vm15, %v1794_v59  ;;  %v1864_v43 = vpop.permute.xlu1 %1863  ;;  %2431 = vmatmul.msk.f32.gmra.mxu1 %vm2155_vm10, %v2130_v32 }
 0x3fd   : > { %1907 = vst.msk [vmem:[#allocation4 + $0x28] sm:$0xff] %vm1901_vm2, %v1864_v43  ;;  %v2138_v46 = vld [vmem:[#allocation4 + $0x60] sm:$0xff] }
 0x3fe   : > { %2439 = vmatmul.msk.f32.gmra.mxu3 %vm2155_vm10, %v2138_v46 }
 0x403   : > { %v1931_v22 = vpop.permute.xlu0 %1930  ;;  %v1882_v31 = vpop.permute.xlu2 %1881 }
 0x404   : > { %1974 = vst.msk [vmem:[#allocation4 + $0x28] sm:$0xff] %vm1968_vm4, %v1931_v22  ;;  %v1880_v47 = vpop.permute.xlu1 %1879 }
 0x405   : > { %2045 = vst.msk [vmem:[#allocation4 + $0x28] sm:$0xff] %vm2039_vm14, %v2002_v53 }
 0x406   : > { %1915 = vst.msk [vmem:[#allocation4 + $0x68] sm:$0xff] %vm1901_vm2, %v1880_v47 }
 0x40b   : > { %v1947_v4 = vpop.permute.xlu0 %1946  ;;  %v2074_v26 = vpop.permute.xlu2 %2073 }
 0x40c   : > { %1982 = vst.msk [vmem:[#allocation4 + $0x68] sm:$0xff] %vm1968_vm4, %v1947_v4  ;;  %v2072_v19 = vpop.permute.xlu1 %2071 }
 0x40d   : > { %2053 = vst.msk [vmem:[#allocation4 + $0x68] sm:$0xff] %vm2039_vm14, %v2018_v7 }
 0x40e   : > { %2115 = vst.msk [vmem:[#allocation4 + $0x28] sm:$0xff] %vm2109_vm5, %v2072_v19 }
 0x412   : > { %v2221_v56 = vpop.f32.mrf.mxu1 }
 0x413   : > { %v2222_v12 = vadd.f32 %v4259_v45, %v2221_v56  ;;  %v2088_v28 = vpop.permute.xlu0 %2087  ;;  %v1798_v39 = vpop.permute.xlu2 %1797 }
 0x414   : > { %2123 = vst.msk [vmem:[#allocation4 + $0x68] sm:$0xff] %vm2109_vm5, %v2088_v28  ;;  %v1796_v9 = vpop.permute.xlu1 %1795 }
 0x415   : > { %v2269_v16 = vmax.f32 %v2222_v12, 0.0  ;;  %1839 = vst.msk [vmem:[#allocation4 + $0x38] sm:$0xff] %vm1831_vm15, %v1798_v39  ;;  %v2131_v21 = vld [vmem:[#allocation4 + $0x28] sm:$0xff] }
 0x416   : > { %1838 = vst.msk [vmem:[#allocation4 + $0x30] sm:$0xff] %vm1831_vm15, %v1796_v9  ;;  %2432 = vmatmul.msk.f32.gmra.mxu1 %vm2155_vm10, %v2131_v21 }
 0x417   : > { %2285 = vst.msk [vmem:[%s4265_s28] sm:$0xff] %vm1409_vm3, %v2269_v16 }
 0x418   : > { %1908 = vst.msk [vmem:[#allocation4 + $0x30] sm:$0xff] %vm1901_vm2, %v1866_v24 }
 0x41b   : > { %v1812_v15 = vpop.permute.xlu0 %1811  ;;  %v2139_v5 = vld [vmem:[#allocation4 + $0x68] sm:$0xff]  ;;  %v1814_v18 = vpop.permute.xlu2 %1813 }
 0x41c   : > { %1846 = vst.msk [vmem:[#allocation4 + $0x70] sm:$0xff] %vm1831_vm15, %v1812_v15  ;;  %v1933_v6 = vpop.permute.xlu1 %1932  ;;  %2440 = vmatmul.msk.f32.gmra.mxu3 %vm2155_vm10, %v2139_v5 }
 0x41d   : > { %1916 = vst.msk [vmem:[#allocation4 + $0x70] sm:$0xff] %vm1901_vm2, %v1882_v31 }
 0x41e   : > { %1975 = vst.msk [vmem:[#allocation4 + $0x30] sm:$0xff] %vm1968_vm4, %v1933_v6 }
 0x423   : > { %v2004_v1 = vpop.permute.xlu0 %2003  ;;  %v2006_v29 = vpop.permute.xlu2 %2005 }
 0x424   : > { %2046 = vst.msk [vmem:[#allocation4 + $0x30] sm:$0xff] %vm2039_vm14, %v2004_v1  ;;  %v1949_v25 = vpop.permute.xlu1 %1948 }
 0x425   : > { %2116 = vst.msk [vmem:[#allocation4 + $0x30] sm:$0xff] %vm2109_vm5, %v2074_v26 }
 0x426   : > { %1983 = vst.msk [vmem:[#allocation4 + $0x70] sm:$0xff] %vm1968_vm4, %v1949_v25 }
 0x429   : > { %v2224_v44 = vpop.f32.mrf.mxu1 }
 0x42a   : > { %v2225_v17 = vadd.f32 %v4259_v45, %v2224_v44 }
 0x42b   : > { %v2020_v40 = vpop.permute.xlu0 %2019  ;;  %v2022_v27 = vpop.permute.xlu2 %2021 }
 0x42c   : > { %v2270_v11 = vmax.f32 %v2225_v17, 0.0  ;;  %2054 = vst.msk [vmem:[#allocation4 + $0x70] sm:$0xff] %vm2039_vm14, %v2020_v40  ;;  %v2090_v2 = vpop.permute.xlu1 %2089  ;;  %v2132_v20 = vld [vmem:[#allocation4 + $0x30] sm:$0xff] }
 0x42d   : > { %2124 = vst.msk [vmem:[#allocation4 + $0x70] sm:$0xff] %vm2109_vm5, %v2090_v2  ;;  %2433 = vmatmul.msk.f32.gmra.mxu1 %vm2155_vm10, %v2132_v20 }
 0x42e   : > { %2286 = vst.msk [vmem:[%s4265_s28 + $0x8] sm:$0xff] %vm1409_vm3, %v2270_v11 }
 0x431   : > { %v2248_v3 = vpop.f32.mrf.mxu3 }
 0x432   : > { %v2249_v10 = vadd.f32 %v4259_v45, %v2248_v3 }
 0x433   : > { %v1743_v35 = vpop.permute.xlu0 %1742  ;;  %v1870_v23 = vpop.permute.xlu2 %1869 }
 0x434   : > { %v2278_v63 = vmax.f32 %v2249_v10, 0.0  ;;  %1776 = vst.msk [vmem:[#allocation4 + $0x78] sm:$0xff] %vm1760_vm7, %v1743_v35  ;;  %v1868_v52 = vpop.permute.xlu1 %1867  ;;  %v2140_v13 = vld [vmem:[#allocation4 + $0x70] sm:$0xff] }
 0x435   : > { %1847 = vst.msk [vmem:[#allocation4 + $0x78] sm:$0xff] %vm1831_vm15, %v1814_v18  ;;  %2441 = vmatmul.msk.f32.gmra.mxu3 %vm2155_vm10, %v2140_v13 }
 0x436   : > { %2294 = vst.msk [vmem:[%s4265_s28 + $0x48] sm:$0xff] %vm1409_vm3, %v2278_v63 }
 0x437   : > { %1909 = vst.msk [vmem:[#allocation4 + $0x38] sm:$0xff] %vm1901_vm2, %v1868_v52 }
 0x43b   : > { %v1935_v41 = vpop.permute.xlu0 %1934  ;;  %v2078_v58 = vpop.permute.xlu2 %2077 }
 0x43c   : > { %1976 = vst.msk [vmem:[#allocation4 + $0x38] sm:$0xff] %vm1968_vm4, %v1935_v41  ;;  %v1884_v30 = vpop.permute.xlu1 %1883 }
 0x43d   : > { %2047 = vst.msk [vmem:[#allocation4 + $0x38] sm:$0xff] %vm2039_vm14, %v2006_v29 }
 0x43e   : > { %1917 = vst.msk [vmem:[#allocation4 + $0x78] sm:$0xff] %vm1901_vm2, %v1884_v30 }
 0x443   : > { %v2227_v36 = vpop.f32.mrf.mxu1  ;;  %v1951_v54 = vpop.permute.xlu0 %1950 }
 0x444   : > { %v2228_v55 = vadd.f32 %v4259_v45, %v2227_v36  ;;  %1984 = vst.msk [vmem:[#allocation4 + $0x78] sm:$0xff] %vm1968_vm4, %v1951_v54  ;;  %v2076_v42 = vpop.permute.xlu1 %2075 }
 0x445   : > { %2055 = vst.msk [vmem:[#allocation4 + $0x78] sm:$0xff] %vm2039_vm14, %v2022_v27 }
 0x446   : > { %v2271_v38 = vmax.f32 %v2228_v55, 0.0  ;;  %2117 = vst.msk [vmem:[#allocation4 + $0x38] sm:$0xff] %vm2109_vm5, %v2076_v42 }
 0x448   : > { %2287 = vst.msk [vmem:[%s4265_s28 + $0x10] sm:$0xff] %vm1409_vm3, %v2271_v38 }
 0x44b   : > { %v2092_v8 = vpop.permute.xlu0 %2091 }
 0x44c   : > { %2125 = vst.msk [vmem:[#allocation4 + $0x78] sm:$0xff] %vm2109_vm5, %v2092_v8  ;;  %v1800_v49 = vpop.permute.xlu1 %1799 }
 0x44d   : > { %1840 = vst.msk [vmem:[#allocation4 + $0x40] sm:$0xff] %vm1831_vm15, %v1800_v49  ;;  %v2133_v60 = vld [vmem:[#allocation4 + $0x38] sm:$0xff] }
 0x44e   : > { %1910 = vst.msk [vmem:[#allocation4 + $0x40] sm:$0xff] %vm1901_vm2, %v1870_v23  ;;  %2434 = vmatmul.msk.f32.gmra.mxu1 %vm2155_vm10, %v2133_v60 }
 0x44f   : > { %v2251_v14 = vpop.f32.mrf.mxu3 }
 0x450   : > { %v2252_v50 = vadd.f32 %v4259_v45, %v2251_v14 }
 0x452   : > { %v2279_v34 = vmax.f32 %v2252_v50, 0.0 }
 0x453   : > { %v1937_v48 = vpop.permute.xlu0 %1936  ;;  %v2141_v62 = vld [vmem:[#allocation4 + $0x78] sm:$0xff] }
 0x454   : > { %2295 = vst.msk [vmem:[%s4265_s28 + $0x50] sm:$0xff] %vm1409_vm3, %v2279_v34  ;;  %v2008_v61 = vpop.permute.xlu1 %2007  ;;  %2442 = vmatmul.msk.f32.gmra.mxu3 %vm2155_vm10, %v2141_v62 }
 0x455   : > { %1977 = vst.msk [vmem:[#allocation4 + $0x40] sm:$0xff] %vm1968_vm4, %v1937_v48 }
 0x456   : > { %2048 = vst.msk [vmem:[#allocation4 + $0x40] sm:$0xff] %vm2039_vm14, %v2008_v61 }
 0x457   : > { %2118 = vst.msk [vmem:[#allocation4 + $0x40] sm:$0xff] %vm2109_vm5, %v2078_v58 }
 0x45a   : > { %v2230_v51 = vpop.f32.mrf.mxu1 }
 0x45b   : > { %v2231_v33 = vadd.f32 %v4259_v45, %v2230_v51 }
 0x45d   : > { %v2272_v53 = vmax.f32 %v2231_v33, 0.0 }
 0x45e   : > { %v2134_v37 = vld [vmem:[#allocation4 + $0x40] sm:$0xff] }
 0x45f   : > { %2288 = vst.msk [vmem:[%s4265_s28 + $0x18] sm:$0xff] %vm1409_vm3, %v2272_v53  ;;  %2435 = vmatmul.msk.f32.gmra.mxu1 %vm2155_vm10, %v2134_v37 }
 0x468   : > { %v2254_v57 = vpop.f32.mrf.mxu3 }
 0x469   : > { %v2255_v7 = vadd.f32 %v4259_v45, %v2254_v57 }
 0x46b   : > { %v2280_v0 = vmax.f32 %v2255_v7, 0.0 }
 0x46d   : > { %2296 = vst.msk [vmem:[%s4265_s28 + $0x58] sm:$0xff] %vm1409_vm3, %v2280_v0 }
 0x479   : > { %v2233_v59 = vpop.f32.mrf.mxu1 }
 0x47a   : > { %v2234_v24 = vadd.f32 %v4259_v45, %v2233_v59 }
 0x47c   : > { %v2273_v32 = vmax.f32 %v2234_v24, 0.0 }
 0x47e   : > { %2289 = vst.msk [vmem:[%s4265_s28 + $0x20] sm:$0xff] %vm1409_vm3, %v2273_v32 }
 0x481   : > { %v2257_v43 = vpop.f32.mrf.mxu3 }
 0x482   : > { %v2258_v46 = vadd.f32 %v4259_v45, %v2257_v43 }
 0x484   : > { %v2281_v22 = vmax.f32 %v2258_v46, 0.0 }
 0x486   : > { %2297 = vst.msk [vmem:[%s4265_s28 + $0x60] sm:$0xff] %vm1409_vm3, %v2281_v22 }
 0x493   : > { %v2236_v31 = vpop.f32.mrf.mxu1 }
 0x494   : > { %v2237_v47 = vadd.f32 %v4259_v45, %v2236_v31 }
 0x496   : > { %v2274_v4 = vmax.f32 %v2237_v47, 0.0 }
 0x498   : > { %2290 = vst.msk [vmem:[%s4265_s28 + $0x28] sm:$0xff] %vm1409_vm3, %v2274_v4 }
 0x49f   : > { %v2260_v26 = vpop.f32.mrf.mxu3 }
 0x4a0   : > { %v2261_v19 = vadd.f32 %v4259_v45, %v2260_v26 }
 0x4a2   : > { %v2282_v56 = vmax.f32 %v2261_v19, 0.0 }
 0x4a4   : > { %2298 = vst.msk [vmem:[%s4265_s28 + $0x68] sm:$0xff] %vm1409_vm3, %v2282_v56 }
 0x4aa   : > { %v2239_v12 = vpop.f32.mrf.mxu1 }
 0x4ab   : > { %v2240_v28 = vadd.f32 %v4259_v45, %v2239_v12 }
 0x4ad   : > { %v2275_v39 = vmax.f32 %v2240_v28, 0.0 }
 0x4af   : > { %2291 = vst.msk [vmem:[%s4265_s28 + $0x30] sm:$0xff] %vm1409_vm3, %v2275_v39 }
 0x4b8   : > { %v2263_v9 = vpop.f32.mrf.mxu3 }
 0x4b9   : > { %v2264_v16 = vadd.f32 %v4259_v45, %v2263_v9 }
 0x4bb   : > { %v2283_v21 = vmax.f32 %v2264_v16, 0.0 }
 0x4bd   : > { %2299 = vst.msk [vmem:[%s4265_s28 + $0x70] sm:$0xff] %vm1409_vm3, %v2283_v21 }
 0x4cb   : > { %v2242_v15 = vpop.f32.mrf.mxu1 }
 0x4cc   : > { %v2243_v5 = vadd.f32 %v4259_v45, %v2242_v15 }
 0x4ce   : > { %v2276_v6 = vmax.f32 %v2243_v5, 0.0 }
 0x4d0   : > { %2292 = vst.msk [vmem:[%s4265_s28 + $0x38] sm:$0xff] %vm1409_vm3, %v2276_v6 }
 0x4d7   : > { %v2266_v1 = vpop.f32.mrf.mxu3 }
 0x4d8   : > { %v2267_v25 = vadd.f32 %v4259_v45, %v2266_v1 }
 0x4da   : > { %v2284_v44 = vmax.f32 %v2267_v25, 0.0 }
 0x4dc   : > { %2300 = vst.msk [vmem:[%s4265_s28 + $0x78] sm:$0xff] %vm1409_vm3, %v2284_v44  ;;  %v2245_v17 = vpop.f32.mrf.mxu1 }
 0x4dd   : > { %v2246_v40 = vadd.f32 %v4259_v45, %v2245_v17 }
 0x4df   : > { %v2277_v11 = vmax.f32 %v2246_v40, 0.0 }
 0x4e1   : > { %2293 = vst.msk [vmem:[%s4265_s28 + $0x40] sm:$0xff] %vm1409_vm3, %v2277_v11 }
 0x4e2 PF: > { %s15_s22 = sadd.s32 1, %s2553_s22   ;;  %s4389_s18 = smov %s2545_s20 }
 0x4e3   : > { %p12_p7 = scmp.ge.s32.totalorder %s15_s22, 6   ;;  %s4390_s19 = smov %s2549_s21 }
 0x4e4   : > { %s4391_s20 = smov %s4394_s23  ;;  %s4392_s21 = smov %s4398_s24 }
 0x4e5   :  { %14 = sbr.rel (!%p12_p7) target bundleno = 3 (0x3), region = 71 }

</bundles_post_ra>
